<compile_context>
chip_gen: v6e
topology: v6e:2x2x1
jax: 0.10.0
libtpu: 0.0.40
codegen_flags: <defaults>
</compile_context>

<pallas_src>
import jax
import jax.numpy as jnp
from jax import lax
from jax.experimental import pallas as pl
from jax.experimental.pallas import tpu as pltpu


# ----------------------------------------------------------------------------
# Parameter construction (deterministic, mirrors the PyTorch module layout).
# ----------------------------------------------------------------------------
def init_params(key, channel=32, layers=6):
    L = layers + 2                      # total number of 3x3 convs
    keys = iter(jax.random.split(key, 64))

    def nrm(shape, std):
        return jax.random.normal(next(keys), shape, jnp.float32) * std

    p = {}
    # mlp: 1x1 convs 1 -> 64 -> 128 -> 1, stored as dense (c_in, c_out).
    mlp_dims = [(1, 64), (64, 128), (128, 1)]
    p["mlp_w"] = [nrm((ci, co), (2.0 / ci) ** 0.5) for ci, co in mlp_dims]
    p["mlp_b"] = [nrm((co,), 0.05) for _, co in mlp_dims]

    # conv trunk, HWIO weights: 1->ch, (ch->ch) x layers, ch->1.
    conv_dims = [(1, channel)] + [(channel, channel)] * layers + [(channel, 1)]
    p["conv_w"] = [nrm((3, 3, ci, co), (2.0 / (9.0 * ci)) ** 0.5) for ci, co in conv_dims]
    p["conv_b"] = [nrm((co,), 0.05) for _, co in conv_dims]

    # BatchNorm (inference running stats) after every conv except the last.
    nbn = L - 1
    p["bn_gamma"] = [1.0 + nrm((channel,), 0.1) for _ in range(nbn)]
    p["bn_beta"] = [nrm((channel,), 0.1) for _ in range(nbn)]
    p["bn_mean"] = [nrm((channel,), 0.1) for _ in range(nbn)]
    p["bn_var"] = [jax.random.uniform(next(keys), (channel,), jnp.float32, 0.5, 1.5)
                   for _ in range(nbn)]
    return p


# ----------------------------------------------------------------------------
# Fused Pallas forward.
# ----------------------------------------------------------------------------
def znet_forward(B, lamd, params):
    N, Cb, H, W = B.shape
    assert Cb == 1 and lamd.shape == B.shape
    HW = H * W
    L = len(params["conv_w"])           # layers + 2 convs
    NMID = L - 2                        # uniform CH->CH middle layers
    assert NMID >= 1
    CH = params["conv_w"][0].shape[3]
    # Lane-aligned halo width for the flat padded row buffer (>= W+1, mult of 128
    # so the interior writeback is an unmasked, lane-aligned store).
    PAD = max(128, -(-(W + 1) // 128) * 128)
    eps = 1e-5
    f32, bf16 = jnp.float32, jnp.bfloat16

    # ---- lane-dense I/O layout: (N, 1, HW), HW on lanes ----------------------
    b2d = B.reshape(N, 1, HW).astype(f32)
    lam2d = lamd.reshape(N, 1, HW).astype(f32)

    # ---- MLP weights, channel-first ------------------------------------------
    w1c = params["mlp_w"][0].T.astype(f32)                   # (64, 1)   (VPU outer product)
    b1c = params["mlp_b"][0].reshape(-1, 1).astype(f32)      # (64, 1)
    w2t = params["mlp_w"][1].T.astype(bf16)                  # (128, 64)
    b2c = params["mlp_b"][1].reshape(-1, 1).astype(f32)      # (128, 1)
    w3t8 = jnp.zeros((8, 128), f32).at[0].set(params["mlp_w"][2][:, 0]).astype(bf16)
    b3s = params["mlp_b"][2].reshape(1, 1).astype(f32)       # (1, 1)

    # ---- conv trunk: fold conv bias + BN into (scaled weights, f32 shift) ----
    def bn_fold(l):
        a = params["bn_gamma"][l] / jnp.sqrt(params["bn_var"][l] + eps)
        sh = a * (params["conv_b"][l] - params["bn_mean"][l]) + params["bn_beta"][l]
        return a.astype(f32), sh.astype(f32)

    # layer 0: 1 -> CH   (K = 9, special-cased)
    a0, sh0 = bn_fold(0)
    w0 = params["conv_w"][0].astype(f32).reshape(9, CH)          # (k, cout)
    w0t = (w0 * a0[None, :]).T.astype(bf16)                      # (CH, 9)
    s0 = sh0.reshape(CH, 1)

    # middle layers: CH -> CH  (K = 9*CH, one dot each)
    wm_list, sm_list = [], []
    for l in range(1, L - 1):
        a, sh = bn_fold(l)
        w = params["conv_w"][l].astype(f32).reshape(9 * CH, CH)  # (k*cin+ci, cout)
        wm_list.append((w * a[None, :]).T)                       # (CH, 9*CH)
        sm_list.append(sh.reshape(CH, 1))
    wmt = jnp.stack(wm_list).astype(bf16)                        # (NMID, CH, 9*CH)
    sm = jnp.stack(sm_list).astype(f32)                          # (NMID, CH, 1)

    # final layer: CH -> 1 (no BN / ReLU); pad M to 8 rows, use row 0.
    wL = params["conv_w"][L - 1].astype(f32).reshape(9 * CH, 1)
    wLt8 = jnp.zeros((8, 9 * CH), f32).at[0].set(wL[:, 0]).astype(bf16)
    bL = params["conv_b"][L - 1].reshape(1, 1).astype(f32)

    taps = [(dy, dx) for dy in (-1, 0, 1) for dx in (-1, 0, 1)]  # k = 3*(dy+1)+(dx+1)

    # ---- kernel ---------------------------------------------------------------
    def kernel(b_ref, lam_ref, w1c_ref, b1c_ref, w2t_ref, b2c_ref, w3t_ref,
               b3s_ref, w0t_ref, s0_ref, wmt_ref, sm_ref, wLt_ref, bL_ref,
               z_ref, xflat_ref, patch_ref, act_ref):
        # Column-validity masks for the dx = +/-1 taps (W-boundary wrap in the
        # flat-index shift); row boundaries are handled by the zero halo.
        col = lax.broadcasted_iota(jnp.int32, (1, HW), 1) % W
        m_left = (col > 0).astype(bf16)          # reading column col-1 is valid
        m_right = (col < (W - 1)).astype(bf16)   # reading column col+1 is valid

        # Zero the flat padded row buffer once (halo + stale rows); tiny (~32 KiB).
        xflat_ref[...] = jnp.zeros_like(xflat_ref)

        def conv_mxu(nc, wt):
            # xflat rows [0:nc), lanes [PAD:PAD+HW) must hold the bf16 activation.
            # Build the (9*nc, HW) im2col patch with static lane-offset slices,
            # then one K = 9*nc MXU dot with HW on the output lanes.
            for k, (dy, dx) in enumerate(taps):
                s = dy * W + dx
                y = xflat_ref[0:nc, PAD + s:PAD + s + HW]
                if dx == 1:
                    y = y * m_right
                elif dx == -1:
                    y = y * m_left
                patch_ref[k * nc:(k + 1) * nc, :] = y
            return jnp.dot(wt, patch_ref[0:9 * nc, :],
                           preferred_element_type=jnp.float32)

        # --- parameter MLP (1x1 convs), channel-first --------------------------
        lam = lam_ref[0]                                             # (1, HW) f32
        h1 = jnp.maximum(w1c_ref[...] * lam + b1c_ref[...], 0.0)     # (64, HW) f32
        h2 = jnp.maximum(
            jnp.dot(w2t_ref[...], h1.astype(bf16),
                    preferred_element_type=jnp.float32) + b2c_ref[...], 0.0)  # (128, HW)
        pf = jnp.dot(w3t_ref[...], h2.astype(bf16),
                     preferred_element_type=jnp.float32)[0:1, :] + b3s_ref[...]
        x0 = b_ref[0] + pf                                           # (1, HW) f32

        # --- conv trunk ---------------------------------------------------------
        # layer 0: 1 -> CH, BN + ReLU folded into scale/shift.
        xflat_ref[0:1, PAD:PAD + HW] = x0.astype(bf16)
        a0k = conv_mxu(1, w0t_ref[...])                              # (CH, HW) f32
        act_ref[...] = jnp.maximum(a0k + s0_ref[...], 0.0)

        # uniform middle layers, dynamically indexed packed weights.
        def mid_body(l, carry):
            xflat_ref[:, PAD:PAD + HW] = act_ref[...].astype(bf16)
            a = conv_mxu(CH, wmt_ref[l])                             # (CH, HW) f32
            act_ref[...] = jnp.maximum(a + sm_ref[l], 0.0)
            return carry
        lax.fori_loop(0, NMID, mid_body, 0)

        # final layer: CH -> 1, bias only, lane-dense (1, HW) store.
        xflat_ref[:, PAD:PAD + HW] = act_ref[...].astype(bf16)
        zf = conv_mxu(CH, wLt_ref[...])                              # (8, HW) f32
        z_ref[0] = (zf[0:1, :] + bL_ref[...]).astype(z_ref.dtype)

    # ---- specs / call ---------------------------------------------------------
    row_spec = pl.BlockSpec((1, 1, HW), lambda n: (n, 0, 0))

    def full_spec(x):
        return pl.BlockSpec(x.shape, lambda n, nd=x.ndim: (0,) * nd)

    macs_per_px = (64 + 64 * 128 + 128) + 9 * CH + NMID * 9 * CH * CH + 9 * CH
    flops = int(2 * N * HW * macs_per_px)
    bytes_accessed = int(4 * 3 * N * HW
                         + 2 * (wmt.size + w2t.size + w0t.size + wLt8.size + w3t8.size)
                         + 4 * (sm.size + s0.size + b1c.size + b2c.size + w1c.size))

    z = pl.pallas_call(
        kernel,
        out_shape=jax.ShapeDtypeStruct((N, 1, HW), f32),
        grid=(N,),
        in_specs=[row_spec, row_spec,
                  full_spec(w1c), full_spec(b1c), full_spec(w2t), full_spec(b2c),
                  full_spec(w3t8), full_spec(b3s),
                  full_spec(w0t), full_spec(s0), full_spec(wmt), full_spec(sm),
                  full_spec(wLt8), full_spec(bL)],
        out_specs=row_spec,
        scratch_shapes=[
            pltpu.VMEM((CH, PAD + HW + PAD), bf16),   # flat zero-padded activation rows
            pltpu.VMEM((9 * CH, HW), bf16),           # im2col patch (K on sublanes)
            pltpu.VMEM((CH, HW), jnp.float32),        # layer activation (f32)
        ],
        compiler_params=pltpu.CompilerParams(
            dimension_semantics=("parallel",),
            vmem_limit_bytes=48 * 1024 * 1024),
        cost_estimate=pl.CostEstimate(flops=flops, transcendentals=0,
                                      bytes_accessed=bytes_accessed),
    )(b2d, lam2d, w1c, b1c, w2t, b2c, w3t8, b3s, w0t, s0, wmt, sm, wLt8, bL)

    return z.reshape(N, 1, H, W)


# ----------------------------------------------------------------------------
# Pure-JAX reference (independent implementation via lax.conv, f32 HIGHEST).
# ----------------------------------------------------------------------------
def znet_reference(B, lamd, params, eps=1e-5):
    hp = lax.Precision.HIGHEST
    x = jnp.transpose(lamd, (0, 2, 3, 1)).astype(jnp.float32)      # (N,H,W,1)
    w1, w2, w3 = params["mlp_w"]
    b1, b2, b3 = params["mlp_b"]
    h = jax.nn.relu(jnp.einsum("nhwc,cd->nhwd", x, w1, precision=hp) + b1)
    h = jax.nn.relu(jnp.einsum("nhwc,cd->nhwd", h, w2, precision=hp) + b2)
    pf = jnp.einsum("nhwc,cd->nhwd", h, w3, precision=hp) + b3
    act = jnp.transpose(B, (0, 2, 3, 1)).astype(jnp.float32) + pf

    L = len(params["conv_w"])
    for l in range(L):
        act = lax.conv_general_dilated(
            act, params["conv_w"][l], (1, 1), "SAME",
            dimension_numbers=("NHWC", "HWIO", "NHWC"),
            precision=hp) + params["conv_b"][l]
        if l < L - 1:
            a = params["bn_gamma"][l] / jnp.sqrt(params["bn_var"][l] + eps)
            act = a * (act - params["bn_mean"][l]) + params["bn_beta"][l]
            act = jax.nn.relu(act)
    return jnp.transpose(act, (0, 3, 1, 2))                         # (N,1,H,W)


if __name__ == "__main__":
    key = jax.random.PRNGKey(0)
    kp, kb, kl = jax.random.split(key, 3)

    N, H, W = 2, 16, 16
    channel, layers = 32, 6

    params = init_params(kp, channel=channel, layers=layers)
    B = jax.random.normal(kb, (N, 1, H, W), jnp.float32)
    lamd = 0.1 * jax.random.normal(kl, (N, 1, H, W), jnp.float32)

    Z = jax.block_until_ready(znet_forward(B, lamd, params))
    Z_ref = znet_reference(B, lamd, params)

    assert Z.shape == (N, 1, H, W)
    max_err = float(jnp.max(jnp.abs(Z - Z_ref)))
    assert bool(jnp.allclose(Z, Z_ref, atol=5e-2, rtol=5e-2)), f"max abs err {max_err}"

    print("KERNEL_OK")
</pallas_src>

<mosaic_0001>
module attributes {stable_mosaic.version = 11 : i64} {
  func.func @kernel(%arg0: i32, %arg1: memref<1x1x256xf32, #tpu.memory_space<vmem>>, %arg2: memref<1x1x256xf32, #tpu.memory_space<vmem>>, %arg3: memref<64x1xf32, #tpu.memory_space<vmem>>, %arg4: memref<64x1xf32, #tpu.memory_space<vmem>>, %arg5: memref<128x64xbf16, #tpu.memory_space<vmem>>, %arg6: memref<128x1xf32, #tpu.memory_space<vmem>>, %arg7: memref<8x128xbf16, #tpu.memory_space<vmem>>, %arg8: memref<1x1xf32, #tpu.memory_space<vmem>>, %arg9: memref<32x9xbf16, #tpu.memory_space<vmem>>, %arg10: memref<32x1xf32, #tpu.memory_space<vmem>>, %arg11: memref<6x32x288xbf16, #tpu.memory_space<vmem>>, %arg12: memref<6x32x1xf32, #tpu.memory_space<vmem>>, %arg13: memref<8x288xbf16, #tpu.memory_space<vmem>>, %arg14: memref<1x1xf32, #tpu.memory_space<vmem>>, %arg15: memref<1x1x256xf32, #tpu.memory_space<vmem>>, %arg16: memref<32x512xbf16, #tpu.memory_space<vmem>>, %arg17: memref<288x256xbf16, #tpu.memory_space<vmem>>, %arg18: memref<32x256xf32, #tpu.memory_space<vmem>>) attributes {dimension_semantics = [#tpu.dimension_semantics<parallel>], iteration_bounds = array<i64: 2>, scalar_prefetch = 0 : i64, scratch_operands = 3 : i64, tpu.core_type = #tpu.core_type<tc>, window_params = [{transform_indices = @transform_0, window_bounds = array<i64: 1, 1, 256>}, {transform_indices = @transform_1, window_bounds = array<i64: 1, 1, 256>}, {pipeline_mode = #tpu.pipeline_mode<synchronous>, transform_indices = @transform_2, window_bounds = array<i64: 64, 1>}, {pipeline_mode = #tpu.pipeline_mode<synchronous>, transform_indices = @transform_3, window_bounds = array<i64: 64, 1>}, {pipeline_mode = #tpu.pipeline_mode<synchronous>, transform_indices = @transform_4, window_bounds = array<i64: 128, 64>}, {pipeline_mode = #tpu.pipeline_mode<synchronous>, transform_indices = @transform_5, window_bounds = array<i64: 128, 1>}, {pipeline_mode = #tpu.pipeline_mode<synchronous>, transform_indices = @transform_6, window_bounds = array<i64: 8, 128>}, {pipeline_mode = #tpu.pipeline_mode<synchronous>, transform_indices = @transform_7, window_bounds = array<i64: 1, 1>}, {pipeline_mode = #tpu.pipeline_mode<synchronous>, transform_indices = @transform_8, window_bounds = array<i64: 32, 9>}, {pipeline_mode = #tpu.pipeline_mode<synchronous>, transform_indices = @transform_9, window_bounds = array<i64: 32, 1>}, {pipeline_mode = #tpu.pipeline_mode<synchronous>, transform_indices = @transform_10, window_bounds = array<i64: 6, 32, 288>}, {pipeline_mode = #tpu.pipeline_mode<synchronous>, transform_indices = @transform_11, window_bounds = array<i64: 6, 32, 1>}, {pipeline_mode = #tpu.pipeline_mode<synchronous>, transform_indices = @transform_12, window_bounds = array<i64: 8, 288>}, {pipeline_mode = #tpu.pipeline_mode<synchronous>, transform_indices = @transform_13, window_bounds = array<i64: 1, 1>}, {transform_indices = @transform_14, window_bounds = array<i64: 1, 1, 256>}]} {
    %0 = tpu.iota {dimensions = array<i32: 1>} : vector<1x256xi32>
    %c16_i32 = arith.constant 16 : i32
    %c0_i32 = arith.constant 0 : i32
    %1 = arith.cmpi eq, %c16_i32, %c0_i32 : i32
    %c1_i32 = arith.constant 1 : i32
    %2 = arith.select %1, %c1_i32, %c16_i32 : i32
    %3 = vector.broadcast %2 : i32 to vector<1x256xi32>
    %4 = arith.remsi %0, %3 : vector<1x256xi32>
    %c0_i32_0 = arith.constant 0 : i32
    %5 = vector.broadcast %c0_i32_0 : i32 to vector<1x256xi32>
    %6 = arith.cmpi ne, %4, %5 : vector<1x256xi32>
    %c0_i32_1 = arith.constant 0 : i32
    %7 = vector.broadcast %c0_i32_1 : i32 to vector<1x256xi32>
    %8 = arith.cmpi slt, %4, %7 : vector<1x256xi32>
    %c0_i32_2 = arith.constant 0 : i32
    %9 = arith.cmpi slt, %2, %c0_i32_2 : i32
    %10 = vector.broadcast %9 : i1 to vector<1x256xi1>
    %11 = vector.broadcast %10 : vector<1x256xi1> to vector<1x256xi1>
    %12 = arith.xori %8, %11 : vector<1x256xi1>
    %13 = arith.andi %12, %6 : vector<1x256xi1>
    %14 = vector.broadcast %2 : i32 to vector<1x256xi32>
    %15 = arith.addi %4, %14 : vector<1x256xi32>
    %16 = arith.select %13, %15, %4 : vector<1x256xi1>, vector<1x256xi32>
    %c0_i32_3 = arith.constant 0 : i32
    %17 = vector.broadcast %c0_i32_3 : i32 to vector<1x256xi32>
    %18 = arith.cmpi sgt, %16, %17 : vector<1x256xi32>
    %19 = arith.extui %18 : vector<1x256xi1> to vector<1x256xi32>
    %20 = arith.sitofp %19 : vector<1x256xi32> to vector<1x256xf32>
    %21 = arith.truncf %20 : vector<1x256xf32> to vector<1x256xbf16>
    %c15_i32 = arith.constant 15 : i32
    %22 = vector.broadcast %c15_i32 : i32 to vector<1x256xi32>
    %23 = arith.cmpi slt, %16, %22 : vector<1x256xi32>
    %24 = arith.extui %23 : vector<1x256xi1> to vector<1x256xi32>
    %25 = arith.sitofp %24 : vector<1x256xi32> to vector<1x256xf32>
    %26 = arith.truncf %25 : vector<1x256xf32> to vector<1x256xbf16>
    %cst = arith.constant 0.000000e+00 : bf16
    %27 = vector.broadcast %cst : bf16 to vector<32x512xbf16>
    %c0 = arith.constant 0 : index
    %c0_4 = arith.constant 0 : index
    %28 = vector.load %arg16[%c0, %c0_4] : memref<32x512xbf16, #tpu.memory_space<vmem>>, vector<32x512xbf16>
    tpu.vector_store %arg16[%c0, %c0_4], %27 {strides = array<i32>} : memref<32x512xbf16, #tpu.memory_space<vmem>>, vector<32x512xbf16>,
    %c0_5 = arith.constant 0 : index
    %c0_6 = arith.constant 0 : index
    %c0_7 = arith.constant 0 : index
    %29 = vector.load %arg2[%c0_5, %c0_6, %c0_7] : memref<1x1x256xf32, #tpu.memory_space<vmem>>, vector<1x1x256xf32>
    %30 = vector.shape_cast %29 : vector<1x1x256xf32> to vector<1x256xf32>
    %c0_8 = arith.constant 0 : index
    %c0_9 = arith.constant 0 : index
    %31 = vector.load %arg3[%c0_8, %c0_9] : memref<64x1xf32, #tpu.memory_space<vmem>>, vector<64x1xf32>
    %32 = vector.broadcast %31 : vector<64x1xf32> to vector<64x256xf32>
    %33 = vector.broadcast %30 : vector<1x256xf32> to vector<64x256xf32>
    %34 = arith.mulf %32, %33 : vector<64x256xf32>
    %c0_10 = arith.constant 0 : index
    %c0_11 = arith.constant 0 : index
    %35 = vector.load %arg4[%c0_10, %c0_11] : memref<64x1xf32, #tpu.memory_space<vmem>>, vector<64x1xf32>
    %36 = vector.broadcast %35 : vector<64x1xf32> to vector<64x256xf32>
    %37 = arith.addf %34, %36 : vector<64x256xf32>
    %cst_12 = arith.constant 0.000000e+00 : f32
    %38 = vector.broadcast %cst_12 : f32 to vector<64x256xf32>
    %39 = arith.maximumf %37, %38 : vector<64x256xf32>
    %c0_13 = arith.constant 0 : index
    %c0_14 = arith.constant 0 : index
    %40 = vector.load %arg5[%c0_13, %c0_14] : memref<128x64xbf16, #tpu.memory_space<vmem>>, vector<128x64xbf16>
    %41 = arith.truncf %39 : vector<64x256xf32> to vector<64x256xbf16>
    %cst_15 = arith.constant dense<0.000000e+00> : vector<128x256xf32>
    %42 = tpu.matmul %40, %41, %cst_15 {dimension_numbers = #tpu.dot_dimension_numbers<[1], [0], [0], [1], [0, 0, 1, 1], [], []>} : vector<128x64xbf16>, vector<64x256xbf16>, vector<128x256xf32> -> vector<128x256xf32>
    %c0_16 = arith.constant 0 : index
    %c0_17 = arith.constant 0 : index
    %43 = vector.load %arg6[%c0_16, %c0_17] : memref<128x1xf32, #tpu.memory_space<vmem>>, vector<128x1xf32>
    %44 = vector.broadcast %43 : vector<128x1xf32> to vector<128x256xf32>
    %45 = arith.addf %42, %44 : vector<128x256xf32>
    %cst_18 = arith.constant 0.000000e+00 : f32
    %46 = vector.broadcast %cst_18 : f32 to vector<128x256xf32>
    %47 = arith.maximumf %45, %46 : vector<128x256xf32>
    %c0_19 = arith.constant 0 : index
    %c0_20 = arith.constant 0 : index
    %48 = vector.load %arg7[%c0_19, %c0_20] : memref<8x128xbf16, #tpu.memory_space<vmem>>, vector<8x128xbf16>
    %49 = arith.truncf %47 : vector<128x256xf32> to vector<128x256xbf16>
    %cst_21 = arith.constant dense<0.000000e+00> : vector<8x256xf32>
    %50 = tpu.matmul %48, %49, %cst_21 {dimension_numbers = #tpu.dot_dimension_numbers<[1], [0], [0], [1], [0, 0, 1, 1], [], []>} : vector<8x128xbf16>, vector<128x256xbf16>, vector<8x256xf32> -> vector<8x256xf32>
    %51 = vector.extract_strided_slice %50 {offsets = [0, 0], sizes = [1, 256], strides = [1, 1]} : vector<8x256xf32> to vector<1x256xf32>
    %c0_22 = arith.constant 0 : index
    %c0_23 = arith.constant 0 : index
    %52 = vector.load %arg8[%c0_22, %c0_23] : memref<1x1xf32, #tpu.memory_space<vmem>>, vector<1x1xf32>
    %53 = vector.broadcast %52 : vector<1x1xf32> to vector<1x256xf32>
    %54 = arith.addf %51, %53 : vector<1x256xf32>
    %c0_24 = arith.constant 0 : index
    %c0_25 = arith.constant 0 : index
    %c0_26 = arith.constant 0 : index
    %55 = vector.load %arg1[%c0_24, %c0_25, %c0_26] : memref<1x1x256xf32, #tpu.memory_space<vmem>>, vector<1x1x256xf32>
    %56 = vector.shape_cast %55 : vector<1x1x256xf32> to vector<1x256xf32>
    %57 = arith.addf %56, %54 : vector<1x256xf32>
    %58 = arith.truncf %57 : vector<1x256xf32> to vector<1x256xbf16>
    %c0_27 = arith.constant 0 : index
    %c128 = arith.constant 128 : index
    %59 = vector.load %arg16[%c0_27, %c128] : memref<32x512xbf16, #tpu.memory_space<vmem>>, vector<1x256xbf16>
    tpu.vector_store %arg16[%c0_27, %c128], %58 {strides = array<i32>} : memref<32x512xbf16, #tpu.memory_space<vmem>>, vector<1x256xbf16>,
    %c0_28 = arith.constant 0 : index
    %c0_29 = arith.constant 0 : index
    %60 = vector.load %arg9[%c0_28, %c0_29] : memref<32x9xbf16, #tpu.memory_space<vmem>>, vector<32x9xbf16>
    %c0_30 = arith.constant 0 : index
    %c111 = arith.constant 111 : index
    %61 = vector.load %arg16[%c0_30, %c111] : memref<32x512xbf16, #tpu.memory_space<vmem>>, vector<1x256xbf16>
    %62 = arith.mulf %61, %21 : vector<1x256xbf16>
    %c0_31 = arith.constant 0 : index
    %c0_32 = arith.constant 0 : index
    %63 = vector.load %arg17[%c0_31, %c0_32] : memref<288x256xbf16, #tpu.memory_space<vmem>>, vector<1x256xbf16>
    tpu.vector_store %arg17[%c0_31, %c0_32], %62 {strides = array<i32>} : memref<288x256xbf16, #tpu.memory_space<vmem>>, vector<1x256xbf16>,
    %c0_33 = arith.constant 0 : index
    %c112 = arith.constant 112 : index
    %64 = vector.load %arg16[%c0_33, %c112] : memref<32x512xbf16, #tpu.memory_space<vmem>>, vector<1x256xbf16>
    %c1 = arith.constant 1 : index
    %c0_34 = arith.constant 0 : index
    %65 = vector.load %arg17[%c1, %c0_34] : memref<288x256xbf16, #tpu.memory_space<vmem>>, vector<1x256xbf16>
    tpu.vector_store %arg17[%c1, %c0_34], %64 {strides = array<i32>} : memref<288x256xbf16, #tpu.memory_space<vmem>>, vector<1x256xbf16>,
    %c0_35 = arith.constant 0 : index
    %c113 = arith.constant 113 : index
    %66 = vector.load %arg16[%c0_35, %c113] : memref<32x512xbf16, #tpu.memory_space<vmem>>, vector<1x256xbf16>
    %67 = arith.mulf %66, %26 : vector<1x256xbf16>
    %c2 = arith.constant 2 : index
    %c0_36 = arith.constant 0 : index
    %68 = vector.load %arg17[%c2, %c0_36] : memref<288x256xbf16, #tpu.memory_space<vmem>>, vector<1x256xbf16>
    tpu.vector_store %arg17[%c2, %c0_36], %67 {strides = array<i32>} : memref<288x256xbf16, #tpu.memory_space<vmem>>, vector<1x256xbf16>,
    %c0_37 = arith.constant 0 : index
    %c127 = arith.constant 127 : index
    %69 = vector.load %arg16[%c0_37, %c127] : memref<32x512xbf16, #tpu.memory_space<vmem>>, vector<1x256xbf16>
    %70 = arith.mulf %69, %21 : vector<1x256xbf16>
    %c3 = arith.constant 3 : index
    %c0_38 = arith.constant 0 : index
    %71 = vector.load %arg17[%c3, %c0_38] : memref<288x256xbf16, #tpu.memory_space<vmem>>, vector<1x256xbf16>
    tpu.vector_store %arg17[%c3, %c0_38], %70 {strides = array<i32>} : memref<288x256xbf16, #tpu.memory_space<vmem>>, vector<1x256xbf16>,
    %c0_39 = arith.constant 0 : index
    %c128_40 = arith.constant 128 : index
    %72 = vector.load %arg16[%c0_39, %c128_40] : memref<32x512xbf16, #tpu.memory_space<vmem>>, vector<1x256xbf16>
    %c4 = arith.constant 4 : index
    %c0_41 = arith.constant 0 : index
    %73 = vector.load %arg17[%c4, %c0_41] : memref<288x256xbf16, #tpu.memory_space<vmem>>, vector<1x256xbf16>
    tpu.vector_store %arg17[%c4, %c0_41], %72 {strides = array<i32>} : memref<288x256xbf16, #tpu.memory_space<vmem>>, vector<1x256xbf16>,
    %c0_42 = arith.constant 0 : index
    %c129 = arith.constant 129 : index
    %74 = vector.load %arg16[%c0_42, %c129] : memref<32x512xbf16, #tpu.memory_space<vmem>>, vector<1x256xbf16>
    %75 = arith.mulf %74, %26 : vector<1x256xbf16>
    %c5 = arith.constant 5 : index
    %c0_43 = arith.constant 0 : index
    %76 = vector.load %arg17[%c5, %c0_43] : memref<288x256xbf16, #tpu.memory_space<vmem>>, vector<1x256xbf16>
    tpu.vector_store %arg17[%c5, %c0_43], %75 {strides = array<i32>} : memref<288x256xbf16, #tpu.memory_space<vmem>>, vector<1x256xbf16>,
    %c0_44 = arith.constant 0 : index
    %c143 = arith.constant 143 : index
    %77 = vector.load %arg16[%c0_44, %c143] : memref<32x512xbf16, #tpu.memory_space<vmem>>, vector<1x256xbf16>
    %78 = arith.mulf %77, %21 : vector<1x256xbf16>
    %c6 = arith.constant 6 : index
    %c0_45 = arith.constant 0 : index
    %79 = vector.load %arg17[%c6, %c0_45] : memref<288x256xbf16, #tpu.memory_space<vmem>>, vector<1x256xbf16>
    tpu.vector_store %arg17[%c6, %c0_45], %78 {strides = array<i32>} : memref<288x256xbf16, #tpu.memory_space<vmem>>, vector<1x256xbf16>,
    %c0_46 = arith.constant 0 : index
    %c144 = arith.constant 144 : index
    %80 = vector.load %arg16[%c0_46, %c144] : memref<32x512xbf16, #tpu.memory_space<vmem>>, vector<1x256xbf16>
    %c7 = arith.constant 7 : index
    %c0_47 = arith.constant 0 : index
    %81 = vector.load %arg17[%c7, %c0_47] : memref<288x256xbf16, #tpu.memory_space<vmem>>, vector<1x256xbf16>
    tpu.vector_store %arg17[%c7, %c0_47], %80 {strides = array<i32>} : memref<288x256xbf16, #tpu.memory_space<vmem>>, vector<1x256xbf16>,
    %c0_48 = arith.constant 0 : index
    %c145 = arith.constant 145 : index
    %82 = vector.load %arg16[%c0_48, %c145] : memref<32x512xbf16, #tpu.memory_space<vmem>>, vector<1x256xbf16>
    %83 = arith.mulf %82, %26 : vector<1x256xbf16>
    %c8 = arith.constant 8 : index
    %c0_49 = arith.constant 0 : index
    %84 = vector.load %arg17[%c8, %c0_49] : memref<288x256xbf16, #tpu.memory_space<vmem>>, vector<1x256xbf16>
    tpu.vector_store %arg17[%c8, %c0_49], %83 {strides = array<i32>} : memref<288x256xbf16, #tpu.memory_space<vmem>>, vector<1x256xbf16>,
    %c0_50 = arith.constant 0 : index
    %c0_51 = arith.constant 0 : index
    %85 = vector.load %arg17[%c0_50, %c0_51] : memref<288x256xbf16, #tpu.memory_space<vmem>>, vector<9x256xbf16>
    %cst_52 = arith.constant dense<0.000000e+00> : vector<32x256xf32>
    %86 = tpu.matmul %60, %85, %cst_52 {dimension_numbers = #tpu.dot_dimension_numbers<[1], [0], [0], [1], [0, 0, 1, 1], [], []>} : vector<32x9xbf16>, vector<9x256xbf16>, vector<32x256xf32> -> vector<32x256xf32>
    %c0_53 = arith.constant 0 : index
    %c0_54 = arith.constant 0 : index
    %87 = vector.load %arg10[%c0_53, %c0_54] : memref<32x1xf32, #tpu.memory_space<vmem>>, vector<32x1xf32>
    %88 = vector.broadcast %87 : vector<32x1xf32> to vector<32x256xf32>
    %89 = arith.addf %86, %88 : vector<32x256xf32>
    %cst_55 = arith.constant 0.000000e+00 : f32
    %90 = vector.broadcast %cst_55 : f32 to vector<32x256xf32>
    %91 = arith.maximumf %89, %90 : vector<32x256xf32>
    %c0_56 = arith.constant 0 : index
    %c0_57 = arith.constant 0 : index
    %92 = vector.load %arg18[%c0_56, %c0_57] : memref<32x256xf32, #tpu.memory_space<vmem>>, vector<32x256xf32>
    tpu.vector_store %arg18[%c0_56, %c0_57], %91 {strides = array<i32>} : memref<32x256xf32, #tpu.memory_space<vmem>>, vector<32x256xf32>,
    %c0_i32_58 = arith.constant 0 : i32
    %c6_i32 = arith.constant 6 : i32
    %93 = arith.addi %c0_i32_58, %c6_i32 : i32
    %c1_i32_59 = arith.constant 1 : i32
    scf.for %arg19 = %c0_i32_58 to %93 step %c1_i32_59  : i32 {
      %c0_104 = arith.constant 0 : index
      %c0_105 = arith.constant 0 : index
      %137 = vector.load %arg18[%c0_104, %c0_105] : memref<32x256xf32, #tpu.memory_space<vmem>>, vector<32x256xf32>
      %138 = arith.truncf %137 : vector<32x256xf32> to vector<32x256xbf16>
      %c0_106 = arith.constant 0 : index
      %c128_107 = arith.constant 128 : index
      %139 = vector.load %arg16[%c0_106, %c128_107] : memref<32x512xbf16, #tpu.memory_space<vmem>>, vector<32x256xbf16>
      tpu.vector_store %arg16[%c0_106, %c128_107], %138 {strides = array<i32>} : memref<32x512xbf16, #tpu.memory_space<vmem>>, vector<32x256xbf16>,
      %140 = arith.index_cast %arg19 : i32 to index
      %c0_108 = arith.constant 0 : index
      %c0_109 = arith.constant 0 : index
      %141 = vector.load %arg11[%140, %c0_108, %c0_109] : memref<6x32x288xbf16, #tpu.memory_space<vmem>>, vector<1x32x288xbf16>
      %142 = vector.shape_cast %141 : vector<1x32x288xbf16> to vector<32x288xbf16>
      %c0_110 = arith.constant 0 : index
      %c111_111 = arith.constant 111 : index
      %143 = vector.load %arg16[%c0_110, %c111_111] : memref<32x512xbf16, #tpu.memory_space<vmem>>, vector<32x256xbf16>
      %144 = vector.broadcast %21 : vector<1x256xbf16> to vector<32x256xbf16>
      %145 = arith.mulf %143, %144 : vector<32x256xbf16>
      %c0_112 = arith.constant 0 : index
      %c0_113 = arith.constant 0 : index
      %146 = vector.load %arg17[%c0_112, %c0_113] : memref<288x256xbf16, #tpu.memory_space<vmem>>, vector<32x256xbf16>
      tpu.vector_store %arg17[%c0_112, %c0_113], %145 {strides = array<i32>} : memref<288x256xbf16, #tpu.memory_space<vmem>>, vector<32x256xbf16>,
      %c0_114 = arith.constant 0 : index
      %c112_115 = arith.constant 112 : index
      %147 = vector.load %arg16[%c0_114, %c112_115] : memref<32x512xbf16, #tpu.memory_space<vmem>>, vector<32x256xbf16>
      %c32_116 = arith.constant 32 : index
      %c0_117 = arith.constant 0 : index
      %148 = vector.load %arg17[%c32_116, %c0_117] : memref<288x256xbf16, #tpu.memory_space<vmem>>, vector<32x256xbf16>
      tpu.vector_store %arg17[%c32_116, %c0_117], %147 {strides = array<i32>} : memref<288x256xbf16, #tpu.memory_space<vmem>>, vector<32x256xbf16>,
      %c0_118 = arith.constant 0 : index
      %c113_119 = arith.constant 113 : index
      %149 = vector.load %arg16[%c0_118, %c113_119] : memref<32x512xbf16, #tpu.memory_space<vmem>>, vector<32x256xbf16>
      %150 = vector.broadcast %26 : vector<1x256xbf16> to vector<32x256xbf16>
      %151 = arith.mulf %149, %150 : vector<32x256xbf16>
      %c64_120 = arith.constant 64 : index
      %c0_121 = arith.constant 0 : index
      %152 = vector.load %arg17[%c64_120, %c0_121] : memref<288x256xbf16, #tpu.memory_space<vmem>>, vector<32x256xbf16>
      tpu.vector_store %arg17[%c64_120, %c0_121], %151 {strides = array<i32>} : memref<288x256xbf16, #tpu.memory_space<vmem>>, vector<32x256xbf16>,
      %c0_122 = arith.constant 0 : index
      %c127_123 = arith.constant 127 : index
      %153 = vector.load %arg16[%c0_122, %c127_123] : memref<32x512xbf16, #tpu.memory_space<vmem>>, vector<32x256xbf16>
      %154 = vector.broadcast %21 : vector<1x256xbf16> to vector<32x256xbf16>
      %155 = arith.mulf %153, %154 : vector<32x256xbf16>
      %c96_124 = arith.constant 96 : index
      %c0_125 = arith.constant 0 : index
      %156 = vector.load %arg17[%c96_124, %c0_125] : memref<288x256xbf16, #tpu.memory_space<vmem>>, vector<32x256xbf16>
      tpu.vector_store %arg17[%c96_124, %c0_125], %155 {strides = array<i32>} : memref<288x256xbf16, #tpu.memory_space<vmem>>, vector<32x256xbf16>,
      %c0_126 = arith.constant 0 : index
      %c128_127 = arith.constant 128 : index
      %157 = vector.load %arg16[%c0_126, %c128_127] : memref<32x512xbf16, #tpu.memory_space<vmem>>, vector<32x256xbf16>
      %c128_128 = arith.constant 128 : index
      %c0_129 = arith.constant 0 : index
      %158 = vector.load %arg17[%c128_128, %c0_129] : memref<288x256xbf16, #tpu.memory_space<vmem>>, vector<32x256xbf16>
      tpu.vector_store %arg17[%c128_128, %c0_129], %157 {strides = array<i32>} : memref<288x256xbf16, #tpu.memory_space<vmem>>, vector<32x256xbf16>,
      %c0_130 = arith.constant 0 : index
      %c129_131 = arith.constant 129 : index
      %159 = vector.load %arg16[%c0_130, %c129_131] : memref<32x512xbf16, #tpu.memory_space<vmem>>, vector<32x256xbf16>
      %160 = vector.broadcast %26 : vector<1x256xbf16> to vector<32x256xbf16>
      %161 = arith.mulf %159, %160 : vector<32x256xbf16>
      %c160_132 = arith.constant 160 : index
      %c0_133 = arith.constant 0 : index
      %162 = vector.load %arg17[%c160_132, %c0_133] : memref<288x256xbf16, #tpu.memory_space<vmem>>, vector<32x256xbf16>
      tpu.vector_store %arg17[%c160_132, %c0_133], %161 {strides = array<i32>} : memref<288x256xbf16, #tpu.memory_space<vmem>>, vector<32x256xbf16>,
      %c0_134 = arith.constant 0 : index
      %c143_135 = arith.constant 143 : index
      %163 = vector.load %arg16[%c0_134, %c143_135] : memref<32x512xbf16, #tpu.memory_space<vmem>>, vector<32x256xbf16>
      %164 = vector.broadcast %21 : vector<1x256xbf16> to vector<32x256xbf16>
      %165 = arith.mulf %163, %164 : vector<32x256xbf16>
      %c192_136 = arith.constant 192 : index
      %c0_137 = arith.constant 0 : index
      %166 = vector.load %arg17[%c192_136, %c0_137] : memref<288x256xbf16, #tpu.memory_space<vmem>>, vector<32x256xbf16>
      tpu.vector_store %arg17[%c192_136, %c0_137], %165 {strides = array<i32>} : memref<288x256xbf16, #tpu.memory_space<vmem>>, vector<32x256xbf16>,
      %c0_138 = arith.constant 0 : index
      %c144_139 = arith.constant 144 : index
      %167 = vector.load %arg16[%c0_138, %c144_139] : memref<32x512xbf16, #tpu.memory_space<vmem>>, vector<32x256xbf16>
      %c224_140 = arith.constant 224 : index
      %c0_141 = arith.constant 0 : index
      %168 = vector.load %arg17[%c224_140, %c0_141] : memref<288x256xbf16, #tpu.memory_space<vmem>>, vector<32x256xbf16>
      tpu.vector_store %arg17[%c224_140, %c0_141], %167 {strides = array<i32>} : memref<288x256xbf16, #tpu.memory_space<vmem>>, vector<32x256xbf16>,
      %c0_142 = arith.constant 0 : index
      %c145_143 = arith.constant 145 : index
      %169 = vector.load %arg16[%c0_142, %c145_143] : memref<32x512xbf16, #tpu.memory_space<vmem>>, vector<32x256xbf16>
      %170 = vector.broadcast %26 : vector<1x256xbf16> to vector<32x256xbf16>
      %171 = arith.mulf %169, %170 : vector<32x256xbf16>
      %c256_144 = arith.constant 256 : index
      %c0_145 = arith.constant 0 : index
      %172 = vector.load %arg17[%c256_144, %c0_145] : memref<288x256xbf16, #tpu.memory_space<vmem>>, vector<32x256xbf16>
      tpu.vector_store %arg17[%c256_144, %c0_145], %171 {strides = array<i32>} : memref<288x256xbf16, #tpu.memory_space<vmem>>, vector<32x256xbf16>,
      %c0_146 = arith.constant 0 : index
      %c0_147 = arith.constant 0 : index
      %173 = vector.load %arg17[%c0_146, %c0_147] : memref<288x256xbf16, #tpu.memory_space<vmem>>, vector<288x256xbf16>
      %cst_148 = arith.constant dense<0.000000e+00> : vector<32x256xf32>
      %174 = tpu.matmul %142, %173, %cst_148 {dimension_numbers = #tpu.dot_dimension_numbers<[1], [0], [0], [1], [0, 0, 1, 1], [], []>} : vector<32x288xbf16>, vector<288x256xbf16>, vector<32x256xf32> -> vector<32x256xf32>
      %175 = arith.index_cast %arg19 : i32 to index
      %c0_149 = arith.constant 0 : index
      %c0_150 = arith.constant 0 : index
      %176 = vector.load %arg12[%175, %c0_149, %c0_150] : memref<6x32x1xf32, #tpu.memory_space<vmem>>, vector<1x32x1xf32>
      %177 = vector.shape_cast %176 : vector<1x32x1xf32> to vector<32x1xf32>
      %178 = vector.broadcast %177 : vector<32x1xf32> to vector<32x256xf32>
      %179 = arith.addf %174, %178 : vector<32x256xf32>
      %cst_151 = arith.constant 0.000000e+00 : f32
      %180 = vector.broadcast %cst_151 : f32 to vector<32x256xf32>
      %181 = arith.maximumf %179, %180 : vector<32x256xf32>
      %c0_152 = arith.constant 0 : index
      %c0_153 = arith.constant 0 : index
      %182 = vector.load %arg18[%c0_152, %c0_153] : memref<32x256xf32, #tpu.memory_space<vmem>>, vector<32x256xf32>
      tpu.vector_store %arg18[%c0_152, %c0_153], %181 {strides = array<i32>} : memref<32x256xf32, #tpu.memory_space<vmem>>, vector<32x256xf32>,
    }
    %c6_i32_60 = arith.constant 6 : i32
    %c0_61 = arith.constant 0 : index
    %c0_62 = arith.constant 0 : index
    %94 = vector.load %arg18[%c0_61, %c0_62] : memref<32x256xf32, #tpu.memory_space<vmem>>, vector<32x256xf32>
    %95 = arith.truncf %94 : vector<32x256xf32> to vector<32x256xbf16>
    %c0_63 = arith.constant 0 : index
    %c128_64 = arith.constant 128 : index
    %96 = vector.load %arg16[%c0_63, %c128_64] : memref<32x512xbf16, #tpu.memory_space<vmem>>, vector<32x256xbf16>
    tpu.vector_store %arg16[%c0_63, %c128_64], %95 {strides = array<i32>} : memref<32x512xbf16, #tpu.memory_space<vmem>>, vector<32x256xbf16>,
    %c0_65 = arith.constant 0 : index
    %c0_66 = arith.constant 0 : index
    %97 = vector.load %arg13[%c0_65, %c0_66] : memref<8x288xbf16, #tpu.memory_space<vmem>>, vector<8x288xbf16>
    %c0_67 = arith.constant 0 : index
    %c111_68 = arith.constant 111 : index
    %98 = vector.load %arg16[%c0_67, %c111_68] : memref<32x512xbf16, #tpu.memory_space<vmem>>, vector<32x256xbf16>
    %99 = vector.broadcast %21 : vector<1x256xbf16> to vector<32x256xbf16>
    %100 = arith.mulf %98, %99 : vector<32x256xbf16>
    %c0_69 = arith.constant 0 : index
    %c0_70 = arith.constant 0 : index
    %101 = vector.load %arg17[%c0_69, %c0_70] : memref<288x256xbf16, #tpu.memory_space<vmem>>, vector<32x256xbf16>
    tpu.vector_store %arg17[%c0_69, %c0_70], %100 {strides = array<i32>} : memref<288x256xbf16, #tpu.memory_space<vmem>>, vector<32x256xbf16>,
    %c0_71 = arith.constant 0 : index
    %c112_72 = arith.constant 112 : index
    %102 = vector.load %arg16[%c0_71, %c112_72] : memref<32x512xbf16, #tpu.memory_space<vmem>>, vector<32x256xbf16>
    %c32 = arith.constant 32 : index
    %c0_73 = arith.constant 0 : index
    %103 = vector.load %arg17[%c32, %c0_73] : memref<288x256xbf16, #tpu.memory_space<vmem>>, vector<32x256xbf16>
    tpu.vector_store %arg17[%c32, %c0_73], %102 {strides = array<i32>} : memref<288x256xbf16, #tpu.memory_space<vmem>>, vector<32x256xbf16>,
    %c0_74 = arith.constant 0 : index
    %c113_75 = arith.constant 113 : index
    %104 = vector.load %arg16[%c0_74, %c113_75] : memref<32x512xbf16, #tpu.memory_space<vmem>>, vector<32x256xbf16>
    %105 = vector.broadcast %26 : vector<1x256xbf16> to vector<32x256xbf16>
    %106 = arith.mulf %104, %105 : vector<32x256xbf16>
    %c64 = arith.constant 64 : index
    %c0_76 = arith.constant 0 : index
    %107 = vector.load %arg17[%c64, %c0_76] : memref<288x256xbf16, #tpu.memory_space<vmem>>, vector<32x256xbf16>
    tpu.vector_store %arg17[%c64, %c0_76], %106 {strides = array<i32>} : memref<288x256xbf16, #tpu.memory_space<vmem>>, vector<32x256xbf16>,
    %c0_77 = arith.constant 0 : index
    %c127_78 = arith.constant 127 : index
    %108 = vector.load %arg16[%c0_77, %c127_78] : memref<32x512xbf16, #tpu.memory_space<vmem>>, vector<32x256xbf16>
    %109 = vector.broadcast %21 : vector<1x256xbf16> to vector<32x256xbf16>
    %110 = arith.mulf %108, %109 : vector<32x256xbf16>
    %c96 = arith.constant 96 : index
    %c0_79 = arith.constant 0 : index
    %111 = vector.load %arg17[%c96, %c0_79] : memref<288x256xbf16, #tpu.memory_space<vmem>>, vector<32x256xbf16>
    tpu.vector_store %arg17[%c96, %c0_79], %110 {strides = array<i32>} : memref<288x256xbf16, #tpu.memory_space<vmem>>, vector<32x256xbf16>,
    %c0_80 = arith.constant 0 : index
    %c128_81 = arith.constant 128 : index
    %112 = vector.load %arg16[%c0_80, %c128_81] : memref<32x512xbf16, #tpu.memory_space<vmem>>, vector<32x256xbf16>
    %c128_82 = arith.constant 128 : index
    %c0_83 = arith.constant 0 : index
    %113 = vector.load %arg17[%c128_82, %c0_83] : memref<288x256xbf16, #tpu.memory_space<vmem>>, vector<32x256xbf16>
    tpu.vector_store %arg17[%c128_82, %c0_83], %112 {strides = array<i32>} : memref<288x256xbf16, #tpu.memory_space<vmem>>, vector<32x256xbf16>,
    %c0_84 = arith.constant 0 : index
    %c129_85 = arith.constant 129 : index
    %114 = vector.load %arg16[%c0_84, %c129_85] : memref<32x512xbf16, #tpu.memory_space<vmem>>, vector<32x256xbf16>
    %115 = vector.broadcast %26 : vector<1x256xbf16> to vector<32x256xbf16>
    %116 = arith.mulf %114, %115 : vector<32x256xbf16>
    %c160 = arith.constant 160 : index
    %c0_86 = arith.constant 0 : index
    %117 = vector.load %arg17[%c160, %c0_86] : memref<288x256xbf16, #tpu.memory_space<vmem>>, vector<32x256xbf16>
    tpu.vector_store %arg17[%c160, %c0_86], %116 {strides = array<i32>} : memref<288x256xbf16, #tpu.memory_space<vmem>>, vector<32x256xbf16>,
    %c0_87 = arith.constant 0 : index
    %c143_88 = arith.constant 143 : index
    %118 = vector.load %arg16[%c0_87, %c143_88] : memref<32x512xbf16, #tpu.memory_space<vmem>>, vector<32x256xbf16>
    %119 = vector.broadcast %21 : vector<1x256xbf16> to vector<32x256xbf16>
    %120 = arith.mulf %118, %119 : vector<32x256xbf16>
    %c192 = arith.constant 192 : index
    %c0_89 = arith.constant 0 : index
    %121 = vector.load %arg17[%c192, %c0_89] : memref<288x256xbf16, #tpu.memory_space<vmem>>, vector<32x256xbf16>
    tpu.vector_store %arg17[%c192, %c0_89], %120 {strides = array<i32>} : memref<288x256xbf16, #tpu.memory_space<vmem>>, vector<32x256xbf16>,
    %c0_90 = arith.constant 0 : index
    %c144_91 = arith.constant 144 : index
    %122 = vector.load %arg16[%c0_90, %c144_91] : memref<32x512xbf16, #tpu.memory_space<vmem>>, vector<32x256xbf16>
    %c224 = arith.constant 224 : index
    %c0_92 = arith.constant 0 : index
    %123 = vector.load %arg17[%c224, %c0_92] : memref<288x256xbf16, #tpu.memory_space<vmem>>, vector<32x256xbf16>
    tpu.vector_store %arg17[%c224, %c0_92], %122 {strides = array<i32>} : memref<288x256xbf16, #tpu.memory_space<vmem>>, vector<32x256xbf16>,
    %c0_93 = arith.constant 0 : index
    %c145_94 = arith.constant 145 : index
    %124 = vector.load %arg16[%c0_93, %c145_94] : memref<32x512xbf16, #tpu.memory_space<vmem>>, vector<32x256xbf16>
    %125 = vector.broadcast %26 : vector<1x256xbf16> to vector<32x256xbf16>
    %126 = arith.mulf %124, %125 : vector<32x256xbf16>
    %c256 = arith.constant 256 : index
    %c0_95 = arith.constant 0 : index
    %127 = vector.load %arg17[%c256, %c0_95] : memref<288x256xbf16, #tpu.memory_space<vmem>>, vector<32x256xbf16>
    tpu.vector_store %arg17[%c256, %c0_95], %126 {strides = array<i32>} : memref<288x256xbf16, #tpu.memory_space<vmem>>, vector<32x256xbf16>,
    %c0_96 = arith.constant 0 : index
    %c0_97 = arith.constant 0 : index
    %128 = vector.load %arg17[%c0_96, %c0_97] : memref<288x256xbf16, #tpu.memory_space<vmem>>, vector<288x256xbf16>
    %cst_98 = arith.constant dense<0.000000e+00> : vector<8x256xf32>
    %129 = tpu.matmul %97, %128, %cst_98 {dimension_numbers = #tpu.dot_dimension_numbers<[1], [0], [0], [1], [0, 0, 1, 1], [], []>} : vector<8x288xbf16>, vector<288x256xbf16>, vector<8x256xf32> -> vector<8x256xf32>
    %130 = vector.extract_strided_slice %129 {offsets = [0, 0], sizes = [1, 256], strides = [1, 1]} : vector<8x256xf32> to vector<1x256xf32>
    %c0_99 = arith.constant 0 : index
    %c0_100 = arith.constant 0 : index
    %131 = vector.load %arg14[%c0_99, %c0_100] : memref<1x1xf32, #tpu.memory_space<vmem>>, vector<1x1xf32>
    %132 = vector.broadcast %131 : vector<1x1xf32> to vector<1x256xf32>
    %133 = arith.addf %130, %132 : vector<1x256xf32>
    %c0_101 = arith.constant 0 : index
    %c0_102 = arith.constant 0 : index
    %c0_103 = arith.constant 0 : index
    %134 = vector.load %arg15[%c0_101, %c0_102, %c0_103] : memref<1x1x256xf32, #tpu.memory_space<vmem>>, vector<1x1x256xf32>
    %135 = vector.shape_cast %134 : vector<1x1x256xf32> to vector<1x256xf32>
    %136 = vector.shape_cast %133 : vector<1x256xf32> to vector<1x1x256xf32>
    tpu.vector_store %arg15[%c0_101, %c0_102, %c0_103], %136 {strides = array<i32>} : memref<1x1x256xf32, #tpu.memory_space<vmem>>, vector<1x1x256xf32>,
    return
  }
  func.func @transform_0(%arg0: i32) -> (i32, i32, i32) {
    %c0_i32 = arith.constant 0 : i32
    %c0_i32_0 = arith.constant 0 : i32
    %c0_i32_1 = arith.constant 0 : i32
    return %arg0, %c0_i32, %c0_i32_0 : i32, i32, i32
  }
  func.func @transform_1(%arg0: i32) -> (i32, i32, i32) {
    %c0_i32 = arith.constant 0 : i32
    %c0_i32_0 = arith.constant 0 : i32
    %c0_i32_1 = arith.constant 0 : i32
    return %arg0, %c0_i32, %c0_i32_0 : i32, i32, i32
  }
  func.func @transform_2(%arg0: i32) -> (i32, i32) {
    %c0_i32 = arith.constant 0 : i32
    %c0_i32_0 = arith.constant 0 : i32
    %c0_i32_1 = arith.constant 0 : i32
    return %c0_i32, %c0_i32_0 : i32, i32
  }
  func.func @transform_3(%arg0: i32) -> (i32, i32) {
    %c0_i32 = arith.constant 0 : i32
    %c0_i32_0 = arith.constant 0 : i32
    %c0_i32_1 = arith.constant 0 : i32
    return %c0_i32, %c0_i32_0 : i32, i32
  }
  func.func @transform_4(%arg0: i32) -> (i32, i32) {
    %c0_i32 = arith.constant 0 : i32
    %c0_i32_0 = arith.constant 0 : i32
    %c0_i32_1 = arith.constant 0 : i32
    return %c0_i32, %c0_i32_0 : i32, i32
  }
  func.func @transform_5(%arg0: i32) -> (i32, i32) {
    %c0_i32 = arith.constant 0 : i32
    %c0_i32_0 = arith.constant 0 : i32
    %c0_i32_1 = arith.constant 0 : i32
    return %c0_i32, %c0_i32_0 : i32, i32
  }
  func.func @transform_6(%arg0: i32) -> (i32, i32) {
    %c0_i32 = arith.constant 0 : i32
    %c0_i32_0 = arith.constant 0 : i32
    %c0_i32_1 = arith.constant 0 : i32
    return %c0_i32, %c0_i32_0 : i32, i32
  }
  func.func @transform_7(%arg0: i32) -> (i32, i32) {
    %c0_i32 = arith.constant 0 : i32
    %c0_i32_0 = arith.constant 0 : i32
    %c0_i32_1 = arith.constant 0 : i32
    return %c0_i32, %c0_i32_0 : i32, i32
  }
  func.func @transform_8(%arg0: i32) -> (i32, i32) {
    %c0_i32 = arith.constant 0 : i32
    %c0_i32_0 = arith.constant 0 : i32
    %c0_i32_1 = arith.constant 0 : i32
    return %c0_i32, %c0_i32_0 : i32, i32
  }
  func.func @transform_9(%arg0: i32) -> (i32, i32) {
    %c0_i32 = arith.constant 0 : i32
    %c0_i32_0 = arith.constant 0 : i32
    %c0_i32_1 = arith.constant 0 : i32
    return %c0_i32, %c0_i32_0 : i32, i32
  }
  func.func @transform_10(%arg0: i32) -> (i32, i32, i32) {
    %c0_i32 = arith.constant 0 : i32
    %c0_i32_0 = arith.constant 0 : i32
    %c0_i32_1 = arith.constant 0 : i32
    %c0_i32_2 = arith.constant 0 : i32
    return %c0_i32, %c0_i32_0, %c0_i32_1 : i32, i32, i32
  }
  func.func @transform_11(%arg0: i32) -> (i32, i32, i32) {
    %c0_i32 = arith.constant 0 : i32
    %c0_i32_0 = arith.constant 0 : i32
    %c0_i32_1 = arith.constant 0 : i32
    %c0_i32_2 = arith.constant 0 : i32
    return %c0_i32, %c0_i32_0, %c0_i32_1 : i32, i32, i32
  }
  func.func @transform_12(%arg0: i32) -> (i32, i32) {
    %c0_i32 = arith.constant 0 : i32
    %c0_i32_0 = arith.constant 0 : i32
    %c0_i32_1 = arith.constant 0 : i32
    return %c0_i32, %c0_i32_0 : i32, i32
  }
  func.func @transform_13(%arg0: i32) -> (i32, i32) {
    %c0_i32 = arith.constant 0 : i32
    %c0_i32_0 = arith.constant 0 : i32
    %c0_i32_1 = arith.constant 0 : i32
    return %c0_i32, %c0_i32_0 : i32, i32
  }
  func.func @transform_14(%arg0: i32) -> (i32, i32, i32) {
    %c0_i32 = arith.constant 0 : i32
    %c0_i32_0 = arith.constant 0 : i32
    %c0_i32_1 = arith.constant 0 : i32
    return %arg0, %c0_i32, %c0_i32_0 : i32, i32, i32
  }
}

</mosaic_0001>

<bundles_post_ra>
// kernel: tpu_custom_call.1
= control target key start
LH: loop header
LB: loop body
LE: loop exit
PB: predicated region body
PF: predicated region fallthrough
CT: control target
= control target key end

     0   :  { %s5028_s0 = inlined_call_operand.vmem [shape: f32[2,1,256], index: 0, kind: input, shape index: {}]   ;;  %s5029_s1 = inlined_call_operand.vmem [shape: f32[2,1,256], index: 1, kind: input, shape index: {}]   ;;  %s5030_s2 = inlined_call_operand.vmem [shape: f32[64,1], index: 2, kind: input, shape index: {}]   ;;  %s5031_s3 = inlined_call_operand.vmem [shape: f32[64,1], index: 3, kind: input, shape index: {}]   ;;  %s5032_s4 = inlined_call_operand.vmem [shape: bf16[128,64], index: 4, kind: input, shape index: {}]   ;;  %s5033_s5 = inlined_call_operand.vmem [shape: f32[128,1], index: 5, kind: input, shape index: {}]   ;;  %s5034_s6 = inlined_call_operand.vmem [shape: bf16[8,128], index: 6, kind: input, shape index: {}]   ;;  %s5035_s7 = inlined_call_operand.<no memory space> [shape: f32[1,1], index: 7, kind: input, shape index: {}]   ;;  %s5036_s8 = inlined_call_operand.vmem [shape: bf16[32,9], index: 8, kind: input, shape index: {}]   ;;  %s5037_s9 = inlined_call_operand.vmem [shape: f32[32,1], index: 9, kind: input, shape index: {}]   ;;  %s5038_s10 = inlined_call_operand.vmem [shape: bf16[6,32,288], index: 10, kind: input, shape index: {}]   ;;  %s5039_s11 = inlined_call_operand.vmem [shape: f32[6,32,1], index: 11, kind: input, shape index: {}]   ;;  %s5040_s12 = inlined_call_operand.vmem [shape: bf16[8,288], index: 12, kind: input, shape index: {}]   ;;  %s5041_s14 = inlined_call_operand.hbm [shape: f32[2,1,256], index: 14, kind: output, shape index: {}]   ;;  %s5042_s13 = inlined_call_operand.<no memory space> [shape: f32[1,1], index: 13, kind: input, shape index: {}]  }
   0x1   :  { %5070 = sst [smem:[#allocation12_spill]] %s5028_s0  ;;  %v19_v0 = vstv %s5035_s7  ;;  %v21_v1 = vstv %s5042_s13 }
   0x2   :  { %20 = vst [vmem:[#allocation5] sm:$0x1] %v19_v0  ;;  %22 = vst [vmem:[#allocation6] sm:$0x1] %v21_v1 }
   0x3   :  { %23 = vsyncpa [#allocation8], 0 }
   0x4   :  { %25 = vsyncpa [#allocation8 + $0x1], 0  ;;  %s3930_s17 = smov 0   ;;  %s3932_s18 = smov 0  }
   0x5   :  { %s3934_s19 = smov 0   ;;  %s3936_s20 = smov 0  }
   0x6 LB: > { %5071 = sst [smem:[#allocation10_spill]] %s3817_s19  ;;  %s3951_s7 = sadd.s32 4294967295, %s3821_s20   ;;  %s3821_s20 = sphi %s3936_s20, %s5179_s20   ;;  %s3817_s19 = sphi %s3934_s19, %s5176_s19   ;;  %s3813_s18 = sphi %s3932_s18, %s5178_s18   ;;  %s3809_s17 = sphi %s3930_s17, %s5177_s17  }
   0x7   : > { %s3486_s13 = sadd.s32 4294967294, %s3821_s20   ;;  %s3955_s21 = sadd.s32 1, %s3821_s20  }
   0x8   : > { %s342_s22 = sadd.s32 1, %s3817_s19  ;;  %s339_s23 = ssub.s32 %s3821_s20, %s3955_s21 }
   0x9   : > { %p352_p0 = scmp.ne.s32.totalorder %s3817_s19, %s3813_s18  ;;  %p340_p1 = scmp.eq.s32.totalorder %s339_s23, 0 }
   0xa   : > { %p353_p2 = scmp.eq.s32.totalorder %s3951_s7, 1  ;;  %p358_p3 = scmp.ne.s32.totalorder %s3813_s18, %s3809_s17 }
   0xb   : > { %p359_p4 = scmp.eq.s32.totalorder %s3486_s13, 1  ;;  %p3489_p7 = scmp.ge.s32.totalorder %s3821_s20, 1 }
   0xc   : > { %s3966_s24 = scalar_select %p340_p1, %s3817_s19, %s342_s22  }
   0xd   : > { %p3968_p5 = por %p353_p2, %p352_p0  ;;  %p3972_p6 = por %p359_p4, %p358_p3 }
   0xe   : > { %5072 = sst [smem:[#allocation11_spill]] %s3966_s24  ;;  %p427_p8 = scmp.lt.s32.totalorder %s3821_s20, 3 }
  0x10   : > { %p428_p9 = pnand %p3489_p7, %p427_p8 }
  0x11   : > { %s5044_s22 = sand.u32 (!%p428_p9), 1, %s3813_s18   ;;  %p476_p10 = scmp.lt.s32.totalorder (!%p428_p9), %s3951_s7, 1 }
  0x12   : > { %431 = sbr.rel (%p428_p9) target bundleno = 2035 (0x7f3), region = 76  ;;  %s4020_s23 = sshll.u32 (!%p428_p9), %s5044_s22, 1 }
  0x13   : > { %s5047_s28 = smov (!%p428_p9), 113   ;;  %s5055_s29 = smov (!%p428_p9), 15  }
  0x14   : > { %s3831_s30 = smov (!%p428_p9), 111   ;;  %s5045_s15 = smov (!%p428_p9), 127  }
  0x15   : > { %s3833_s16 = smov (!%p428_p9), 1   ;;  %s5051_s22 = smov (!%p428_p9), 17  }
  0x16   : > { %s5075_s0 = sld [smem:[#allocation12_spill]] (!%p428_p9)  ;;  %s4500_s13 = smov (!%p428_p9), 0  }
  0x17   : > { %v618_v2 = vld [vmem:[%s5031_s3 + $0x30] sm:$0xff]  ;;  %v3827_v4 = vmov 0   ;;  %v619_v5 = vld [vmem:[%s5031_s3 + $0x38] sm:$0xff]  ;;  %v542_v7 = vld [vmem:[%s5030_s2 + $0x28] sm:$0xff]  ;;  %s4093_s19 = scalar_select %p476_p10, %s3951_s7, 1  ;;  %v485_v36 = vlaneseq  ;;  %vm852_vm0 = vcmask 523264  }
  0x18   : > { %v543_v3 = vld [vmem:[%s5030_s2 + $0x30] sm:$0xff]  ;;  %3703 = vset.pattern.permute.xlu1 %v3827_v4  ;;  %530 = vst [vmem:[#allocation2 + $0x10] sm:$0xff] %v3827_v4  ;;  %531 = vst [vmem:[#allocation2 + $0x18] sm:$0xff] %v3827_v4  ;;  %3702 = vset.pattern.permute.xlu0 %v3827_v4  ;;  %v544_v6 = vld [vmem:[%s5030_s2 + $0x38] sm:$0xff]  ;;  %vm5065_vm5 = vcmask 121856   ;;  %vm5064_vm6 = vcmask 1040384  }
  0x19   : > { %532 = vst [vmem:[#allocation2 + $0x20] sm:$0xff] %v3827_v4  ;;  %533 = vst [vmem:[#allocation2 + $0x28] sm:$0xff] %v3827_v4  ;;  %652 = vperm.xlu1 %3703, %v618_v2   ;;  %577 = vperm.xlu0 %3702, %v543_v3   ;;  %v541_v8 = vld [vmem:[%s5030_s2 + $0x20] sm:$0xff]  ;;  %v617_v9 = vld [vmem:[%s5031_s3 + $0x28] sm:$0xff]  ;;  %s3491_s24 = sshll.u32 %s4093_s19, 1  ;;  %v4097_v37 = vshrl.u32 %v485_v36, 7 }
  0x1a   : > { %534 = vst [vmem:[#allocation2 + $0x30] sm:$0xff] %v3827_v4  ;;  %535 = vst [vmem:[#allocation2 + $0x38] sm:$0xff] %v3827_v4  ;;  %909 = vmatprep.mubr.bf16.mxu0 %v3827_v4  ;;  %1071 = vmatprep.mubr.bf16.mxu1 %v3827_v4  ;;  %v616_v10 = vld [vmem:[%s5031_s3 + $0x20] sm:$0xff]  ;;  %v540_v11 = vld [vmem:[%s5030_s2 + $0x18] sm:$0xff]  ;;  %s483_s27 = scalar_lea.vmem %s5029_s1, %s3491_s24  ;;  %vm1132_vm7 = vsmask.f32 256 }
  0x1b   : > { %528 = vst [vmem:[#allocation2] sm:$0xff] %v3827_v4  ;;  %529 = vst [vmem:[#allocation2 + $0x8] sm:$0xff] %v3827_v4  ;;  %v539_v12 = vld [vmem:[%s5030_s2 + $0x10] sm:$0xff]  ;;  %v615_v13 = vld [vmem:[%s5031_s3 + $0x18] sm:$0xff]  ;;  %v4105_v38 = vsub.s32 0, %v4097_v37  ;;  %v592_v39 = vsub.s32 1, %v4097_v37 }
  0x1c   : > { %v614_v14 = vld [vmem:[%s5031_s3 + $0x10] sm:$0xff]  ;;  %v538_v15 = vld [vmem:[%s5030_s2 + $0x8] sm:$0xff]  ;;  %v537_v16 = vld [vmem:[%s5030_s2] sm:$0xff]  ;;  %vm5062_vm8 = vcmask 1044484   ;;  %vm1135_vm9 = vsmask.f32 4352 }
  0x1d   : > { %657 = vperm.xlu1 %3703, %v619_v5   ;;  %582 = vperm.xlu0 %3702, %v544_v6   ;;  %v613_v17 = vld [vmem:[%s5031_s3 + $0x8] sm:$0xff]  ;;  %v612_v18 = vld [vmem:[%s5031_s3] sm:$0xff]  ;;  %v731_v19 = vld [vmem:[%s5033_s5 + $0x78] sm:$0xff]  ;;  %vm5058_vm13 = vcmask 1039360   ;;  %vm5063_vm14 = vcmask 924672   ;;  %vm5057_vm15 = vcmask 908288  }
  0x1e   : > { %v730_v20 = vld [vmem:[%s5033_s5 + $0x70] sm:$0xff]  ;;  %v729_v21 = vld [vmem:[%s5033_s5 + $0x68] sm:$0xff]  ;;  %v728_v22 = vld [vmem:[%s5033_s5 + $0x60] sm:$0xff]  ;;  %s5049_s19 = smov 112  }
  0x1f   : > { %v727_v23 = vld [vmem:[%s5033_s5 + $0x58] sm:$0xff]  ;;  %v726_v24 = vld [vmem:[%s5033_s5 + $0x50] sm:$0xff]  ;;  %v725_v25 = vld [vmem:[%s5033_s5 + $0x48] sm:$0xff] }
  0x20   : > { %v724_v26 = vld [vmem:[%s5033_s5 + $0x40] sm:$0xff]  ;;  %v723_v27 = vld [vmem:[%s5033_s5 + $0x38] sm:$0xff]  ;;  %v722_v28 = vld [vmem:[%s5033_s5 + $0x30] sm:$0xff] }
  0x21   : > { %572 = vperm.xlu1 %3703, %v542_v7   ;;  %567 = vperm.xlu0 %3702, %v541_v8   ;;  %v721_v29 = vld [vmem:[%s5033_s5 + $0x28] sm:$0xff]  ;;  %v720_v30 = vld [vmem:[%s5033_s5 + $0x20] sm:$0xff]  ;;  %v719_v31 = vld [vmem:[%s5033_s5 + $0x18] sm:$0xff] }
  0x22   : > { %v718_v32 = vld [vmem:[%s5033_s5 + $0x10] sm:$0xff]  ;;  %v717_v33 = vld [vmem:[%s5033_s5 + $0x8] sm:$0xff]  ;;  %v716_v34 = vld [vmem:[%s5033_s5] sm:$0xff] }
  0x23   : > { %v1080_v35 = vld [vmem:[#allocation5] sm:$0x1]  ;;  %vm1133_vm10 = vmand %vm5064_vm6, %vm1132_vm7  ;;  %vm1356_vm6 = vsmask.f32 7424 }
  0x24   : > { %v536_v40 = vld [vmem:[%s483_s27] sm:$0x3]  ;;  %vm1136_vm11 = vmand %vm5062_vm8, %vm1135_vm9  ;;  %vm1353_vm8 = vsmask.f32 3328 }
  0x25   : > { %647 = vperm.xlu1 %3703, %v617_v9   ;;  %642 = vperm.xlu0 %3702, %v616_v10   ;;  %v4109_v41 = vrot.slane %v536_v40, %v4105_v38  ;;  %v4113_v42 = vrot.slane %v536_v40, %v592_v39  ;;  %vm4280_vm12 = vmor %vm1136_vm11, %vm1133_vm10  ;;  %vm5066_vm11 = vcmask 138240  }
  0x29   : > { %562 = vperm.xlu1 %3703, %v540_v11   ;;  %557 = vperm.xlu0 %3702, %v539_v12  }
  0x2d   : > { %637 = vperm.xlu1 %3703, %v615_v13   ;;  %632 = vperm.xlu0 %3702, %v614_v14  }
  0x31   : > { %552 = vperm.xlu1 %3703, %v538_v15   ;;  %547 = vperm.xlu0 %3702, %v537_v16  }
  0x35   : > { %627 = vperm.xlu1 %3703, %v613_v17   ;;  %622 = vperm.xlu0 %3702, %v612_v18  }
  0x39   : > { %809 = vperm.xlu1 %3703, %v731_v19   ;;  %804 = vperm.xlu0 %3702, %v730_v20  }
  0x3d   : > { %799 = vperm.xlu1 %3703, %v729_v21   ;;  %794 = vperm.xlu0 %3702, %v728_v22  }
  0x41   : > { %789 = vperm.xlu1 %3703, %v727_v23   ;;  %784 = vperm.xlu0 %3702, %v726_v24  }
  0x45   : > { %779 = vperm.xlu1 %3703, %v725_v25   ;;  %774 = vperm.xlu0 %3702, %v724_v26  }
  0x49   : > { %769 = vperm.xlu1 %3703, %v723_v27   ;;  %764 = vperm.xlu0 %3702, %v722_v28  }
  0x4d   : > { %759 = vperm.xlu1 %3703, %v721_v29   ;;  %754 = vperm.xlu0 %3702, %v720_v30  }
  0x51   : > { %749 = vperm.xlu1 %3703, %v719_v31   ;;  %744 = vperm.xlu0 %3702, %v718_v32  }
  0x55   : > { %739 = vperm.xlu1 %3703, %v717_v33   ;;  %734 = vperm.xlu0 %3702, %v716_v34  }
  0x59   : > { %1083 = vperm.xlu0 %3702, %v1080_v35  }
  0x94   : > { %v653_v43 = vpop.permute.xlu1 %652  ;;  %v578_v44 = vpop.permute.xlu0 %577 }
  0x95   : > { %v608_v45 = vmul.f32 %v4109_v41, %v578_v44  ;;  %v609_v46 = vmul.f32 %v4113_v42, %v578_v44 }
  0x97   : > { %v672_v51 = vadd.f32 %v653_v43, %v608_v45  ;;  %v673_v52 = vadd.f32 %v653_v43, %v609_v46 }
  0x98   : > { %v658_v47 = vpop.permute.xlu1 %657  ;;  %v583_v48 = vpop.permute.xlu0 %582 }
  0x99   : > { %v610_v49 = vmul.f32 %v4109_v41, %v583_v48  ;;  %v611_v50 = vmul.f32 %v4113_v42, %v583_v48  ;;  %v689_v57 = vmax.f32 %v673_v52, 0.0  ;;  %v688_v59 = vmax.f32 %v672_v51, 0.0 }
  0x9b   : > { %v674_v53 = vadd.f32 %v658_v47, %v610_v49  ;;  %v675_v54 = vadd.f32 %v658_v47, %v611_v50 }
  0x9c   : > { %v573_v55 = vpop.permute.xlu1 %572  ;;  %v568_v56 = vpop.permute.xlu0 %567 }
  0x9d   : > { %v691_v58 = vmax.f32 %v675_v54, 0.0  ;;  %v690_v60 = vmax.f32 %v674_v53, 0.0  ;;  %v606_v61 = vmul.f32 %v4109_v41, %v573_v55  ;;  %v607_v62 = vmul.f32 %v4113_v42, %v573_v55 }
  0x9e   : > { %v604_v63 = vmul.f32 %v4109_v41, %v568_v56  ;;  %v605_v0 = vmul.f32 %v4113_v42, %v568_v56 }
  0x9f   : > { %v715_v3 = vpack.c.bf16 %v691_v58, %v689_v57  ;;  %v714_v5 = vpack.c.bf16 %v690_v60, %v688_v59  ;;  %v3726_v58 = vld [vmem:[%s5032_s4 + $0x10] sm:$0xff]   ;;  %v3727_v59 = vld [vmem:[%s5032_s4 + $0x18] sm:$0xff]   ;;  %v3728_v60 = vld [vmem:[%s5032_s4 + $0x20] sm:$0xff]  }
  0xa0   : > { %v648_v1 = vpop.permute.xlu1 %647  ;;  %v643_v2 = vpop.permute.xlu0 %642 }
  0xa1   : > { %v670_v6 = vadd.f32 %v648_v1, %v606_v61  ;;  %v671_v7 = vadd.f32 %v648_v1, %v607_v62  ;;  %v668_v8 = vadd.f32 %v643_v2, %v604_v63  ;;  %v669_v9 = vadd.f32 %v643_v2, %v605_v0  ;;  %885 = vmatprep.subr.bf16.mxu0 %v715_v3  ;;  %v3729_v61 = vld [vmem:[%s5032_s4 + $0x28] sm:$0xff]   ;;  %v3730_v62 = vld [vmem:[%s5032_s4 + $0x30] sm:$0xff]   ;;  %v3731_v63 = vld [vmem:[%s5032_s4 + $0x38] sm:$0xff]  }
  0xa2   : > { %886 = vmatpush1.bf16.msra.mxu0 %v714_v5 }
  0xa3   : > { %v686_v10 = vmax.f32 %v670_v6, 0.0  ;;  %v687_v11 = vmax.f32 %v671_v7, 0.0  ;;  %v684_v12 = vmax.f32 %v668_v8, 0.0  ;;  %v685_v13 = vmax.f32 %v669_v9, 0.0 }
  0xa4   : > { %v563_v14 = vpop.permute.xlu1 %562  ;;  %v558_v15 = vpop.permute.xlu0 %557  ;;  %v486_v6 = vand.u32 127, %v485_v36 }
  0xa5   : > { %v713_v16 = vpack.c.bf16 %v687_v11, %v685_v13  ;;  %v712_v17 = vpack.c.bf16 %v686_v10, %v684_v12  ;;  %v602_v18 = vmul.f32 %v4109_v41, %v563_v14  ;;  %v603_v19 = vmul.f32 %v4113_v42, %v563_v14 }
  0xa6   : > { %v600_v20 = vmul.f32 %v4109_v41, %v558_v15  ;;  %v601_v21 = vmul.f32 %v4113_v42, %v558_v15  ;;  %v487_v8 = vadd.s32 128, %v486_v6  ;;  %v492_v9 = vand.u32 15, %v486_v6 }
  0xa7   : > { %887 = vmatprep.subr.bf16.mxu0 %v713_v16  ;;  %v3828_v12 = vmov 0.0  }
  0xa8   : > { %v638_v22 = vpop.permute.xlu1 %637  ;;  %v633_v23 = vpop.permute.xlu0 %632  ;;  %888 = vmatpush1.bf16.msra.mxu0 %v712_v17  ;;  %v499_v10 = vand.u32 15, %v487_v8  ;;  %vm520_vm1 = vcmp.lt.s32.totalorder %v492_v9, 15  ;;  %vm512_vm2 = vcmp.gt.s32.totalorder %v492_v9, 0 }
  0xa9   : > { %v666_v24 = vadd.f32 %v638_v22, %v602_v18  ;;  %v667_v25 = vadd.f32 %v638_v22, %v603_v19  ;;  %v664_v26 = vadd.f32 %v633_v23, %v600_v20  ;;  %v665_v27 = vadd.f32 %v633_v23, %v601_v21 }
  0xaa   : > { %v3495_v13 = vsel %vm520_vm1, 1.0, %v3828_v12  ;;  %v3493_v14 = vsel %vm512_vm2, 1.0, %v3828_v12  ;;  %vm521_vm3 = vcmp.lt.s32.totalorder %v499_v10, 15  ;;  %vm513_vm4 = vcmp.gt.s32.totalorder %v499_v10, 0 }
  0xab   : > { %v682_v28 = vmax.f32 %v666_v24, 0.0  ;;  %v683_v29 = vmax.f32 %v667_v25, 0.0  ;;  %v680_v30 = vmax.f32 %v664_v26, 0.0  ;;  %v681_v31 = vmax.f32 %v665_v27, 0.0 }
  0xac   : > { %v553_v32 = vpop.permute.xlu1 %552  ;;  %v548_v33 = vpop.permute.xlu0 %547  ;;  %v3496_v16 = vsel %vm521_vm3, 1.0, %v3828_v12  ;;  %v3494_v17 = vsel %vm513_vm4, 1.0, %v3828_v12  ;;  %vm5061_vm1 = vcmask 1042434   ;;  %vm1285_vm2 = vsmask.f32 2304 }
  0xad   : > { %v711_v34 = vpack.c.bf16 %v683_v29, %v681_v31  ;;  %v710_v35 = vpack.c.bf16 %v682_v28, %v680_v30  ;;  %v598_v40 = vmul.f32 %v4109_v41, %v553_v32  ;;  %v599_v43 = vmul.f32 %v4113_v42, %v553_v32  ;;  %vm4323_vm7 = vmand %vm5061_vm1, %vm1285_vm2 }
  0xae   : > { %v596_v44 = vmul.f32 %v4109_v41, %v548_v33  ;;  %v597_v45 = vmul.f32 %v4113_v42, %v548_v33  ;;  %v3724_v41 = vld [vmem:[%s5032_s4] sm:$0xff]   ;;  %v3725_v42 = vld [vmem:[%s5032_s4 + $0x8] sm:$0xff]   ;;  %v3623_v18 = vpack.c.bf16 %v3496_v16, %v3495_v13  ;;  %v3622_v19 = vpack.c.bf16 %v3494_v17, %v3493_v14 }
  0xaf   : > { %889 = vmatprep.subr.bf16.mxu0 %v711_v34  ;;  %vm5060_vm3 = vcmask 1046534   ;;  %vm1288_vm4 = vsmask.f32 6400  ;;  %vm1233_vm2 = vcmask 1041409   ;;  %vm5068_vm1 = vcmask 1043459  }
  0xb0   : > { %v628_v46 = vpop.permute.xlu1 %627  ;;  %v623_v47 = vpop.permute.xlu0 %622  ;;  %890 = vmatpush1.bf16.msra.mxu0 %v710_v35  ;;  %1210 = vrot.lane.b32.xlu1 %v3623_v18, %s5047_s28  ;;  %vm4329_vm9 = vmand %vm5060_vm3, %vm1288_vm4  ;;  %vm1234_vm4 = vsmask.f32 1280  ;;  %vm1274_vm3 = vsmask.f32 7958 }
  0xb1   : > { %v662_v48 = vadd.f32 %v628_v46, %v598_v40  ;;  %v663_v49 = vadd.f32 %v628_v46, %v599_v43  ;;  %v660_v50 = vadd.f32 %v623_v47, %v596_v44  ;;  %v661_v51 = vadd.f32 %v623_v47, %v597_v45  ;;  %1331 = vrot.lane.b32.xlu0 %v3622_v19, %s5055_s29  ;;  %vm1290_vm10 = vmor %vm4329_vm9, %vm4323_vm7 }
  0xb2   : > { %vm1236_vm7 = vcmask 1045509   ;;  %vm1237_vm9 = vsmask.f32 5376 }
  0xb3   : > { %v678_v52 = vmax.f32 %v662_v48, 0.0  ;;  %v679_v53 = vmax.f32 %v663_v49, 0.0  ;;  %v676_v54 = vmax.f32 %v660_v50, 0.0  ;;  %v677_v55 = vmax.f32 %v661_v51, 0.0 }
  0xb4   : > { %v4170_v0 = vpop.permute.xlu0 %804  ;;  %v4172_v1 = vpop.permute.xlu1 %809  ;;  %1152 = vrot.lane.b32.xlu1 %v3622_v19, %s3831_s30 }
  0xb5   : > { %v709_v56 = vpack.c.bf16 %v679_v53, %v677_v55  ;;  %v708_v57 = vpack.c.bf16 %v678_v52, %v676_v54  ;;  %1245 = vrot.lane.b32.xlu0 %v3622_v19, %s5045_s15  ;;  %s479_s15 = scalar_lea.vmem %s5075_s0, %s3491_s24  ;;  %s5053_s24 = smov 16  }
  0xb7   : > { %891 = vmatprep.subr.bf16.mxu0 %v709_v56 }
  0xb8   : > { %892 = vmatpush1.bf16.msra.mxu0 %v708_v57  ;;  %v4174_v2 = vpop.permute.xlu0 %794  ;;  %v4176_v3 = vpop.permute.xlu1 %799  ;;  %1296 = vrot.lane.b32.xlu1 %v3623_v18, %s3833_s16 }
  0xb9   : > { %1392 = vrot.lane.b32.xlu0 %v3623_v18, %s5051_s22 }
  0xbb   : > { %3505 = vmatmul.mubr.msk.bf16.vlgmr.msra.gmra.mxu0 %vm852_vm0, %v3724_v41 }
  0xbc   : > { %919 = vmatprep.mubr.bf16.mxu0 %v3827_v4  ;;  %v4178_v5 = vpop.permute.xlu0 %784  ;;  %v4181_v7 = vpop.permute.xlu1 %789 }
  0xc0   : > { %v4183_v11 = vpop.permute.xlu0 %774  ;;  %v4185_v15 = vpop.permute.xlu1 %779 }
  0xc3   : > { %3506 = vmatmul.mubr.msk.bf16.gmra.mxu0 %vm852_vm0, %v3725_v42 }
  0xc4   : > { %929 = vmatprep.mubr.bf16.mxu0 %v3827_v4  ;;  %v4189_v20 = vpop.permute.xlu0 %764  ;;  %v4191_v21 = vpop.permute.xlu1 %769 }
  0xc8   : > { %v4195_v22 = vpop.permute.xlu0 %754  ;;  %v4199_v23 = vpop.permute.xlu1 %759 }
  0xcb   : > { %3507 = vmatmul.mubr.msk.bf16.gmra.mxu0 %vm852_vm0, %v3726_v58 }
  0xcc   : > { %939 = vmatprep.mubr.bf16.mxu0 %v3827_v4  ;;  %v745_v24 = vpop.permute.xlu0 %744  ;;  %v750_v25 = vpop.permute.xlu1 %749 }
  0xd0   : > { %v735_v27 = vpop.permute.xlu0 %734  ;;  %v740_v30 = vpop.permute.xlu1 %739 }
  0xd3   : > { %3508 = vmatmul.mubr.msk.bf16.gmra.mxu0 %vm852_vm0, %v3727_v59 }
  0xd4   : > { %949 = vmatprep.mubr.bf16.mxu0 %v3827_v4 }
  0xdb   : > { %3509 = vmatmul.mubr.msk.bf16.gmra.mxu0 %vm852_vm0, %v3728_v60 }
  0xdc   : > { %959 = vmatprep.mubr.bf16.mxu0 %v3827_v4 }
  0xe3   : > { %3510 = vmatmul.mubr.msk.bf16.gmra.mxu0 %vm852_vm0, %v3729_v61 }
  0xe4   : > { %969 = vmatprep.mubr.bf16.mxu0 %v3827_v4 }
  0xeb   : > { %3511 = vmatmul.mubr.msk.bf16.gmra.mxu0 %vm852_vm0, %v3730_v62 }
  0xec   : > { %979 = vmatprep.mubr.bf16.mxu0 %v3827_v4 }
  0xf3   : > { %3512 = vmatmul.mubr.msk.bf16.gmra.mxu0 %vm852_vm0, %v3731_v63  ;;  %vm5059_vm0 = vcmask 7168  }
 0x17b   : > { %v911_v26 = vpop.f32.mrf.mxu0 }
 0x17c   : > { %v912_v29 = vadd.f32 %v911_v26, %v735_v27 }
 0x17d   : > { %v913_v28 = vpop.f32.mrf.mxu0 }
 0x17e   : > { %v914_v32 = vadd.f32 %v913_v28, %v735_v27  ;;  %v990_v35 = vmax.f32 %v912_v29, 0.0 }
 0x17f   : > { %v915_v31 = vpop.f32.mrf.mxu0 }
 0x180   : > { %v916_v33 = vadd.f32 %v915_v31, %v740_v30  ;;  %v991_v45 = vmax.f32 %v914_v32, 0.0 }
 0x181   : > { %v917_v34 = vpop.f32.mrf.mxu0 }
 0x182   : > { %v992_v40 = vmax.f32 %v916_v33, 0.0  ;;  %v918_v43 = vadd.f32 %v917_v34, %v740_v30 }
 0x183   : > { %v921_v44 = vpop.f32.mrf.mxu0 }
 0x184   : > { %v4201_v46 = vpack.c.bf16 %v992_v40, %v990_v35  ;;  %v993_v47 = vmax.f32 %v918_v43, 0.0  ;;  %v922_v50 = vadd.f32 %v921_v44, %v745_v24 }
 0x185   : > { %v923_v48 = vpop.f32.mrf.mxu0 }
 0x186   : > { %v4203_v49 = vpack.c.bf16 %v993_v47, %v991_v45  ;;  %v924_v52 = vadd.f32 %v923_v48, %v745_v24  ;;  %v994_v55 = vmax.f32 %v922_v50, 0.0 }
 0x187   : > { %v925_v51 = vpop.f32.mrf.mxu0 }
 0x188   : > { %v926_v53 = vadd.f32 %v925_v51, %v750_v25  ;;  %v995_v42 = vmax.f32 %v924_v52, 0.0 }
 0x189   : > { %v927_v54 = vpop.f32.mrf.mxu0 }
 0x18a   : > { %v996_v56 = vmax.f32 %v926_v53, 0.0  ;;  %v928_v57 = vadd.f32 %v927_v54, %v750_v25 }
 0x18b   : > { %v4205_v41 = vpop.f32.mrf.mxu0 }
 0x18c   : > { %v4207_v58 = vpack.c.bf16 %v996_v56, %v994_v55  ;;  %v997_v59 = vmax.f32 %v928_v57, 0.0 }
 0x18d   : > { %v4209_v60 = vpop.f32.mrf.mxu0 }
 0x18e   : > { %v4211_v61 = vpack.c.bf16 %v997_v59, %v995_v42 }
 0x18f   : > { %v4213_v62 = vpop.f32.mrf.mxu0 }
 0x191   : > { %v4215_v63 = vpop.f32.mrf.mxu0 }
 0x193   : > { %v4217_v6 = vpop.f32.mrf.mxu0 }
 0x195   : > { %v943_v8 = vpop.f32.mrf.mxu0 }
 0x197   : > { %v945_v9 = vpop.f32.mrf.mxu0 }
 0x199   : > { %v947_v10 = vpop.f32.mrf.mxu0 }
 0x19b   : > { %v951_v12 = vpop.f32.mrf.mxu0 }
 0x19d   : > { %v953_v13 = vpop.f32.mrf.mxu0 }
 0x19f   : > { %v955_v14 = vpop.f32.mrf.mxu0 }
 0x1a1   : > { %v957_v16 = vpop.f32.mrf.mxu0 }
 0x1a3   : > { %v961_v17 = vpop.f32.mrf.mxu0 }
 0x1a5   : > { %v963_v18 = vpop.f32.mrf.mxu0 }
 0x1a6   : > { %v964_v55 = vadd.f32 %v963_v18, %v4178_v5  ;;  %v956_v18 = vadd.f32 %v955_v14, %v4185_v15 }
 0x1a7   : > { %v965_v19 = vpop.f32.mrf.mxu0 }
 0x1a8   : > { %v966_v57 = vadd.f32 %v965_v19, %v4181_v7 }
 0x1a9   : > { %v967_v24 = vpop.f32.mrf.mxu0 }
 0x1aa   : > { %v968_v48 = vadd.f32 %v967_v24, %v4181_v7  ;;  %v962_v24 = vadd.f32 %v961_v17, %v4178_v5  ;;  %v948_v7 = vadd.f32 %v947_v10, %v4191_v21  ;;  %v944_v5 = vadd.f32 %v943_v8, %v4189_v20 }
 0x1ab   : > { %v971_v25 = vpop.f32.mrf.mxu0  ;;  %v942_v10 = vadd.f32 %v4217_v6, %v4189_v20 }
 0x1ac   : > { %v972_v53 = vadd.f32 %v971_v25, %v4174_v2  ;;  %v1011_v25 = vmax.f32 %v964_v55, 0.0  ;;  %v1005_v14 = vmax.f32 %v948_v7, 0.0  ;;  %v1003_v8 = vmax.f32 %v944_v5, 0.0  ;;  %v1138_v7 = vld [vmem:[#allocation2 + $0x4] sm:$0x11] }
 0x1ad   : > { %v973_v26 = vpop.f32.mrf.mxu0 }
 0x1ae   : > { %v974_v43 = vadd.f32 %v973_v26, %v4174_v2  ;;  %v954_v2 = vadd.f32 %v953_v13, %v4183_v11  ;;  %v946_v13 = vadd.f32 %v945_v9, %v4191_v21  ;;  %v936_v21 = vadd.f32 %v4213_v62, %v4199_v23 }
 0x1af   : > { %v975_v27 = vpop.f32.mrf.mxu0 }
 0x1b0   : > { %v976_v45 = vadd.f32 %v975_v27, %v4176_v3  ;;  %v1015_v56 = vmax.f32 %v974_v43, 0.0  ;;  %v1014_v27 = vmax.f32 %v972_v53, 0.0  ;;  %v1007_v17 = vmax.f32 %v954_v2, 0.0 }
 0x1b1   : > { %v977_v28 = vpop.f32.mrf.mxu0  ;;  %v1004_v9 = vmax.f32 %v946_v13, 0.0  ;;  %v1030_v43 = vpack.c.bf16 %v1005_v14, %v1003_v8  ;;  %v1000_v6 = vmax.f32 %v936_v21, 0.0 }
 0x1b2   : > { %v978_v32 = vadd.f32 %v977_v28, %v4176_v3  ;;  %v1016_v42 = vmax.f32 %v976_v45, 0.0  ;;  %v1013_v3 = vmax.f32 %v968_v48, 0.0  ;;  %v1012_v28 = vmax.f32 %v966_v57, 0.0 }
 0x1b3   : > { %v981_v29 = vpop.f32.mrf.mxu0 }
 0x1b4   : > { %v982_v35 = vadd.f32 %v981_v29, %v4170_v0  ;;  %v1017_v50 = vmax.f32 %v978_v32, 0.0  ;;  %v1035_v29 = vpack.c.bf16 %v1016_v42, %v1014_v27  ;;  %v1008_v32 = vmax.f32 %v956_v18, 0.0 }
 0x1b5   : > { %v983_v30 = vpop.f32.mrf.mxu0 }
 0x1b6   : > { %v984_v33 = vadd.f32 %v983_v30, %v4170_v0  ;;  %v1018_v54 = vmax.f32 %v982_v35, 0.0  ;;  %v1036_v26 = vpack.c.bf16 %v1017_v50, %v1015_v56  ;;  %v1034_v30 = vpack.c.bf16 %v1013_v3, %v1011_v25  ;;  %v1330_v50 = vld [vmem:[#allocation2 + $0xc] sm:$0x1] }
 0x1b7   : > { %v985_v31 = vpop.f32.mrf.mxu0 }
 0x1b8   : > { %v986_v34 = vadd.f32 %v985_v31, %v4172_v1  ;;  %v1019_v51 = vmax.f32 %v984_v33, 0.0  ;;  %v1010_v31 = vmax.f32 %v962_v24, 0.0  ;;  %v1092_v24 = vld [vmem:[%s479_s15] sm:$0x3]  ;;  %s5082_s15 = smov 127  }
 0x1b9   : > { %v987_v40 = vpop.f32.mrf.mxu0 }
 0x1ba   : > { %v988_v44 = vadd.f32 %v987_v40, %v4172_v1  ;;  %v1020_v47 = vmax.f32 %v986_v34, 0.0  ;;  %v958_v1 = vadd.f32 %v957_v16, %v4185_v15  ;;  %v952_v16 = vadd.f32 %v951_v12, %v4183_v11 }
 0x1bb   : > { %v1033_v33 = vpack.c.bf16 %v1012_v28, %v1010_v31  ;;  %v938_v15 = vadd.f32 %v4215_v63, %v4199_v23  ;;  %v934_v11 = vadd.f32 %v4209_v60, %v4195_v22  ;;  %v932_v63 = vadd.f32 %v4205_v41, %v4195_v22  ;;  %v1022_v22 = vld [vmem:[%s5034_s6] sm:$0xf]  ;;  %v1084_v23 = vpop.permute.xlu0 %1083 }
 0x1bc   : > { %v1021_v52 = vmax.f32 %v988_v44, 0.0  ;;  %v1037_v59 = vpack.c.bf16 %v1020_v47, %v1018_v54  ;;  %v1009_v19 = vmax.f32 %v958_v1, 0.0  ;;  %v1006_v35 = vmax.f32 %v952_v16, 0.0 }
 0x1bd   : > { %v1001_v40 = vmax.f32 %v938_v15, 0.0  ;;  %v1002_v44 = vmax.f32 %v942_v10, 0.0  ;;  %v999_v20 = vmax.f32 %v934_v11, 0.0  ;;  %v998_v60 = vmax.f32 %v932_v63, 0.0 }
 0x1be   : > { %v1038_v0 = vpack.c.bf16 %v1021_v52, %v1019_v51  ;;  %v1032_v34 = vpack.c.bf16 %v1009_v19, %v1007_v17  ;;  %v1031_v12 = vpack.c.bf16 %v1008_v32, %v1006_v35  ;;  %v1089_v54 = vrot.slane %v1084_v23, %v4105_v38 }
 0x1bf   : > { %v1029_v45 = vpack.c.bf16 %v1004_v9, %v1002_v44  ;;  %v1028_v47 = vpack.c.bf16 %v1001_v40, %v999_v20  ;;  %v1027_v48 = vpack.c.bf16 %v1000_v6, %v998_v60  ;;  %v1332_v41 = vpop.permute.xlu0 %1331 }
 0x1c0   : > { %1039 = vmatprep.subr.bf16.mxu1 %v1038_v0  ;;  %v4256_v62 = vrot.slane %v1332_v41, 4 }
 0x1c1   : > { %1040 = vmatpush1.bf16.msra.mxu1 %v1037_v59 }
 0x1c2   : > { %1041 = vmatprep.subr.bf16.mxu1 %v1036_v26  ;;  %v1211_v26 = vpop.permute.xlu1 %1210 }
 0x1c3   : > { %v1246_v16 = vpop.permute.xlu0 %1245  ;;  %v4288_v17 = vrot.slane %v1211_v26, 4 }
 0x1c4   : > { %v4286_v5 = vrot.slane %v1246_v16, 4 }
 0x1c5   : > { %1042 = vmatpush1.bf16.msra.mxu1 %v1035_v29  ;;  %v5076_v29 = vmov 0  ;;  %v4300_v10 = vsel %vm5063_vm14, %v4288_v17, %v1211_v26  ;;  %vm5067_vm14 = vcmask 1047559  }
 0x1c6   : > { %1043 = vmatprep.subr.bf16.mxu1 %v1034_v30  ;;  %v1153_v28 = vpop.permute.xlu1 %1152  ;;  %v5077_v29 = vsel %vm4280_vm12, 4294967295, %v5076_v29  ;;  %v4296_v32 = vsel %vm5058_vm13, %v4286_v5, %v1246_v16  ;;  %vm4372_vm13 = vmand %vm1236_vm7, %vm1237_vm9 }
 0x1c9   : > { %1044 = vmatpush1.bf16.msra.mxu1 %v1033_v33  ;;  %v1295_v33 = vld [vmem:[#allocation2 + $0xc] sm:$0x1] }
 0x1ca   : > { %1045 = vmatprep.subr.bf16.mxu1 %v1032_v34  ;;  %v1297_v31 = vpop.permute.xlu1 %1296 }
 0x1cb   : > { %v4292_v13 = vrot.slane %v1297_v31, 4 }
 0x1cd   : > { %1046 = vmatpush1.bf16.msra.mxu1 %v1031_v12  ;;  %v4309_v12 = vsel %vm5059_vm0, %v4292_v13, %v1297_v31  ;;  %vm1272_vm0 = vsmask.f32 7942 }
 0x1ce   : > { %1047 = vmatprep.subr.bf16.mxu1 %v1030_v43  ;;  %vm4383_vm9 = vmand %vm1233_vm2, %vm1272_vm0 }
 0x1cf   : > { %vm4395_vm0 = vmand %vm5068_vm1, %vm1353_vm8  ;;  %vm1384_vm8 = vsmask.f32 7966 }
 0x1d1   : > { %1048 = vmatpush1.bf16.msra.mxu1 %v1029_v45 }
 0x1d2   : > { %1049 = vmatprep.subr.bf16.mxu1 %v1028_v47 }
 0x1d5   : > { %1050 = vmatpush1.bf16.msra.mxu1 %v1027_v48  ;;  %v1303_v48 = vmul.bf16 %v4292_v13, %v1295_v33 }
 0x1d6   : > { %1051 = vmatprep.subr.bf16.mxu1 %v4211_v61  ;;  %v3835_v61 = vmov 1966171168  }
 0x1d7   : > { %v1097_v51 = vunpack.c.l.s4 %v3835_v61 }
 0x1d9   : > { %1052 = vmatpush1.bf16.msra.mxu1 %v4207_v58  ;;  %v1338_v58 = vmul.bf16 %v4256_v62, %v1330_v50  ;;  %v1098_v52 = vunpack.c.0.s8 %v1097_v51 }
 0x1da   : > { %1053 = vmatprep.subr.bf16.mxu1 %v4203_v49  ;;  %v4261_v49 = vsel %vm5065_vm5, %v4256_v62, %v1332_v41  ;;  %vm4390_vm5 = vmand %vm1236_vm7, %vm1274_vm3  ;;  %vm1195_vm3 = vsmask.f32 7938  ;;  %vm1382_vm7 = vsmask.f32 7950 }
 0x1db   : > { %v4266_v57 = vsub.s32 %v1098_v52, %v4097_v37  ;;  %v1363_v37 = vld [vmem:[#allocation2 + $0xc] sm:$0x1] }
 0x1dc   : > { %v1369_v15 = vshll.u32 %v1363_v37, 16 }
 0x1dd   : > { %1054 = vmatpush1.bf16.msra.mxu1 %v4201_v46  ;;  %v1342_v46 = vrot.slane %v1338_v58, 5 }
 0x1de   : > { %v1371_v58 = vrot.slane %v1369_v15, 5 }
 0x1df   : > { %1345 = vrot.lane.b32.xlu0 %v1342_v46, %s5047_s28 }
 0x1e0   : > { %1072 = vmatmul.mubr.bf16.vlgmr.msra.gmra.mxu1 %v1022_v22 }
 0x1e1   : > { %1507 = vmatprep.mubr.bf16.mxu1 %v3827_v4 }
 0x2a0   : > { %v1073_v53 = vpop.f32.mrf.mxu1 }
 0x2a1   : > { %v1090_v56 = vadd.f32 %v1089_v54, %v1073_v53 }
 0x2a2   : > { %v1075_v55 = vpop.f32.mrf.mxu1 }
 0x2a3   : > { %v1091_v0 = vadd.f32 %v1089_v54, %v1075_v55 }
 0x2a4   : > { %v1077_v42 = vpop.f32.mrf.mxu1 }
 0x2a5   : > { %v1095_v59 = vcombine.low %v1090_v56, %v1091_v0  ;;  %v1309_v42 = vshll.u32 %v1303_v48, 16  ;;  %v1174_v48 = vld [vmem:[#allocation3 + $0xb0] sm:$0x11] }
 0x2a6   : > { %v1078_v1 = vpop.f32.mrf.mxu1 }
 0x2a7   : > { %v1102_v3 = vrot.slane %v1095_v59, %v4266_v57  ;;  %v1311_v31 = vrot.slane %v1309_v42, 6 }
 0x2a9   : > { %v1109_v27 = vrot.slane %v1102_v3, %v4266_v57 }
 0x2ab   : > { %v1111_v2 = vadd.f32 %v1109_v27, %v1092_v24  ;;  %v1291_v24 = vld [vmem:[#allocation3 + $0xb0] sm:$0x44] }
 0x2ad   : > { %v1116_v25 = vrot.slane %v1111_v2, %v4105_v38  ;;  %v1120_v18 = vrot.slane %v1111_v2, %v592_v39  ;;  %v4290_v39 = vrot.slane %v1153_v28, 4 }
 0x2af   : > { %v3621_v19 = vpack.c.bf16 %v1120_v18, %v1116_v25  ;;  %v4305_v21 = vsel %vm5057_vm15, %v4290_v39, %v1153_v28  ;;  %v1393_v25 = vpop.permute.xlu0 %1392  ;;  %vm1169_vm15 = vcmask 1043456  }
 0x2b1   : > { %v1139_v30 = vsel %vm4280_vm12, %v3621_v19, %v1138_v7  ;;  %v1391_v19 = vld [vmem:[#allocation2 + $0xc] sm:$0x1] }
 0x2b2   : > { %1140 = vst [vmem:[#allocation2 + $0x4] sm:$0x11] %v1139_v30  ;;  %v4341_v30 = vrot.slane %v1393_v25, 4 }
 0x2b4   : > { %v1399_v15 = vmul.bf16 %v4341_v30, %v1391_v19 }
 0x2b9   : > { %v1203_v14 = vld [vmem:[#allocation2] sm:$0x11]  ;;  %v1204_v34 = vld [vmem:[#allocation2 + $0x8] sm:$0x1] }
 0x2ba   : > { %v1217_v35 = vmul.bf16 %v4300_v10, %v1203_v14  ;;  %v1145_v11 = vld [vmem:[#allocation2] sm:$0x11]  ;;  %v1146_v8 = vld [vmem:[#allocation2 + $0x8] sm:$0x1]  ;;  %v1218_v40 = vmul.bf16 %v4288_v17, %v1204_v34 }
 0x2bb   : > { %v1243_v9 = vld [vmem:[#allocation2] sm:$0x11]  ;;  %v1159_v63 = vmul.bf16 %v4305_v21, %v1145_v11  ;;  %v1160_v44 = vmul.bf16 %v4290_v39, %v1146_v8  ;;  %v1244_v20 = vld [vmem:[#allocation2 + $0x8] sm:$0x1] }
 0x2bc   : > { %v1329_v43 = vld [vmem:[#allocation2 + $0x4] sm:$0x11]  ;;  %v1252_v6 = vmul.bf16 %v4296_v32, %v1243_v9  ;;  %v1253_v47 = vmul.bf16 %v4286_v5, %v1244_v20  ;;  %v1221_v23 = vrot.slane %v1217_v35, 7  ;;  %v1222_v53 = vrot.slane %v1218_v40, 7  ;;  %v1419_v9 = vld [vmem:[%s5037_s9 + $0x18] sm:$0xff] }
 0x2bd   : > { %v1294_v45 = vld [vmem:[#allocation2 + $0x4] sm:$0x11]  ;;  %1165 = vrot.lane.b32.xlu0 %v1160_v44, %s5051_s22  ;;  %1163 = vrot.lane.b32.xlu1 %v1159_v63, %s5051_s22  ;;  %v1337_v41 = vmul.bf16 %v4261_v49, %v1329_v43  ;;  %v4348_v35 = vsel %vm5066_vm11, %v4341_v30, %v1393_v25  ;;  %v1418_v43 = vld [vmem:[%s5037_s9 + $0x10] sm:$0xff]  ;;  %v1346_v63 = vpop.permute.xlu0 %1345 }
 0x2be   : > { %v1362_v60 = vld [vmem:[#allocation2 + $0x4] sm:$0x11]  ;;  %v1302_v50 = vmul.bf16 %v4309_v12, %v1294_v45  ;;  %v1255_v51 = vshll.u32 %v1252_v6, 16  ;;  %v1259_v52 = vshll.u32 %v1253_v47, 16 }
 0x2bf   : > { %v1365_v22 = vshll.u32 %v1362_v60, 16  ;;  %v1177_v46 = vld [vmem:[#allocation2] sm:$0x11]  ;;  %v1178_v55 = vld [vmem:[#allocation2 + $0x8] sm:$0x1]  ;;  %v1341_v59 = vrot.slane %v1337_v41, 5 }
 0x2c0   : > { %v1280_v0 = vld [vmem:[#allocation2 + $0x4] sm:$0x11]  ;;  %v1305_v1 = vshll.u32 %v1302_v50, 16  ;;  %v1180_v3 = vshll.u32 %v1177_v46, 16  ;;  %v1183_v26 = vshll.u32 %v1178_v55, 16  ;;  %v1257_v27 = vrot.slane %v1255_v51, 7 }
 0x2c1   : > { %v1367_v54 = vrot.slane %v1365_v22, 5  ;;  %1225 = vrot.lane.b32.xlu0 %v1222_v53, %s5055_s29  ;;  %1223 = vrot.lane.b32.xlu1 %v1221_v23, %s5055_s29  ;;  %v1261_v2 = vrot.slane %v1259_v52, 7  ;;  %v1282_v28 = vrot.slane %v1280_v0, 6  ;;  %v1390_v34 = vld [vmem:[#allocation2 + $0x4] sm:$0x11] }
 0x2c2   : > { %v1307_v16 = vrot.slane %v1305_v1, 6  ;;  %v3704_v33 = vpack.i.bf16 %v1183_v26, %v1180_v3  ;;  %v1417_v11 = vld [vmem:[%s5037_s9 + $0x8] sm:$0xff]  ;;  %v1398_v8 = vmul.bf16 %v4348_v35, %v1390_v34  ;;  %v1416_v40 = vld [vmem:[%s5037_s9] sm:$0xff]  ;;  %v1240_v53 = vld [vmem:[#allocation3 + $0xb0] sm:$0x22]  ;;  %v1348_v1 = vrot.slane %v1346_v63, 4 }
 0x2c3   : > { %v3709_v18 = vpack.i.bf16 %v1371_v58, %v1367_v54  ;;  %v1292_v7 = vsel %vm1290_vm10, %v1282_v28, %v1291_v24  ;;  %v3714_v37 = vpack.i.bf16 %v1261_v2, %v1257_v27  ;;  %vm4367_vm10 = vmand %vm1233_vm2, %vm1234_vm4  ;;  %v1359_v2 = vld [vmem:[#allocation3 + $0xb0] sm:$0x88] }
 0x2c4   : > { %1293 = vst [vmem:[#allocation3 + $0xb0] sm:$0x44] %v1292_v7  ;;  %v3719_v14 = vpack.i.bf16 %v1311_v31, %v1307_v16  ;;  %vm1239_vm4 = vmor %vm4372_vm13, %vm4367_vm10  ;;  %vm5099_vm10 = vcmask 924672  }
 0x2c5   : > { %3710 = vrot.lane.b32.xlu0 %v3709_v18, %s5049_s19  ;;  %1343 = vrot.lane.b32.xlu1 %v1341_v59, %s5047_s28  ;;  %vm4401_vm2 = vmand %vm5067_vm14, %vm1356_vm6  ;;  %vm1197_vm6 = vsmask.f32 7954  ;;  %vm5096_vm14 = vcmask 1040384  }
 0x2c6   : > { %vm4425_vm13 = vmand %vm5096_vm14, %vm1195_vm3  ;;  %vm1323_vm14 = vsmask.f32 7962  ;;  %vm5106_vm3 = vcmask 1047559  }
 0x2c9   : > { %3715 = vrot.lane.b32.xlu0 %v3714_v37, %s3833_s16  ;;  %3705 = vrot.lane.b32.xlu1 %v3704_v33, %s5053_s24  ;;  %s475_s24 = scalar_lea.vmem [#allocation7], %s4020_s23 }
 0x2cd   : > { %1404 = vrot.lane.b32.xlu0 %v1399_v15, %s3831_s30  ;;  %3720 = vrot.lane.b32.xlu1 %v3719_v14, %s5082_s15 }
 0x2d1   : > { %1427 = vperm.xlu0 %3702, %v1417_v11   ;;  %1402 = vrot.lane.b32.xlu1 %v1398_v8, %s3831_s30  ;;  %v3732_v11 = vld [vmem:[%s5036_s8] sm:$0xff]  }
 0x2d5   : > { %1437 = vperm.xlu0 %3702, %v1419_v9   ;;  %1422 = vperm.xlu1 %3703, %v1416_v40  }
 0x2d9   : > { %1432 = vperm.xlu1 %3703, %v1418_v43  }
 0x32f   : > { %v1166_v20 = vpop.permute.xlu0 %1165  ;;  %v1164_v6 = vpop.permute.xlu1 %1163 }
 0x330   : > { %v1168_v47 = vrot.slane %v1166_v20, 4  ;;  %v1167_v60 = vrot.slane %v1164_v6, 4 }
 0x332   : > { %v1170_v22 = vsel %vm1169_vm15, %v1167_v60, %v1168_v47 }
 0x333   : > { %v1172_v23 = vsel %vm5066_vm11, %v1164_v6, %v1170_v22  ;;  %v1226_v41 = vpop.permute.xlu0 %1225  ;;  %v1224_v58 = vpop.permute.xlu1 %1223  ;;  %vm5095_vm11 = vcmask 121856  }
 0x334   : > { %v1175_v46 = vsel %vm4280_vm12, %v1172_v23, %v1174_v48  ;;  %v1228_v61 = vrot.slane %v1226_v41, 4  ;;  %v1227_v52 = vrot.slane %v1224_v58, 4 }
 0x335   : > { %1176 = vst [vmem:[#allocation3 + $0xb0] sm:$0x11] %v1175_v46 }
 0x336   : > { %v1229_v55 = vsel %vm1169_vm15, %v1227_v52, %v1228_v61 }
 0x337   : > { %v1231_v0 = vsel %vm5095_vm11, %v1224_v58, %v1229_v55  ;;  %v4406_v42 = vpop.permute.xlu0 %3710  ;;  %v1344_v59 = vpop.permute.xlu1 %1343  ;;  %vm1358_vm11 = vmor %vm4401_vm2, %vm4395_vm0  ;;  %vm1321_vm0 = vsmask.f32 7946  ;;  %vm5103_vm2 = vcmask 1043459  }
 0x338   : > { %v1241_v3 = vsel %vm1239_vm4, %v1231_v0, %v1240_v53  ;;  %v1347_v26 = vrot.slane %v1344_v59, 4  ;;  %v3713_v24 = vunpack.i.h.bf16 %v4406_v42  ;;  %v3712_v27 = vunpack.i.l.bf16 %v4406_v42  ;;  %vm4436_vm12 = vmand %vm5103_vm2, %vm1382_vm7 }
 0x339   : > { %1242 = vst [vmem:[#allocation3 + $0xb0] sm:$0x22] %v1241_v3  ;;  %vm5100_vm4 = vcmask 1044484   ;;  %vm5109_vm7 = vcmask 1042434   ;;  %vm5112_vm2 = vcmask 1046534  }
 0x33a   : > { %v1349_v25 = vsel %vm1169_vm15, %v1347_v26, %v1348_v1  ;;  %vm4431_vm1 = vmand %vm5100_vm4, %vm1197_vm6  ;;  %v1377_v14 = vrot.slane %v3713_v24, 4  ;;  %v1376_v34 = vrot.slane %v3712_v27, 4  ;;  %v1326_v26 = vld [vmem:[#allocation3 + $0xb0] sm:$0x44] }
 0x33b   : > { %v1350_v28 = vsel %vm5099_vm10, %v1344_v59, %v1349_v25  ;;  %v3716_v7 = vpop.permute.xlu0 %3715  ;;  %v3706_v16 = vpop.permute.xlu1 %3705  ;;  %vm4442_vm10 = vmand %vm5106_vm3, %vm1384_vm8  ;;  %vm1379_vm8 = vcmask 916480  }
 0x33c   : > { %v1360_v37 = vsel %vm1358_vm11, %v1350_v28, %v1359_v2  ;;  %v3718_v33 = vunpack.i.h.bf16 %v3716_v7  ;;  %v3717_v15 = vunpack.i.l.bf16 %v3716_v7  ;;  %v3708_v8 = vunpack.i.h.bf16 %v3706_v16  ;;  %vm1199_vm6 = vmor %vm4431_vm1, %vm4425_vm13  ;;  %v1200_v53 = vld [vmem:[#allocation3 + $0xb0] sm:$0x11] }
 0x33d   : > { %1361 = vst [vmem:[#allocation3 + $0xb0] sm:$0x88] %v1360_v37  ;;  %v3707_v9 = vunpack.i.l.bf16 %v3706_v16  ;;  %vm1192_vm11 = vcmask 130048   ;;  %vm4452_vm4 = vmand %vm5109_vm7, %vm1321_vm0  ;;  %v1378_v41 = vsel %vm1169_vm15, %v1376_v34, %v1377_v14  ;;  %vm5115_vm0 = vcmask 7168   ;;  %v1411_v2 = vld [vmem:[#allocation3 + $0xd0] sm:$0x11] }
 0x33e   : > { %v1267_v40 = vrot.slane %v3718_v33, 4  ;;  %v1266_v43 = vrot.slane %v3717_v15, 4  ;;  %v1190_v63 = vrot.slane %v3708_v8, 4  ;;  %vm4459_vm3 = vmand %vm5112_vm2, %vm1323_vm14  ;;  %v1380_v51 = vsel %vm1379_vm8, %v3712_v27, %v1378_v41  ;;  %v3733_v8 = vld [vmem:[%s5036_s8 + $0x8] sm:$0xff]  }
 0x33f   : > { %v1189_v44 = vrot.slane %v3707_v9, 4  ;;  %v3721_v6 = vpop.permute.xlu1 %3720  ;;  %v1405_v45 = vpop.permute.xlu0 %1404  ;;  %vm1386_vm7 = vmor %vm4442_vm10, %vm4436_vm12  ;;  %vm5118_vm1 = vcmask 908288   ;;  %vm1466_vm13 = vcmask 1044480   ;;  %v3838_v7 = vmov 65535  }
 0x340   : > { %v1268_v47 = vsel %vm1169_vm15, %v1266_v43, %v1267_v40  ;;  %v1277_v60 = vld [vmem:[#allocation3 + $0xb0] sm:$0x22]  ;;  %v3723_v22 = vunpack.i.h.bf16 %v3721_v6  ;;  %v3722_v23 = vunpack.i.l.bf16 %v3721_v6  ;;  %v1407_v61 = vrot.slane %v1405_v45, 4  ;;  %vm5116_vm14 = vmor %vm4390_vm5, %vm4383_vm9 }
 0x341   : > { %v1270_v58 = vsel %vm5115_vm0, %v3717_v15, %v1268_v47  ;;  %v1191_v46 = vsel %vm1169_vm15, %v1189_v44, %v1190_v63  ;;  %vm1325_vm12 = vmor %vm4459_vm3, %vm4452_vm4  ;;  %vm5117_vm5 = vcmask 1039360   ;;  %vm5119_vm9 = vnez %v5077_v29  ;;  %v3734_v29 = vld [vmem:[#allocation2 + $0x10] sm:$0xff] }
 0x342   : > { %v1278_v52 = vsel %vm5116_vm14, %v1270_v58, %v1277_v60  ;;  %v1193_v54 = vsel %vm1192_vm11, %v3707_v9, %v1191_v46  ;;  %v1317_v55 = vrot.slane %v3723_v22, 4  ;;  %v1316_v56 = vrot.slane %v3722_v23, 4 }
 0x343   : > { %1279 = vst [vmem:[#allocation3 + $0xb0] sm:$0x22] %v1278_v52  ;;  %v1201_v0 = vsel %vm1199_vm6, %v1193_v54, %v1200_v53  ;;  %v1403_v50 = vpop.permute.xlu1 %1402  ;;  %v1467_v19 = vsel %vm1169_vm15, 4294967295, %v3838_v7  ;;  %vm1458_vm10 = vcmask 72704  }
 0x344   : > { %v1387_v42 = vld [vmem:[#allocation3 + $0xb0] sm:$0x88]  ;;  %1202 = vst [vmem:[#allocation3 + $0xb0] sm:$0x11] %v1201_v0  ;;  %v1318_v59 = vsel %vm1169_vm15, %v1316_v56, %v1317_v55  ;;  %v1406_v1 = vrot.slane %v1403_v50, 4  ;;  %v1468_v37 = vsel %vm1466_vm13, %v1467_v19, 0 }
 0x345   : > { %v1388_v3 = vsel %vm1386_vm7, %v1380_v51, %v1387_v42  ;;  %v1319_v24 = vsel %vm5117_vm5, %v3722_v23, %v1318_v59 }
 0x346   : > { %1389 = vst [vmem:[#allocation3 + $0xb0] sm:$0x88] %v1388_v3  ;;  %v1327_v25 = vsel %vm1325_vm12, %v1319_v24, %v1326_v26  ;;  %v1408_v18 = vsel %vm1169_vm15, %v1406_v1, %v1407_v61 }
 0x347   : > { %1328 = vst [vmem:[#allocation3 + $0xb0] sm:$0x44] %v1327_v25  ;;  %v1409_v28 = vsel %vm5118_vm1, %v1403_v50, %v1408_v18 }
 0x348   : > { %v1412_v27 = vsel %vm5119_vm9, %v1409_v28, %v1411_v2 }
 0x349   : > { %1413 = vst [vmem:[#allocation3 + $0xd0] sm:$0x11] %v1412_v27 }
 0x34c   : > { %v1428_v6 = vpop.permute.xlu0 %1427 }
 0x34e   : > { %v1414_v16 = vld [vmem:[#allocation3 + $0xb0] sm:$0xff] }
 0x350   : > { %v1415_v31 = vld [vmem:[#allocation3 + $0xd0] sm:$0x11]  ;;  %v1423_v9 = vpop.permute.xlu1 %1422  ;;  %v1438_v55 = vpop.permute.xlu0 %1437 }
 0x351   : > { %v3518_v33 = vcombine.low %v1414_v16, %v1415_v31  ;;  %v3519_v15 = vcombine.high %v1414_v16, %v1415_v31 }
 0x353   : > { %v1470_v14 = vand.u32 %v3518_v33, %v1468_v37  ;;  %v1473_v34 = vand.u32 %v3519_v15, %v1468_v37 }
 0x354   : > { %v1433_v41 = vpop.permute.xlu1 %1432 }
 0x355   : > { %1489 = vmatprep.subr.bf16.mxu1 %v1473_v34 }
 0x356   : > { %1490 = vmatpush1.bf16.msra.mxu1 %v1470_v14 }
 0x359   : > { %3520 = vmatmul.mubr.msk.bf16.vlgmr.msra.gmra.mxu1 %vm1458_vm10, %v3732_v11 }
 0x35a   : > { %1517 = vmatprep.mubr.bf16.mxu1 %v3734_v29 }
 0x361   : > { %3521 = vmatmul.mubr.msk.bf16.gmra.mxu1 %vm1458_vm10, %v3733_v8 }
 0x419   : > { %v1509_v40 = vpop.f32.mrf.mxu1 }
 0x41a   : > { %v1510_v43 = vadd.f32 %v1509_v40, %v1423_v9 }
 0x41b   : > { %v1511_v63 = vpop.f32.mrf.mxu1 }
 0x41c   : > { %v1528_v44 = vmax.f32 %v1510_v43, 0.0  ;;  %v1512_v20 = vadd.f32 %v1511_v63, %v1423_v9 }
 0x41d   : > { %v1513_v45 = vpop.f32.mrf.mxu1 }
 0x41e   : > { %1536 = vst [vmem:[#allocation4] sm:$0xff] %v1528_v44  ;;  %v1529_v47 = vmax.f32 %v1512_v20, 0.0  ;;  %v1514_v60 = vadd.f32 %v1513_v45, %v1428_v6 }
 0x41f   : > { %v1515_v48 = vpop.f32.mrf.mxu1 }
 0x420   : > { %1537 = vst [vmem:[#allocation4 + $0x8] sm:$0xff] %v1529_v47  ;;  %v1530_v22 = vmax.f32 %v1514_v60, 0.0  ;;  %v1516_v23 = vadd.f32 %v1515_v48, %v1428_v6 }
 0x421   : > { %v1519_v58 = vpop.f32.mrf.mxu1 }
 0x422   : > { %1538 = vst [vmem:[#allocation4 + $0x28] sm:$0xff] %v1530_v22  ;;  %v1531_v46 = vmax.f32 %v1516_v23, 0.0  ;;  %v1520_v61 = vadd.f32 %v1519_v58, %v1433_v41 }
 0x423   : > { %v1521_v52 = vpop.f32.mrf.mxu1 }
 0x424   : > { %1539 = vst [vmem:[#allocation4 + $0x38] sm:$0xff] %v1531_v46  ;;  %v1532_v53 = vmax.f32 %v1520_v61, 0.0  ;;  %v1522_v54 = vadd.f32 %v1521_v52, %v1433_v41 }
 0x425   : > { %v1523_v56 = vpop.f32.mrf.mxu1 }
 0x426   : > { %1540 = vst [vmem:[#allocation4 + $0x10] sm:$0xff] %v1532_v53  ;;  %v1533_v0 = vmax.f32 %v1522_v54, 0.0  ;;  %v1524_v50 = vadd.f32 %v1523_v56, %v1438_v55 }
 0x427   : > { %v1525_v51 = vpop.f32.mrf.mxu1 }
 0x428   : > { %1541 = vst [vmem:[#allocation4 + $0x30] sm:$0xff] %v1533_v0  ;;  %v1534_v42 = vmax.f32 %v1524_v50, 0.0  ;;  %v1526_v59 = vadd.f32 %v1525_v51, %v1438_v55 }
 0x42a   : > { %1542 = vst [vmem:[#allocation4 + $0x18] sm:$0xff] %v1534_v42  ;;  %v1535_v1 = vmax.f32 %v1526_v59, 0.0 }
 0x42c   : > { %1543 = vst [vmem:[#allocation4 + $0x20] sm:$0xff] %v1535_v1 }
 0x42d LB: >> { %v4509_v24 = vld [vmem:[#allocation4 + $0x10] sm:$0xff]  ;;  %v4517_v18 = vld [vmem:[#allocation4] sm:$0xff]  ;;  %v4519_v28 = vld [vmem:[#allocation4 + $0x8] sm:$0xff]  ;;  %s3839_s27 = smov 1   ;;  %s3840_s15 = smov 15   ;;  %vm5120_vm6 = vcmask 7168   ;;  %s3825_s13 = sphi %s4500_s13, %s1549_s13  }
 0x42e   : >> { %v4527_v7 = vpack.c.bf16 %v4519_v28, %v4517_v18  ;;  %v4529_v19 = vld [vmem:[#allocation4 + $0x28] sm:$0xff]  ;;  %v4531_v16 = vld [vmem:[#allocation4 + $0x38] sm:$0xff]  ;;  %s3841_s28 = smov 16   ;;  %s3842_s29 = smov 17   ;;  %vm5121_vm4 = vmmov %vm5120_vm6  ;;  %vm5124_vm0 = vcmask 121856   ;;  %vm5128_vm5 = vcmask 138240  }
 0x42f   : >> { %v4515_v25 = vld [vmem:[#allocation4 + $0x30] sm:$0xff]  ;;  %v4536_v31 = vpack.c.bf16 %v4531_v16, %v4529_v19  ;;  %s3843_s22 = smov 112   ;;  %s3844_s19 = smov 113   ;;  %vm5122_vm2 = vmmov %vm5121_vm4  ;;  %vm5132_vm10 = vcmask 924672  }
 0x430   : >> { %v4523_v27 = vpack.c.bf16 %v4515_v25, %v4509_v24  ;;  %1582 = vst [vmem:[#allocation2 + $0x4] sm:$0xff] %v4527_v7  ;;  %vm5123_vm3 = vmmov %vm5122_vm2 }
 0x431   : >> { %v4505_v3 = vld [vmem:[#allocation4 + $0x18] sm:$0xff]  ;;  %1583 = vst [vmem:[#allocation2 + $0x14] sm:$0xff] %v4536_v31  ;;  %vm5125_vm7 = vmmov %vm5124_vm0 }
 0x432   : >> { %1584 = vst [vmem:[#allocation2 + $0x24] sm:$0xff] %v4523_v27  ;;  %vm5126_vm14 = vmmov %vm5124_vm0 }
 0x433   : >> { %v4507_v26 = vld [vmem:[#allocation4 + $0x20] sm:$0xff]  ;;  %vm5127_vm12 = vmmov %vm5124_vm0 }
 0x434   : >> { %v4513_v2 = vpack.c.bf16 %v4507_v26, %v4505_v3  ;;  %vm5129_vm1 = vmmov %vm5128_vm5 }
 0x435   : >> { %vm5130_vm9 = vmmov %vm5129_vm1 }
 0x436   : >> { %1585 = vst [vmem:[#allocation2 + $0x34] sm:$0xff] %v4513_v2  ;;  %vm5131_vm13 = vmmov %vm5129_vm1 }
 0x437   : >> { %v1782_v9 = vld [vmem:[#allocation2 + $0x8] sm:$0xf]  ;;  %v4551_v40 = vld [vmem:[#allocation2] sm:$0xff] }
 0x438   : >> { %v1790_v43 = vmul.bf16 %v1782_v9, %v4286_v5  ;;  %v1789_v63 = vmul.bf16 %v4551_v40, %v4296_v32  ;;  %v1784_v44 = vld [vmem:[#allocation2 + $0x18] sm:$0xf]  ;;  %v1783_v20 = vld [vmem:[#allocation2 + $0x10] sm:$0xff]  ;;  %v1718_v58 = vld [vmem:[#allocation2 + $0x8] sm:$0xf]  ;;  %v1725_v61 = vmul.bf16 %v4551_v40, %v4300_v10 }
 0x439   : >> { %v4545_v14 = vld [vmem:[#allocation2 + $0x20] sm:$0xff]  ;;  %v1786_v34 = vld [vmem:[#allocation2 + $0x28] sm:$0xf]  ;;  %v1792_v6 = vmul.bf16 %v1784_v44, %v4286_v5  ;;  %v1791_v45 = vmul.bf16 %v1783_v20, %v4296_v32  ;;  %v1726_v46 = vmul.bf16 %v1718_v58, %v4288_v17  ;;  %v1720_v52 = vld [vmem:[#allocation2 + $0x18] sm:$0xf]  ;;  %v1727_v54 = vmul.bf16 %v1783_v20, %v4300_v10 }
 0x43a   : >> { %v1793_v11 = vmul.bf16 %v4545_v14, %v4296_v32  ;;  %v1794_v8 = vmul.bf16 %v1786_v34, %v4286_v5  ;;  %v1722_v47 = vld [vmem:[#allocation2 + $0x28] sm:$0xf]  ;;  %v1729_v48 = vmul.bf16 %v4545_v14, %v4300_v10  ;;  %v1728_v53 = vmul.bf16 %v1720_v52, %v4288_v17  ;;  %v1664_v50 = vld [vmem:[#allocation2 + $0x18] sm:$0xf]  ;;  %v1922_v44 = vld [vmem:[#allocation2 + $0x2c] sm:$0xf] }
 0x43b   : >> { %v1730_v60 = vmul.bf16 %v1722_v47, %v4288_v17  ;;  %v1666_v55 = vld [vmem:[#allocation2 + $0x28] sm:$0xf]  ;;  %v1609_v59 = vmul.bf16 %v4545_v14, %v4305_v21  ;;  %v1607_v9 = vmul.bf16 %v1783_v20, %v4305_v21 }
 0x43c   : >> { %1813 = vrot.lane.b32.xlu0 %v1793_v11, %s3839_s27  ;;  %v1662_v0 = vld [vmem:[#allocation2 + $0x8] sm:$0xf] }
 0x43d   : >> { %v4541_v37 = vld [vmem:[#allocation2 + $0x30] sm:$0xff]  ;;  %v1788_v33 = vld [vmem:[#allocation2 + $0x38] sm:$0xf]  ;;  %v1602_v51 = vld [vmem:[#allocation2 + $0x28] sm:$0xf] }
 0x43e   : >> { %v1795_v15 = vmul.bf16 %v4541_v37, %v4296_v32  ;;  %v1796_v29 = vmul.bf16 %v1788_v33, %v4286_v5  ;;  %v1724_v22 = vld [vmem:[#allocation2 + $0x38] sm:$0xf]  ;;  %v1731_v41 = vmul.bf16 %v4541_v37, %v4300_v10  ;;  %v1610_v42 = vmul.bf16 %v1602_v51, %v4290_v39  ;;  %v1598_v34 = vld [vmem:[#allocation2 + $0x8] sm:$0xf] }
 0x43f   : >> { %v1732_v23 = vmul.bf16 %v1724_v22, %v4288_v17  ;;  %v1668_v56 = vld [vmem:[#allocation2 + $0x38] sm:$0xf]  ;;  %v1606_v11 = vmul.bf16 %v1598_v34, %v4290_v39  ;;  %v1861_v51 = vmul.bf16 %v4527_v7, %v4309_v12  ;;  %v2049_v34 = vmul.bf16 %v4523_v27, %v4348_v35 }
 0x440   : >> { %1817 = vrot.lane.b32.xlu1 %v1795_v15, %s3839_s27  ;;  %1815 = vrot.lane.b32.xlu0 %v1794_v8, %s3839_s27  ;;  %v1604_v1 = vld [vmem:[#allocation2 + $0x38] sm:$0xf]  ;;  %v1611_v15 = vmul.bf16 %v4541_v37, %v4305_v21 }
 0x441   : >> { %v1612_v33 = vmul.bf16 %v1604_v1, %v4290_v39  ;;  %v1600_v8 = vld [vmem:[#allocation2 + $0x18] sm:$0xf]  ;;  %v1863_v1 = vmul.bf16 %v4536_v31, %v4309_v12 }
 0x444   : >> { %1819 = vrot.lane.b32.xlu1 %v1796_v29, %s3839_s27  ;;  %1805 = vrot.lane.b32.xlu0 %v1789_v63, %s3839_s27  ;;  %v1605_v29 = vmul.bf16 %v4551_v40, %v4305_v21  ;;  %v1982_v63 = vld [vmem:[#allocation2 + $0xc] sm:$0xf] }
 0x448   : >> { %1807 = vrot.lane.b32.xlu1 %v1790_v43, %s3839_s27  ;;  %1809 = vrot.lane.b32.xlu0 %v1791_v45, %s3839_s27  ;;  %v1986_v43 = vld [vmem:[#allocation2 + $0x2c] sm:$0xf]  ;;  %v1924_v45 = vld [vmem:[#allocation2 + $0x3c] sm:$0xf] }
 0x449   : >> { %v1932_v47 = vmul.bf16 %v1924_v45, %v4256_v62 }
 0x44c   : >> { %1811 = vrot.lane.b32.xlu1 %v1792_v6, %s3839_s27  ;;  %1749 = vrot.lane.b32.xlu0 %v1729_v48, %s3840_s15  ;;  %v1929_v6 = vmul.bf16 %v4523_v27, %v4261_v49  ;;  %v1918_v48 = vld [vmem:[#allocation2 + $0xc] sm:$0xf]  ;;  %s3845_s27 = smov 127  }
 0x44d   : >> { %v1926_v22 = vmul.bf16 %v1918_v48, %v4256_v62  ;;  %v3847_v48 = vmov 0  }
 0x44e   : >> { %2465 = vmatprep.mubr.bf16.mxu1 %v3847_v48  ;;  %3736 = vset.pattern.permute.xlu1 %v3847_v48 }
 0x44f   : >> { %3735 = vset.pattern.permute.xlu0 %v3847_v48 }
 0x450   : >> { %1751 = vrot.lane.b32.xlu1 %v1730_v60, %s3840_s15  ;;  %1753 = vrot.lane.b32.xlu0 %v1731_v41, %s3840_s15  ;;  %v1931_v60 = vmul.bf16 %v4513_v2, %v4261_v49  ;;  %v1920_v41 = vld [vmem:[#allocation2 + $0x1c] sm:$0xf] }
 0x451   : >> { %v1928_v58 = vmul.bf16 %v1920_v41, %v4256_v62 }
 0x454   : >> { %1755 = vrot.lane.b32.xlu1 %v1732_v23, %s3840_s15  ;;  %1741 = vrot.lane.b32.xlu0 %v1725_v61, %s3840_s15  ;;  %v1925_v23 = vmul.bf16 %v4527_v7, %v4261_v49  ;;  %v1858_v61 = vld [vmem:[#allocation2 + $0x2c] sm:$0xf] }
 0x455   : >> { %v1866_v52 = vmul.bf16 %v1858_v61, %v4292_v13 }
 0x458   : >> { %1743 = vrot.lane.b32.xlu1 %v1726_v46, %s3840_s15  ;;  %1745 = vrot.lane.b32.xlu0 %v1727_v54, %s3840_s15  ;;  %v1927_v46 = vmul.bf16 %v4536_v31, %v4261_v49  ;;  %v1860_v54 = vld [vmem:[#allocation2 + $0x3c] sm:$0xf] }
 0x45c   : >> { %1747 = vrot.lane.b32.xlu1 %v1728_v53, %s3840_s15  ;;  %1685 = vrot.lane.b32.xlu0 %v4545_v14, %s3841_s28  ;;  %v1608_v14 = vmul.bf16 %v1600_v8, %v4290_v39  ;;  %v1865_v53 = vmul.bf16 %v4523_v27, %v4309_v12  ;;  %s3628_s15 = smul.u32 48, %s3825_s13 }
 0x460   : >> { %1687 = vrot.lane.b32.xlu1 %v1666_v55, %s3841_s28  ;;  %1689 = vrot.lane.b32.xlu0 %v4541_v37, %s3841_s28  ;;  %v1988_v37 = vld [vmem:[#allocation2 + $0x3c] sm:$0xf]  ;;  %v1868_v55 = vmul.bf16 %v1860_v54, %v4292_v13 }
 0x464   : >> { %1691 = vrot.lane.b32.xlu1 %v1668_v56, %s3841_s28  ;;  %1677 = vrot.lane.b32.xlu0 %v4551_v40, %s3841_s28  ;;  %v1984_v40 = vld [vmem:[#allocation2 + $0x1c] sm:$0xf]  ;;  %v1867_v56 = vmul.bf16 %v4513_v2, %v4309_v12 }
 0x468   : >> { %1679 = vrot.lane.b32.xlu1 %v1662_v0, %s3841_s28  ;;  %1681 = vrot.lane.b32.xlu0 %v1783_v20, %s3841_s28  ;;  %v1930_v20 = vmul.bf16 %v1922_v44, %v4256_v62  ;;  %v1854_v0 = vld [vmem:[#allocation2 + $0xc] sm:$0xf] }
 0x46c   : >> { %1683 = vrot.lane.b32.xlu1 %v1664_v50, %s3841_s28  ;;  %1629 = vrot.lane.b32.xlu0 %v1609_v59, %s3842_s29  ;;  %v1862_v50 = vmul.bf16 %v1854_v0, %v4292_v13 }
 0x470   : >> { %1631 = vrot.lane.b32.xlu1 %v1610_v42, %s3842_s29  ;;  %1633 = vrot.lane.b32.xlu0 %v1611_v15, %s3842_s29  ;;  %v1856_v42 = vld [vmem:[#allocation2 + $0x1c] sm:$0xf] }
 0x471   : >> { %v1864_v59 = vmul.bf16 %v1856_v42, %v4292_v13 }
 0x474   : >> { %1635 = vrot.lane.b32.xlu1 %v1612_v33, %s3842_s29  ;;  %1621 = vrot.lane.b32.xlu0 %v1605_v29, %s3842_s29  ;;  %v2042_v33 = vld [vmem:[#allocation2 + $0x2c] sm:$0xf] }
 0x475   : >> { %v2050_v15 = vmul.bf16 %v2042_v33, %v4341_v30 }
 0x478   : >> { %1623 = vrot.lane.b32.xlu1 %v1606_v11, %s3842_s29  ;;  %1625 = vrot.lane.b32.xlu0 %v1607_v9, %s3842_s29  ;;  %v2044_v11 = vld [vmem:[#allocation2 + $0x3c] sm:$0xf]  ;;  %v2051_v9 = vmul.bf16 %v4513_v2, %v4348_v35 }
 0x479   : >> { %v2052_v8 = vmul.bf16 %v2044_v11, %v4341_v30 }
 0x47c   : >> { %1627 = vrot.lane.b32.xlu1 %v1608_v14, %s3842_s29  ;;  %2005 = vrot.lane.b32.xlu0 %v4523_v27, %s3843_s22  ;;  %v2038_v14 = vld [vmem:[#allocation2 + $0xc] sm:$0xf] }
 0x480   : >> { %2007 = vrot.lane.b32.xlu1 %v1986_v43, %s3843_s22  ;;  %2009 = vrot.lane.b32.xlu0 %v4513_v2, %s3843_s22 }
 0x484   : >> { %2011 = vrot.lane.b32.xlu1 %v1988_v37, %s3843_s22  ;;  %1997 = vrot.lane.b32.xlu0 %v4527_v7, %s3843_s22  ;;  %v2046_v37 = vmul.bf16 %v2038_v14, %v4341_v30 }
 0x488   : >> { %1999 = vrot.lane.b32.xlu1 %v1982_v63, %s3843_s22  ;;  %2001 = vrot.lane.b32.xlu0 %v4536_v31, %s3843_s22  ;;  %v2045_v63 = vmul.bf16 %v4527_v7, %v4348_v35  ;;  %v2047_v7 = vmul.bf16 %v4536_v31, %v4348_v35 }
 0x48c   : >> { %2003 = vrot.lane.b32.xlu1 %v1984_v40, %s3843_s22  ;;  %1949 = vrot.lane.b32.xlu0 %v1929_v6, %s3844_s19  ;;  %s4618_s22 = scalar_lea.vmem %s5038_s10, %s3628_s15  ;;  %v2040_v40 = vld [vmem:[#allocation2 + $0x1c] sm:$0xf] }
 0x48d   : >> { %v3739_v29 = vld [vmem:[%s4618_s22 + $0x4] ss:$12 sps:$4 sm:$0xff]   ;;  %v2048_v2 = vmul.bf16 %v2040_v40, %v4341_v30 }
 0x48e   : >> { %2412 = vmatprep.mubr.bf16.mxu0 %v3739_v29 }
 0x490   : >> { %1951 = vrot.lane.b32.xlu1 %v1930_v20, %s3844_s19  ;;  %1953 = vrot.lane.b32.xlu0 %v1931_v60, %s3844_s19 }
 0x494   : >> { %1955 = vrot.lane.b32.xlu1 %v1932_v47, %s3844_s19  ;;  %1941 = vrot.lane.b32.xlu0 %v1925_v23, %s3844_s19 }
 0x498   : >> { %1943 = vrot.lane.b32.xlu1 %v1926_v22, %s3844_s19  ;;  %1945 = vrot.lane.b32.xlu0 %v1927_v46, %s3844_s19 }
 0x49c   : >> { %1947 = vrot.lane.b32.xlu1 %v1928_v58, %s3844_s19  ;;  %1885 = vrot.lane.b32.xlu0 %v1865_v53, %s3845_s27  ;;  %s3846_s19 = smov 111  }
 0x4a0   : >> { %1887 = vrot.lane.b32.xlu1 %v1866_v52, %s3845_s27  ;;  %1889 = vrot.lane.b32.xlu0 %v1867_v56, %s3845_s27 }
 0x4a4   : >> { %1891 = vrot.lane.b32.xlu1 %v1868_v55, %s3845_s27  ;;  %1877 = vrot.lane.b32.xlu0 %v1861_v51, %s3845_s27 }
 0x4a8   : >> { %1879 = vrot.lane.b32.xlu1 %v1862_v50, %s3845_s27  ;;  %1881 = vrot.lane.b32.xlu0 %v1863_v1, %s3845_s27 }
 0x4ac   : >> { %1883 = vrot.lane.b32.xlu1 %v1864_v59, %s3845_s27  ;;  %2069 = vrot.lane.b32.xlu0 %v2049_v34, %s3846_s19  ;;  %s3527_s27 = sshll.u32 %s3825_s13, 5  ;;  %s1549_s13 = sadd.s32 1, %s3825_s13  }
 0x4ad   : >> { %s2138_s29 = scalar_lea.vmem %s5039_s11, %s3527_s27  ;;  %p1546_p11 = scmp.ge.s32.totalorder %s1549_s13, 6  }
 0x4ae   : >> { %v1814_v43 = vpop.permute.xlu0 %1813  ;;  %v2140_v14 = vld [vmem:[%s2138_s29 + $0x8] sm:$0xff]  ;;  %s5144_s13 = smov (%p1546_p11), 15   ;;  %s5148_s27 = smov (%p1546_p11), 113  }
 0x4af   : >> { %v1825_v47 = vrot.slane %v1814_v43, 4  ;;  %s5149_s15 = smov (%p1546_p11), 127   ;;  %s5174_s28 = sand.u32 (%p1546_p11), 1, %s3813_s18  }
 0x4b0   : >> { %2071 = vrot.lane.b32.xlu1 %v2050_v15, %s3846_s19  ;;  %2073 = vrot.lane.b32.xlu0 %v2051_v9, %s3846_s19  ;;  %v2139_v9 = vld [vmem:[%s2138_s29] sm:$0xff] }
 0x4b2   : >> { %v1818_v27 = vpop.permute.xlu1 %1817  ;;  %v1816_v45 = vpop.permute.xlu0 %1815 }
 0x4b3   : >> { %v1827_v20 = vrot.slane %v1818_v27, 4  ;;  %v1826_v60 = vrot.slane %v1816_v45, 4 }
 0x4b4   : >> { %2075 = vrot.lane.b32.xlu1 %v2052_v8, %s3846_s19  ;;  %2061 = vrot.lane.b32.xlu0 %v2045_v63, %s3846_s19  ;;  %v2142_v63 = vld [vmem:[%s2138_s29 + $0x18] sm:$0xff] }
 0x4b5   : >> { %v1833_v41 = vsel %vm1169_vm15, %v1825_v47, %v1826_v60 }
 0x4b6   : >> { %v1820_v44 = vpop.permute.xlu1 %1819  ;;  %v1834_v46 = vsel %vm5121_vm4, %v1814_v43, %v1833_v41  ;;  %v1806_v52 = vpop.permute.xlu0 %1805 }
 0x4b7   : >> { %v1828_v6 = vrot.slane %v1820_v44, 4  ;;  %v1821_v53 = vrot.slane %v1806_v52, 4 }
 0x4b8   : >> { %2063 = vrot.lane.b32.xlu1 %v2046_v37, %s3846_s19  ;;  %2065 = vrot.lane.b32.xlu0 %v2047_v7, %s3846_s19  ;;  %v2141_v37 = vld [vmem:[%s2138_s29 + $0x10] sm:$0xff]  ;;  %s3392_s29 = scalar_lea.sflag (%p1546_p11), [#allocation8], %s5174_s28 }
 0x4b9   : >> { %v1835_v22 = vsel %vm1169_vm15, %v1827_v20, %v1828_v6 }
 0x4ba   : >> { %v1836_v23 = vsel %vm5120_vm6, %v1818_v27, %v1835_v22  ;;  %v1808_v58 = vpop.permute.xlu1 %1807  ;;  %v1810_v51 = vpop.permute.xlu0 %1809  ;;  %vm5133_vm6 = vmmov %vm5132_vm10 }
 0x4bb   : >> { %v1822_v61 = vrot.slane %v1808_v58, 4  ;;  %v3549_v54 = vcombine.high %v1834_v46, %v1836_v23  ;;  %v3548_v55 = vcombine.low %v1834_v46, %v1836_v23  ;;  %v1823_v42 = vrot.slane %v1810_v51, 4  ;;  %vm5134_vm4 = vmmov %vm5133_vm6 }
 0x4bc   : >> { %2067 = vrot.lane.b32.xlu1 %v2048_v2, %s3846_s19  ;;  %2145 = vperm.xlu0 %3735, %v2139_v9   ;;  %s5147_s19 = smov (%p1546_p11), 112  }
 0x4bd   : >> { %v1829_v31 = vsel %vm1169_vm15, %v1821_v53, %v1822_v61  ;;  %2380 = vmatprep.subr.bf16.mxu0 %v3549_v54 }
 0x4be   : >> { %v1812_v56 = vpop.permute.xlu1 %1811  ;;  %v1830_v0 = vsel %vm5122_vm2, %v1806_v52, %v1829_v31  ;;  %2381 = vmatpush1.bf16.msra.mxu0 %v3548_v55  ;;  %v1750_v34 = vpop.permute.xlu0 %1749  ;;  %vm5135_vm2 = vmmov %vm5134_vm4 }
 0x4bf   : >> { %v1824_v50 = vrot.slane %v1812_v56, 4  ;;  %v1761_v11 = vrot.slane %v1750_v34, 4 }
 0x4c0   : >> { %2150 = vperm.xlu1 %3736, %v2140_v14   ;;  %2160 = vperm.xlu0 %3735, %v2142_v63  }
 0x4c1   : >> { %v1831_v59 = vsel %vm1169_vm15, %v1823_v42, %v1824_v50 }
 0x4c2   : >> { %v1752_v1 = vpop.permute.xlu1 %1751  ;;  %v1832_v33 = vsel %vm5123_vm3, %v1810_v51, %v1831_v59  ;;  %v1754_v20 = vpop.permute.xlu0 %1753  ;;  %vm5136_vm3 = vcmask 1039360  }
 0x4c3   : >> { %v1762_v15 = vrot.slane %v1752_v1, 4  ;;  %v3547_v29 = vcombine.high %v1830_v0, %v1832_v33  ;;  %v3546_v8 = vcombine.low %v1830_v0, %v1832_v33  ;;  %v1763_v6 = vrot.slane %v1754_v20, 4 }
 0x4c4   : >> { %2155 = vperm.xlu1 %3736, %v2141_v37   ;;  %3745 = vset.pattern.permute.xlu0 (%p1546_p11), %v3827_v4 }
 0x4c5   : >> { %v1769_v27 = vsel %vm1169_vm15, %v1761_v11, %v1762_v15  ;;  %2382 = vmatprep.subr.bf16.mxu0 %v3547_v29 }
 0x4c6   : >> { %v1756_v43 = vpop.permute.xlu1 %1755  ;;  %v1770_v40 = vsel %vm5124_vm0, %v1750_v34, %v1769_v27  ;;  %2383 = vmatpush1.bf16.msra.mxu0 %v3546_v8  ;;  %v1742_v22 = vpop.permute.xlu0 %1741  ;;  %vm5137_vm0 = vmmov %vm5136_vm3 }
 0x4c7   : >> { %v1764_v44 = vrot.slane %v1756_v43, 4  ;;  %v1757_v7 = vrot.slane %v1742_v22, 4 }
 0x4c9   : >> { %v1771_v45 = vsel %vm1169_vm15, %v1763_v6, %v1764_v44 }
 0x4ca   : >> { %v1744_v47 = vpop.permute.xlu1 %1743  ;;  %v1772_v60 = vsel %vm5125_vm7, %v1754_v20, %v1771_v45  ;;  %v1746_v53 = vpop.permute.xlu0 %1745  ;;  %vm5138_vm7 = vmmov %vm5137_vm0 }
 0x4cb   : >> { %v1758_v2 = vrot.slane %v1744_v47, 4  ;;  %v3545_v23 = vcombine.high %v1770_v40, %v1772_v60  ;;  %v3544_v41 = vcombine.low %v1770_v40, %v1772_v60  ;;  %v1759_v54 = vrot.slane %v1746_v53, 4 }
 0x4cd   : >> { %v1765_v58 = vsel %vm1169_vm15, %v1757_v7, %v1758_v2  ;;  %2384 = vmatprep.subr.bf16.mxu0 %v3545_v23 }
 0x4ce   : >> { %v1748_v46 = vpop.permute.xlu1 %1747  ;;  %v1766_v61 = vsel %vm5126_vm14, %v1742_v22, %v1765_v58  ;;  %2385 = vmatpush1.bf16.msra.mxu0 %v3544_v41  ;;  %v1686_v50 = vpop.permute.xlu0 %1685  ;;  %vm5139_vm14 = vmmov %vm5137_vm0 }
 0x4cf   : >> { %v1760_v52 = vrot.slane %v1748_v46, 4  ;;  %v1697_v51 = vrot.slane %v1686_v50, 4 }
 0x4d1   : >> { %v1767_v55 = vsel %vm1169_vm15, %v1759_v54, %v1760_v52 }
 0x4d2   : >> { %v1688_v31 = vpop.permute.xlu1 %1687  ;;  %v1768_v56 = vsel %vm5127_vm12, %v1746_v53, %v1767_v55  ;;  %v1690_v11 = vpop.permute.xlu0 %1689  ;;  %vm5140_vm12 = vcmask 908288  }
 0x4d3   : >> { %v1698_v0 = vrot.slane %v1688_v31, 4  ;;  %v3543_v42 = vcombine.high %v1766_v61, %v1768_v56  ;;  %v3542_v59 = vcombine.low %v1766_v61, %v1768_v56  ;;  %v1699_v29 = vrot.slane %v1690_v11, 4 }
 0x4d5   : >> { %v1705_v1 = vsel %vm1169_vm15, %v1697_v51, %v1698_v0  ;;  %2386 = vmatprep.subr.bf16.mxu0 %v3543_v42 }
 0x4d6   : >> { %v1692_v33 = vpop.permute.xlu1 %1691  ;;  %v1706_v15 = vsel %vm1192_vm11, %v1686_v50, %v1705_v1  ;;  %2387 = vmatpush1.bf16.msra.mxu0 %v3542_v59  ;;  %v1678_v43 = vpop.permute.xlu0 %1677 }
 0x4d7   : >> { %v1700_v34 = vrot.slane %v1692_v33, 4  ;;  %v1693_v37 = vrot.slane %v1678_v43, 4 }
 0x4d9   : >> { %v1707_v8 = vsel %vm1169_vm15, %v1699_v29, %v1700_v34 }
 0x4da   : >> { %v1680_v14 = vpop.permute.xlu1 %1679  ;;  %v1708_v9 = vsel %vm1192_vm11, %v1690_v11, %v1707_v8  ;;  %v1682_v47 = vpop.permute.xlu0 %1681 }
 0x4db   : >> { %v1694_v27 = vrot.slane %v1680_v14, 4  ;;  %v3541_v63 = vcombine.high %v1706_v15, %v1708_v9  ;;  %v3540_v40 = vcombine.low %v1706_v15, %v1708_v9  ;;  %v1695_v60 = vrot.slane %v1682_v47, 4 }
 0x4dd   : >> { %v1701_v44 = vsel %vm1169_vm15, %v1693_v37, %v1694_v27  ;;  %2388 = vmatprep.subr.bf16.mxu0 %v3541_v63 }
 0x4de   : >> { %v1684_v20 = vpop.permute.xlu1 %1683  ;;  %v1702_v6 = vsel %vm1192_vm11, %v1678_v43, %v1701_v44  ;;  %2389 = vmatpush1.bf16.msra.mxu0 %v3540_v40  ;;  %v1630_v41 = vpop.permute.xlu0 %1629 }
 0x4df   : >> { %v1696_v45 = vrot.slane %v1684_v20, 4  ;;  %v1641_v58 = vrot.slane %v1630_v41, 4 }
 0x4e1   : >> { %v1703_v2 = vsel %vm1169_vm15, %v1695_v60, %v1696_v45 }
 0x4e2   : >> { %v1632_v22 = vpop.permute.xlu1 %1631  ;;  %v1704_v7 = vsel %vm1192_vm11, %v1682_v47, %v1703_v2  ;;  %v1634_v31 = vpop.permute.xlu0 %1633 }
 0x4e3   : >> { %v1642_v23 = vrot.slane %v1632_v22, 4  ;;  %v3539_v46 = vcombine.high %v1702_v6, %v1704_v7  ;;  %v3538_v61 = vcombine.low %v1702_v6, %v1704_v7  ;;  %v1643_v56 = vrot.slane %v1634_v31, 4 }
 0x4e5   : >> { %v1649_v52 = vsel %vm1169_vm15, %v1641_v58, %v1642_v23  ;;  %2390 = vmatprep.subr.bf16.mxu0 %v3539_v46 }
 0x4e6   : >> { %v1636_v53 = vpop.permute.xlu1 %1635  ;;  %v1650_v54 = vsel %vm5128_vm5, %v1630_v41, %v1649_v52  ;;  %2391 = vmatpush1.bf16.msra.mxu0 %v3538_v61  ;;  %v1622_v59 = vpop.permute.xlu0 %1621  ;;  %vm5141_vm5 = vmmov %vm5140_vm12 }
 0x4e7   : >> { %v1644_v55 = vrot.slane %v1636_v53, 4  ;;  %v1637_v1 = vrot.slane %v1622_v59, 4 }
 0x4e9   : >> { %v1651_v0 = vsel %vm1169_vm15, %v1643_v56, %v1644_v55 }
 0x4ea   : >> { %v1624_v50 = vpop.permute.xlu1 %1623  ;;  %v1652_v51 = vsel %vm5129_vm1, %v1634_v31, %v1651_v0  ;;  %v1626_v14 = vpop.permute.xlu0 %1625  ;;  %vm5142_vm1 = vmmov %vm5141_vm5 }
 0x4eb   : >> { %v1638_v42 = vrot.slane %v1624_v50, 4  ;;  %v3537_v33 = vcombine.high %v1650_v54, %v1652_v51  ;;  %v3536_v15 = vcombine.low %v1650_v54, %v1652_v51  ;;  %v1639_v9 = vrot.slane %v1626_v14, 4 }
 0x4ed   : >> { %v1645_v34 = vsel %vm1169_vm15, %v1637_v1, %v1638_v42  ;;  %2392 = vmatprep.subr.bf16.mxu0 %v3537_v33 }
 0x4ee   : >> { %v1628_v11 = vpop.permute.xlu1 %1627  ;;  %v1646_v29 = vsel %vm5130_vm9, %v1622_v59, %v1645_v34  ;;  %2393 = vmatpush1.bf16.msra.mxu0 %v3536_v15  ;;  %v2006_v40 = vpop.permute.xlu0 %2005  ;;  %vm5143_vm9 = vmmov %vm5142_vm1 }
 0x4ef   : >> { %v1640_v8 = vrot.slane %v1628_v11, 4  ;;  %1657 = vst [vmem:[#allocation3 + $0xb0] sm:$0xff] %v1646_v29  ;;  %v2017_v44 = vrot.slane %v2006_v40, 4 }
 0x4f1   : >> { %v1647_v27 = vsel %vm1169_vm15, %v1639_v9, %v1640_v8 }
 0x4f2   : >> { %v2008_v43 = vpop.permute.xlu1 %2007  ;;  %v1648_v37 = vsel %vm5131_vm13, %v1626_v14, %v1647_v27  ;;  %v2010_v22 = vpop.permute.xlu0 %2009  ;;  %vm2373_vm13 = vcmask 261120  }
 0x4f3   : >> { %v2018_v63 = vrot.slane %v2008_v43, 4  ;;  %1658 = vst [vmem:[#allocation3 + $0xd0] sm:$0xff] %v1648_v37  ;;  %v3535_v20 = vcombine.high %v1646_v29, %v1648_v37  ;;  %v3534_v6 = vcombine.low %v1646_v29, %v1648_v37  ;;  %v2019_v7 = vrot.slane %v2010_v22, 4 }
 0x4f5   : >> { %v2025_v45 = vsel %vm1169_vm15, %v2017_v44, %v2018_v63  ;;  %2394 = vmatprep.subr.bf16.mxu0 %v3535_v20 }
 0x4f6   : >> { %v2012_v47 = vpop.permute.xlu1 %2011  ;;  %v2026_v60 = vsel %vm1379_vm8, %v2006_v40, %v2025_v45  ;;  %2395 = vmatpush1.bf16.msra.mxu0 %v3534_v6  ;;  %v1998_v61 = vpop.permute.xlu0 %1997 }
 0x4f7   : >> { %v2020_v2 = vrot.slane %v2012_v47, 4  ;;  %v2013_v52 = vrot.slane %v1998_v61, 4 }
 0x4f9   : >> { %v2027_v23 = vsel %vm1169_vm15, %v2019_v7, %v2020_v2 }
 0x4fa   : >> { %v2000_v41 = vpop.permute.xlu1 %1999  ;;  %v2028_v58 = vsel %vm1379_vm8, %v2010_v22, %v2027_v23  ;;  %v2002_v50 = vpop.permute.xlu0 %2001 }
 0x4fb   : >> { %v2014_v46 = vrot.slane %v2000_v41, 4  ;;  %v3565_v53 = vcombine.high %v2026_v60, %v2028_v58  ;;  %v3564_v54 = vcombine.low %v2026_v60, %v2028_v58  ;;  %v2015_v51 = vrot.slane %v2002_v50, 4 }
 0x4fd   : >> { %v2021_v55 = vsel %vm1169_vm15, %v2013_v52, %v2014_v46  ;;  %2396 = vmatprep.subr.bf16.mxu0 %v3565_v53 }
 0x4fe   : >> { %v2004_v31 = vpop.permute.xlu1 %2003  ;;  %v2022_v56 = vsel %vm1379_vm8, %v1998_v61, %v2021_v55  ;;  %2397 = vmatpush2.bf16.msra.mxu0 %v3564_v54  ;;  %v1950_v15 = vpop.permute.xlu0 %1949 }
 0x4ff   : >> { %v2016_v0 = vrot.slane %v2004_v31, 4  ;;  %v1961_v34 = vrot.slane %v1950_v15, 4 }
 0x501   : >> { %v2023_v42 = vsel %vm1169_vm15, %v2015_v51, %v2016_v0 }
 0x502   : >> { %v1952_v59 = vpop.permute.xlu1 %1951  ;;  %v2024_v1 = vsel %vm1379_vm8, %v2002_v50, %v2023_v42  ;;  %v1954_v43 = vpop.permute.xlu0 %1953 }
 0x503   : >> { %v1962_v33 = vrot.slane %v1952_v59, 4  ;;  %v3563_v11 = vcombine.high %v2022_v56, %v2024_v1  ;;  %v3562_v29 = vcombine.low %v2022_v56, %v2024_v1  ;;  %v1963_v37 = vrot.slane %v1954_v43, 4 }
 0x505   : >> { %v1969_v8 = vsel %vm1169_vm15, %v1961_v34, %v1962_v33  ;;  %2398 = vmatprep.subr.bf16.mxu0 %v3563_v11 }
 0x506   : >> { %v1956_v14 = vpop.permute.xlu1 %1955  ;;  %v1970_v9 = vsel %vm5132_vm10, %v1950_v15, %v1969_v8  ;;  %2399 = vmatpush2.bf16.msra.mxu0 %v3562_v29  ;;  %v1942_v6 = vpop.permute.xlu0 %1941  ;;  %vm5150_vm10 = vcmask (%p1546_p11), 7168  }
 0x507   : >> { %v1964_v27 = vrot.slane %v1956_v14, 4  ;;  %v1957_v45 = vrot.slane %v1942_v6, 4 }
 0x509   : >> { %v1971_v63 = vsel %vm1169_vm15, %v1963_v37, %v1964_v27 }
 0x50a   : >> { %v1944_v40 = vpop.permute.xlu1 %1943  ;;  %v1972_v44 = vsel %vm5133_vm6, %v1954_v43, %v1971_v63  ;;  %v1946_v41 = vpop.permute.xlu0 %1945  ;;  %vm5151_vm6 = vmmov (%p1546_p11), %vm5150_vm10 }
 0x50b   : >> { %v1958_v20 = vrot.slane %v1944_v40, 4  ;;  %v3561_v47 = vcombine.high %v1970_v9, %v1972_v44  ;;  %v3560_v60 = vcombine.low %v1970_v9, %v1972_v44  ;;  %v1959_v58 = vrot.slane %v1946_v41, 4 }
 0x50d   : >> { %v1965_v2 = vsel %vm1169_vm15, %v1957_v45, %v1958_v20  ;;  %2400 = vmatprep.subr.bf16.mxu0 %v3561_v47 }
 0x50e   : >> { %v1948_v22 = vpop.permute.xlu1 %1947  ;;  %v1966_v7 = vsel %vm5134_vm4, %v1942_v6, %v1965_v2  ;;  %2401 = vmatpush2.bf16.msra.mxu0 %v3560_v60  ;;  %v1886_v54 = vpop.permute.xlu0 %1885  ;;  %vm5152_vm4 = vmmov (%p1546_p11), %vm5151_vm6 }
 0x50f   : >> { %v1960_v23 = vrot.slane %v1948_v22, 4  ;;  %v1897_v55 = vrot.slane %v1886_v54, 4 }
 0x511   : >> { %v1967_v46 = vsel %vm1169_vm15, %v1959_v58, %v1960_v23  ;;  %v3749_v23 = vpack.c.bf16 %v4507_v26, %v4515_v25 }
 0x512   : >> { %v1888_v61 = vpop.permute.xlu1 %1887  ;;  %v1968_v52 = vsel %vm5135_vm2, %v1946_v41, %v1967_v46  ;;  %v1890_v59 = vpop.permute.xlu0 %1889  ;;  %vm5153_vm2 = vmmov (%p1546_p11), %vm5152_vm4 }
 0x513   : >> { %v1898_v53 = vrot.slane %v1888_v61, 4  ;;  %v3559_v31 = vcombine.high %v1966_v7, %v1968_v52  ;;  %v3558_v56 = vcombine.low %v1966_v7, %v1968_v52  ;;  %v1899_v1 = vrot.slane %v1890_v59, 4 }
 0x515   : >> { %v1905_v0 = vsel %vm1169_vm15, %v1897_v55, %v1898_v53  ;;  %2402 = vmatprep.subr.bf16.mxu0 %v3559_v31  ;;  %v3750_v53 = vpack.c.bf16 %v4505_v3, %v4509_v24  ;;  %v3751_v55 = vpack.c.bf16 %v4531_v16, %v4519_v28  ;;  %v3737_v28 = vld [vmem:[%s4618_s22] ss:$12 sps:$4 sm:$0xff]  }
 0x516   : >> { %v1892_v50 = vpop.permute.xlu1 %1891  ;;  %v1906_v51 = vsel %vm5136_vm3, %v1886_v54, %v1905_v0  ;;  %2403 = vmatpush2.bf16.msra.mxu0 %v3558_v56  ;;  %v1878_v29 = vpop.permute.xlu0 %1877  ;;  %vm5154_vm3 = vcmask (%p1546_p11), 121856  }
 0x517   : >> { %v1900_v42 = vrot.slane %v1892_v50, 4  ;;  %v1893_v8 = vrot.slane %v1878_v29, 4  ;;  %v3752_v50 = vpack.c.bf16 %v4529_v19, %v4517_v18 }
 0x519   : >> { %v1907_v33 = vsel %vm1169_vm15, %v1899_v1, %v1900_v42 }
 0x51a   : >> { %v1880_v15 = vpop.permute.xlu1 %1879  ;;  %v1908_v34 = vsel %vm5137_vm0, %v1890_v59, %v1907_v33  ;;  %v1882_v40 = vpop.permute.xlu0 %1881  ;;  %vm5155_vm0 = vmmov (%p1546_p11), %vm5154_vm3 }
 0x51b   : >> { %v1894_v11 = vrot.slane %v1880_v15, 4  ;;  %v3557_v14 = vcombine.high %v1906_v51, %v1908_v34  ;;  %v3556_v9 = vcombine.low %v1906_v51, %v1908_v34  ;;  %v1895_v44 = vrot.slane %v1882_v40, 4  ;;  %v3740_v15 = vld [vmem:[%s4618_s22 + $0x1c] ss:$12 sps:$4 sm:$0xff]  }
 0x51d   : >> { %v1901_v27 = vsel %vm1169_vm15, %v1893_v8, %v1894_v11  ;;  %2404 = vmatprep.subr.bf16.mxu0 %v3557_v14  ;;  %v3742_v8 = vld [vmem:[%s4618_s22 + $0x18] ss:$12 sps:$4 sm:$0xff]   ;;  %v3743_v14 = vld [vmem:[%s4618_s22 + $0x8] ss:$12 sps:$4 sm:$0xff]  }
 0x51e   : >> { %v1884_v43 = vpop.permute.xlu1 %1883  ;;  %v1902_v37 = vsel %vm5138_vm7, %v1878_v29, %v1901_v27  ;;  %2405 = vmatpush2.bf16.msra.mxu0 %v3556_v9  ;;  %v2070_v60 = vpop.permute.xlu0 %2069  ;;  %v3744_v9 = vld [vmem:[%s4618_s22 + $0x20] ss:$12 sps:$4 sm:$0xff]   ;;  %s5146_s22 = smov (%p1546_p11), 17   ;;  %vm5156_vm7 = vmmov (%p1546_p11), %vm5155_vm0 }
 0x51f   : >> { %v1896_v63 = vrot.slane %v1884_v43, 4  ;;  %v2081_v2 = vrot.slane %v2070_v60, 4 }
 0x521   : >> { %v1903_v20 = vsel %vm1169_vm15, %v1895_v44, %v1896_v63 }
 0x522   : >> { %v2072_v6 = vpop.permute.xlu1 %2071  ;;  %v1904_v45 = vsel %vm5139_vm14, %v1882_v40, %v1903_v20  ;;  %v2074_v52 = vpop.permute.xlu0 %2073  ;;  %vm5157_vm14 = vmmov (%p1546_p11), %vm5155_vm0 }
 0x523   : >> { %v2082_v47 = vrot.slane %v2072_v6, 4  ;;  %v3555_v22 = vcombine.high %v1902_v37, %v1904_v45  ;;  %v3554_v7 = vcombine.low %v1902_v37, %v1904_v45  ;;  %v2083_v54 = vrot.slane %v2074_v52, 4 }
 0x525   : >> { %v2089_v41 = vsel %vm1169_vm15, %v2081_v2, %v2082_v47  ;;  %2406 = vmatprep.subr.bf16.mxu0 %v3555_v22 }
 0x526   : >> { %v2076_v58 = vpop.permute.xlu1 %2075  ;;  %v2090_v46 = vsel %vm5140_vm12, %v2070_v60, %v2089_v41  ;;  %2407 = vmatpush2.bf16.msra.mxu0 %v3554_v7  ;;  %v2062_v0 = vpop.permute.xlu0 %2061  ;;  %vm5158_vm12 = vcmask (%p1546_p11), 138240  }
 0x527   : >> { %v2084_v61 = vrot.slane %v2076_v58, 4  ;;  %2408 = vmatprep.subr.bf16.mxu0 %v3749_v23  ;;  %v2077_v51 = vrot.slane %v2062_v0, 4 }
 0x529   : >> { %v2091_v26 = vsel %vm1169_vm15, %v2083_v54, %v2084_v61 }
 0x52a   : >> { %v2064_v25 = vpop.permute.xlu1 %2063  ;;  %v2092_v31 = vsel %vm5141_vm5, %v2074_v52, %v2091_v26  ;;  %2409 = vmatpush2.bf16.msra.mxu0 %v3750_v53  ;;  %v2066_v33 = vpop.permute.xlu0 %2065  ;;  %vm5159_vm5 = vmmov (%p1546_p11), %vm5158_vm12 }
 0x52b   : >> { %v2078_v56 = vrot.slane %v2064_v25, 4  ;;  %2410 = vmatprep.subr.bf16.mxu0 %v3751_v55  ;;  %v3569_v3 = vcombine.high %v2090_v46, %v2092_v31  ;;  %v3568_v24 = vcombine.low %v2090_v46, %v2092_v31  ;;  %v2079_v18 = vrot.slane %v2066_v33, 4 }
 0x52d   : >> { %v2085_v42 = vsel %vm1169_vm15, %v2077_v51, %v2078_v56  ;;  %2445 = vmatprep.subr.bf16.mxu1 %v3569_v3 }
 0x52e   : >> { %v2068_v59 = vpop.permute.xlu1 %2067  ;;  %v2086_v16 = vsel %vm5142_vm1, %v2062_v0, %v2085_v42  ;;  %2411 = vmatpush2.bf16.msra.mxu0 %v3752_v50  ;;  %2446 = vmatpush1.bf16.msra.mxu1 %v3568_v24  ;;  %vm5161_vm1 = vmmov (%p1546_p11), %vm5159_vm5 }
 0x52f   : >> { %v2080_v1 = vrot.slane %v2068_v59, 4 }
 0x531   : >> { %v2087_v19 = vsel %vm1169_vm15, %v2079_v18, %v2080_v1  ;;  %2413 = vmatmul.mubr.bf16.vlgmr.msra.gmra.mxu0 %v3737_v28 }
 0x532   : >> { %v2088_v34 = vsel %vm5143_vm9, %v2066_v33, %v2087_v19  ;;  %2422 = vmatprep.mubr.bf16.mxu0 %v3740_v15  ;;  %vm5162_vm9 = vcmask (%p1546_p11), 924672  }
 0x533   : >> { %v3567_v11 = vcombine.high %v2086_v16, %v2088_v34  ;;  %v3566_v29 = vcombine.low %v2086_v16, %v2088_v34 }
 0x535   : >> { %2447 = vmatprep.subr.bf16.mxu1 %v3567_v11 }
 0x536   : >> { %2448 = vmatpush1.bf16.msra.mxu1 %v3566_v29 }
 0x537   : >> { %v2146_v37 = vpop.permute.xlu0 %2145 }
 0x539   : >> { %2423 = vmatmul.mubr.bf16.gmra.mxu0 %v3742_v8  ;;  %3570 = vmatmul.mubr.msk.bf16.vlgmr.msra.gmra.mxu1 %vm2373_vm13, %v3743_v14 }
 0x53a   : >> { %2475 = vmatprep.mubr.bf16.mxu1 %v3847_v48 }
 0x53b   : >> { %v2151_v40 = vpop.permute.xlu1 %2150  ;;  %v2161_v31 = vpop.permute.xlu0 %2160 }
 0x53f   : >> { %v2156_v2 = vpop.permute.xlu1 %2155 }
 0x541   : >> { %3571 = vmatmul.mubr.msk.bf16.gmra.mxu1 %vm2373_vm13, %v3744_v9 }
 0x542   : > { %3347 = vmatprep.mubr.bf16.mxu1 (%p1546_p11), %v3827_v4 }
 0x5f1   : >> { %v2414_v27 = vpop.f32.mrf.mxu0 }
 0x5f2   : >> { %v2415_v44 = vadd.f32 %v2414_v27, %v2146_v37 }
 0x5f3   : >> { %v2416_v43 = vpop.f32.mrf.mxu0 }
 0x5f4   : >> { %v2417_v47 = vadd.f32 %v2416_v43, %v2146_v37 }
 0x5f5   : >> { %v2418_v63 = vpop.f32.mrf.mxu0 }
 0x5f6   : >> { %v2419_v23 = vadd.f32 %v2418_v63, %v2151_v40 }
 0x5f7   : >> { %v2420_v20 = vpop.f32.mrf.mxu0 }
 0x5f8   : >> { %v2421_v46 = vadd.f32 %v2420_v20, %v2151_v40 }
 0x5f9   : >> { %v2424_v6 = vpop.f32.mrf.mxu0  ;;  %v2467_v45 = vpop.f32.mrf.mxu1 }
 0x5fa   : >> { %v2468_v60 = vadd.f32 %v2467_v45, %v2415_v44  ;;  %v2425_v53 = vadd.f32 %v2424_v6, %v2156_v2 }
 0x5fb   : >> { %v2426_v22 = vpop.f32.mrf.mxu0  ;;  %v2469_v7 = vpop.f32.mrf.mxu1 }
 0x5fc   : >> { %v2486_v41 = vmax.f32 %v2468_v60, 0.0  ;;  %v2470_v48 = vadd.f32 %v2469_v7, %v2417_v47  ;;  %v2427_v0 = vadd.f32 %v2426_v22, %v2156_v2 }
 0x5fd   : >> { %v2471_v58 = vpop.f32.mrf.mxu1  ;;  %v2428_v54 = vpop.f32.mrf.mxu0 }
 0x5fe   : >> { %2494 = vst [vmem:[#allocation4] sm:$0xff] %v2486_v41  ;;  %v2487_v61 = vmax.f32 %v2470_v48, 0.0  ;;  %v2472_v52 = vadd.f32 %v2471_v58, %v2419_v23  ;;  %v2429_v42 = vadd.f32 %v2428_v54, %v2161_v31 }
 0x5ff   : >> { %v2473_v55 = vpop.f32.mrf.mxu1  ;;  %v2430_v3 = vpop.f32.mrf.mxu0 }
 0x600   : >> { %2495 = vst [vmem:[#allocation4 + $0x8] sm:$0xff] %v2487_v61  ;;  %v2488_v26 = vmax.f32 %v2472_v52, 0.0  ;;  %v2474_v25 = vadd.f32 %v2473_v55, %v2421_v46  ;;  %v2431_v1 = vadd.f32 %v2430_v3, %v2161_v31 }
 0x601   : >> { %v2477_v56 = vpop.f32.mrf.mxu1 }
 0x602   : >> { %2496 = vst [vmem:[#allocation4 + $0x28] sm:$0xff] %v2488_v26  ;;  %v2489_v50 = vmax.f32 %v2474_v25, 0.0  ;;  %v2478_v51 = vadd.f32 %v2477_v56, %v2425_v53 }
 0x603   : >> { %v2479_v24 = vpop.f32.mrf.mxu1 }
 0x604   : >> { %2497 = vst [vmem:[#allocation4 + $0x38] sm:$0xff] %v2489_v50  ;;  %v2490_v59 = vmax.f32 %v2478_v51, 0.0  ;;  %v2480_v28 = vadd.f32 %v2479_v24, %v2427_v0 }
 0x605   : >> { %v2481_v16 = vpop.f32.mrf.mxu1  ;;  %v4742_v43 = vld [vmem:[#allocation4] sm:$0xff] (%p1546_p11) }
 0x606   : >> { %2498 = vst [vmem:[#allocation4 + $0x10] sm:$0xff] %v2490_v59  ;;  %v2491_v33 = vmax.f32 %v2480_v28, 0.0  ;;  %v2482_v15 = vadd.f32 %v2481_v16, %v2429_v42 }
 0x607   : >> { %v2483_v18 = vpop.f32.mrf.mxu1  ;;  %v4744_v37 = vld [vmem:[#allocation4 + $0x8] sm:$0xff] (%p1546_p11) }
 0x608   : >> { %2499 = vst [vmem:[#allocation4 + $0x30] sm:$0xff] %v2491_v33  ;;  %v2492_v19 = vmax.f32 %v2482_v15, 0.0  ;;  %v2484_v34 = vadd.f32 %v2483_v18, %v2431_v1  ;;  %v4752_v40 = vpack.c.bf16 (%p1546_p11), %v4744_v37, %v4742_v43 }
 0x609   : > { %v4754_v44 = vld [vmem:[#allocation4 + $0x28] sm:$0xff] (%p1546_p11) }
 0x60a   : >> { %2500 = vst [vmem:[#allocation4 + $0x18] sm:$0xff] %v2492_v19  ;;  %v2493_v11 = vmax.f32 %v2484_v34, 0.0  ;;  %2534 = vst [vmem:[#allocation2 + $0x4] sm:$0xff] (%p1546_p11), %v4752_v40 }
 0x60b   : > { %1548 = sbr.rel (!%p1546_p11) target bundleno = 1069 (0x42d), region = 123  ;;  %v4756_v4 = vld [vmem:[#allocation4 + $0x38] sm:$0xff] (%p1546_p11) }
 0x60c   : >> { %2501 = vst [vmem:[#allocation4 + $0x20] sm:$0xff] %v2493_v11  ;;  %v4761_v20 = vpack.c.bf16 (%p1546_p11), %v4756_v4, %v4754_v44 }
 0x60d   : > { %v4732_v14 = vld [vmem:[#allocation4 + $0x10] sm:$0xff] (%p1546_p11) }
 0x60e   : > { %2535 = vst [vmem:[#allocation2 + $0x14] sm:$0xff] (%p1546_p11), %v4761_v20 }
 0x60f   : > { %v4740_v27 = vld [vmem:[#allocation4 + $0x30] sm:$0xff] (%p1546_p11) }
 0x610   : > { %v4748_v63 = vpack.c.bf16 %v4740_v27, %v4732_v14 }
 0x611   : > { %v4728_v29 = vld [vmem:[#allocation4 + $0x18] sm:$0xff]  ;;  %v2725_v41 = vld [vmem:[#allocation2 + $0x8] sm:$0xf]  ;;  %v2724_v48 = vld [vmem:[#allocation2] sm:$0xff] }
 0x612   : > { %2536 = vst [vmem:[#allocation2 + $0x24] sm:$0xff] %v4748_v63  ;;  %v2733_v58 = vmul.bf16 %v2725_v41, %v4286_v5  ;;  %v2732_v46 = vmul.bf16 %v2724_v48, %v4296_v32  ;;  %v2668_v50 = vmul.bf16 %v2724_v48, %v4300_v10  ;;  %v2541_v19 = vld [vmem:[#allocation2 + $0x8] sm:$0xf]  ;;  %v2548_v11 = vmul.bf16 %v2724_v48, %v4305_v21  ;;  %v2867_v41 = vld [vmem:[#allocation2 + $0x3c] sm:$0xf] }
 0x613   : > { %v4730_v8 = vld [vmem:[#allocation4 + $0x20] sm:$0xff]  ;;  %v2549_v34 = vmul.bf16 %v2541_v19, %v4290_v39 }
 0x614   : > { %v4738_v9 = vpack.c.bf16 %v4730_v8, %v4728_v29 }
 0x615   : > { %v2727_v61 = vld [vmem:[#allocation2 + $0x18] sm:$0xf]  ;;  %v2726_v52 = vld [vmem:[#allocation2 + $0x10] sm:$0xff] }
 0x616   : > { %2537 = vst [vmem:[#allocation2 + $0x34] sm:$0xff] %v4738_v9  ;;  %v2735_v53 = vmul.bf16 %v2727_v61, %v4286_v5  ;;  %v2734_v54 = vmul.bf16 %v2726_v52, %v4296_v32  ;;  %v2663_v51 = vld [vmem:[#allocation2 + $0x18] sm:$0xf]  ;;  %v2670_v24 = vmul.bf16 %v2726_v52, %v4300_v10 }
 0x617   : > { %v2671_v3 = vmul.bf16 %v2663_v51, %v4288_v17 }
 0x619   : > { %v2728_v60 = vld [vmem:[#allocation2 + $0x20] sm:$0xff]  ;;  %v2729_v2 = vld [vmem:[#allocation2 + $0x28] sm:$0xf] }
 0x61a   : > { %v2736_v22 = vmul.bf16 %v2728_v60, %v4296_v32  ;;  %v2737_v23 = vmul.bf16 %v2729_v2, %v4286_v5  ;;  %v2665_v55 = vld [vmem:[#allocation2 + $0x28] sm:$0xf]  ;;  %v2672_v25 = vmul.bf16 %v2728_v60, %v4300_v10  ;;  %v2552_v1 = vmul.bf16 %v2728_v60, %v4305_v21  ;;  %v2931_v2 = vld [vmem:[#allocation2 + $0x3c] sm:$0xf] }
 0x61b   : > { %v2673_v26 = vmul.bf16 %v2665_v55, %v4288_v17  ;;  %v2609_v42 = vld [vmem:[#allocation2 + $0x28] sm:$0xf]  ;;  %v2870_v55 = vmul.bf16 %v4761_v20, %v4261_v49 }
 0x61c   : > { %2756 = vrot.lane.b32.xlu0 %v2736_v22, %s3833_s16  ;;  %v2545_v28 = vld [vmem:[#allocation2 + $0x28] sm:$0xf]  ;;  %v2865_v22 = vld [vmem:[#allocation2 + $0x2c] sm:$0xf] }
 0x61d   : > { %v4766_v6 = vld [vmem:[#allocation2 + $0x30] sm:$0xff]  ;;  %v2731_v45 = vld [vmem:[#allocation2 + $0x38] sm:$0xf]  ;;  %v2553_v16 = vmul.bf16 %v2545_v28, %v4290_v39  ;;  %v2981_v28 = vld [vmem:[#allocation2 + $0xc] sm:$0xf] }
 0x61e   : > { %v2738_v47 = vmul.bf16 %v4766_v6, %v4296_v32  ;;  %v2739_v7 = vmul.bf16 %v2731_v45, %v4286_v5  ;;  %v2667_v31 = vld [vmem:[#allocation2 + $0x38] sm:$0xf]  ;;  %v2674_v5 = vmul.bf16 %v4766_v6, %v4300_v10  ;;  %v2661_v32 = vld [vmem:[#allocation2 + $0x8] sm:$0xf]  ;;  %v2554_v18 = vmul.bf16 %v4766_v6, %v4305_v21 }
 0x61f   : > { %v2675_v56 = vmul.bf16 %v2667_v31, %v4288_v17  ;;  %v2669_v0 = vmul.bf16 %v2661_v32, %v4288_v17  ;;  %v2611_v59 = vld [vmem:[#allocation2 + $0x38] sm:$0xf]  ;;  %v2605_v17 = vld [vmem:[#allocation2 + $0x8] sm:$0xf]  ;;  %v2808_v31 = vmul.bf16 %v4748_v63, %v4309_v12 }
 0x620   : > { %2760 = vrot.lane.b32.xlu1 %v2738_v47, %s3833_s16  ;;  %2758 = vrot.lane.b32.xlu0 %v2737_v23, %s3833_s16  ;;  %v2607_v10 = vld [vmem:[#allocation2 + $0x18] sm:$0xf]  ;;  %v2872_v23 = vmul.bf16 %v4748_v63, %v4261_v49 }
 0x621   : > { %v2547_v33 = vld [vmem:[#allocation2 + $0x38] sm:$0xf] }
 0x622   : > { %v2555_v15 = vmul.bf16 %v2547_v33, %v4290_v39  ;;  %v2543_v45 = vld [vmem:[#allocation2 + $0x18] sm:$0xf]  ;;  %v2989_v33 = vmul.bf16 %v2981_v28, %v4341_v30 }
 0x623   : > { %v2551_v47 = vmul.bf16 %v2543_v45, %v4290_v39  ;;  %v2925_v39 = vld [vmem:[#allocation2 + $0xc] sm:$0xf] }
 0x624   : > { %2762 = vrot.lane.b32.xlu1 %v2739_v7, %s3833_s16  ;;  %2748 = vrot.lane.b32.xlu0 %v2732_v46, %s3833_s16  ;;  %v2873_v7 = vmul.bf16 %v2865_v22, %v4256_v62  ;;  %v2861_v46 = vld [vmem:[#allocation2 + $0xc] sm:$0xf] }
 0x625   : > { %v2869_v61 = vmul.bf16 %v2861_v46, %v4256_v62 }
 0x628   : > { %2750 = vrot.lane.b32.xlu1 %v2733_v58, %s3833_s16  ;;  %2752 = vrot.lane.b32.xlu0 %v2734_v54, %s3833_s16  ;;  %v2874_v58 = vmul.bf16 %v4738_v9, %v4261_v49 }
 0x62c   : > { %2754 = vrot.lane.b32.xlu1 %v2735_v53, %s3833_s16  ;;  %2692 = vrot.lane.b32.xlu0 %v2672_v25, %s5144_s13  ;;  %s5145_s16 = smov 16   ;;  %v2863_v53 = vld [vmem:[#allocation2 + $0x1c] sm:$0xf] }
 0x62d   : > { %v2871_v54 = vmul.bf16 %v2863_v53, %v4256_v62 }
 0x630   : > { %2694 = vrot.lane.b32.xlu1 %v2673_v26, %s5144_s13  ;;  %2696 = vrot.lane.b32.xlu0 %v2674_v5, %s5144_s13  ;;  %v2801_v26 = vld [vmem:[#allocation2 + $0x2c] sm:$0xf] }
 0x631   : > { %v2809_v25 = vmul.bf16 %v2801_v26, %v4292_v13  ;;  %v2797_v5 = vld [vmem:[#allocation2 + $0xc] sm:$0xf] }
 0x632   : > { %v2805_v32 = vmul.bf16 %v2797_v5, %v4292_v13 }
 0x634   : > { %2698 = vrot.lane.b32.xlu1 %v2675_v56, %s5144_s13  ;;  %2684 = vrot.lane.b32.xlu0 %v2668_v50, %s5144_s13  ;;  %v2803_v56 = vld [vmem:[#allocation2 + $0x3c] sm:$0xf] }
 0x635   : > { %v2799_v50 = vld [vmem:[#allocation2 + $0x1c] sm:$0xf] }
 0x636   : > { %v2807_v51 = vmul.bf16 %v2799_v50, %v4292_v13 }
 0x638   : > { %2686 = vrot.lane.b32.xlu1 %v2669_v0, %s5144_s13  ;;  %2688 = vrot.lane.b32.xlu0 %v2670_v24, %s5144_s13  ;;  %v2804_v0 = vmul.bf16 %v4752_v40, %v4309_v12  ;;  %v2985_v24 = vld [vmem:[#allocation2 + $0x2c] sm:$0xf] }
 0x63c   : > { %2690 = vrot.lane.b32.xlu1 %v2671_v3, %s5144_s13  ;;  %2628 = vrot.lane.b32.xlu0 %v2728_v60, %s5145_s16  ;;  %v2550_v60 = vmul.bf16 %v2726_v52, %v4305_v21  ;;  %v2927_v21 = vld [vmem:[#allocation2 + $0x1c] sm:$0xf]  ;;  %v2806_v3 = vmul.bf16 %v4761_v20, %v4309_v12 }
 0x640   : > { %2630 = vrot.lane.b32.xlu1 %v2609_v42, %s5145_s16  ;;  %2632 = vrot.lane.b32.xlu0 %v4766_v6, %s5145_s16  ;;  %v2929_v6 = vld [vmem:[#allocation2 + $0x2c] sm:$0xf]  ;;  %v2993_v42 = vmul.bf16 %v2985_v24, %v4341_v30 }
 0x644   : > { %2634 = vrot.lane.b32.xlu1 %v2611_v59, %s5145_s16  ;;  %2620 = vrot.lane.b32.xlu0 %v2724_v48, %s5145_s16  ;;  %v2875_v48 = vmul.bf16 %v2867_v41, %v4256_v62  ;;  %v2811_v62 = vmul.bf16 %v2803_v56, %v4292_v13  ;;  %v2992_v59 = vmul.bf16 %v4748_v63, %v4348_v35 }
 0x648   : > { %2622 = vrot.lane.b32.xlu1 %v2605_v17, %s5145_s16  ;;  %2624 = vrot.lane.b32.xlu0 %v2726_v52, %s5145_s16  ;;  %v2868_v52 = vmul.bf16 %v4752_v40, %v4261_v49  ;;  %v2810_v49 = vmul.bf16 %v4738_v9, %v4309_v12  ;;  %v2987_v17 = vld [vmem:[#allocation2 + $0x3c] sm:$0xf]  ;;  %v2994_v12 = vmul.bf16 %v4738_v9, %v4348_v35 }
 0x649   : > { %v2995_v13 = vmul.bf16 %v2987_v17, %v4341_v30 }
 0x64c   : > { %2626 = vrot.lane.b32.xlu1 %v2607_v10, %s5145_s16  ;;  %2572 = vrot.lane.b32.xlu0 %v2552_v1, %s5146_s22  ;;  %v4888_v10 = vld [vmem:[%s5040_s12] sm:$0xff]  ;;  %s3633_s16 = sshll.u32 %s3951_s7, 5  ;;  %s3848_s7 = smov [#allocation7]  }
 0x64d   : > { %s3761_s13 = sshll.u32 %s3848_s7, 4  ;;  %s3762_s13 = int_to_ptr.vmem [resolvable:$false] %s3761_s13 }
 0x64e   : > { %s3763_s0 = scalar_lea.vmem %s3762_s13, 64 }
 0x650   : > { %2574 = vrot.lane.b32.xlu1 %v2553_v16, %s5146_s22  ;;  %2576 = vrot.lane.b32.xlu0 %v2554_v18, %s5146_s22  ;;  %v3577_v16 = vcombine.high %v4888_v10, %v4888_v10  ;;  %v2983_v18 = vld [vmem:[#allocation2 + $0x1c] sm:$0xf] }
 0x652   : > { %3306 = vmatprep.mubr.bf16.mxu0 %v3577_v16 }
 0x654   : > { %2578 = vrot.lane.b32.xlu1 %v2555_v15, %s5146_s22  ;;  %2564 = vrot.lane.b32.xlu0 %v2548_v11, %s5146_s22  ;;  %v2988_v15 = vmul.bf16 %v4752_v40, %v4348_v35 }
 0x658   : > { %2566 = vrot.lane.b32.xlu1 %v2549_v34, %s5146_s22  ;;  %2568 = vrot.lane.b32.xlu0 %v2550_v60, %s5146_s22  ;;  %v2991_v60 = vmul.bf16 %v2983_v18, %v4341_v30 }
 0x65c   : > { %2570 = vrot.lane.b32.xlu1 %v2551_v47, %s5146_s22  ;;  %2948 = vrot.lane.b32.xlu0 %v4748_v63, %s5147_s19  ;;  %s3406_s22 = sshll.u32 %s475_s24, 4  ;;  %s3407_s22 = int_to_ptr.vmem [resolvable:$true] %s3406_s22 }
 0x65d   : > { %p3764_p1 = scmp.lt.s32.totalorder %s3407_s22, %s3762_s13 }
 0x660   : > { %2950 = vrot.lane.b32.xlu1 %v2929_v6, %s5147_s19  ;;  %2952 = vrot.lane.b32.xlu0 %v4738_v9, %s5147_s19 }
 0x664   : > { %2954 = vrot.lane.b32.xlu1 %v2931_v2, %s5147_s19  ;;  %2940 = vrot.lane.b32.xlu0 %v4752_v40, %s5147_s19  ;;  %v2990_v2 = vmul.bf16 %v4761_v20, %v4348_v35  ;;  %v3356_v35 = vld [vmem:[#allocation6] sm:$0x1] }
 0x668   : > { %2942 = vrot.lane.b32.xlu1 %v2925_v39, %s5147_s19  ;;  %2944 = vrot.lane.b32.xlu0 %v4761_v20, %s5147_s19 }
 0x66c   : > { %2946 = vrot.lane.b32.xlu1 %v2927_v21, %s5147_s19  ;;  %2892 = vrot.lane.b32.xlu0 %v2872_v23, %s5148_s27 }
 0x670   : > { %2894 = vrot.lane.b32.xlu1 %v2873_v7, %s5148_s27  ;;  %2896 = vrot.lane.b32.xlu0 %v2874_v58, %s5148_s27 }
 0x674   : > { %2898 = vrot.lane.b32.xlu1 %v2875_v48, %s5148_s27  ;;  %2884 = vrot.lane.b32.xlu0 %v2868_v52, %s5148_s27 }
 0x678   : > { %2886 = vrot.lane.b32.xlu1 %v2869_v61, %s5148_s27  ;;  %2888 = vrot.lane.b32.xlu0 %v2870_v55, %s5148_s27 }
 0x67c   : > { %2890 = vrot.lane.b32.xlu1 %v2871_v54, %s5148_s27  ;;  %2828 = vrot.lane.b32.xlu0 %v2808_v31, %s5149_s15 }
 0x680   : > { %2830 = vrot.lane.b32.xlu1 %v2809_v25, %s5149_s15  ;;  %2832 = vrot.lane.b32.xlu0 %v2810_v49, %s5149_s15 }
 0x684   : > { %2834 = vrot.lane.b32.xlu1 %v2811_v62, %s5149_s15  ;;  %2820 = vrot.lane.b32.xlu0 %v2804_v0, %s5149_s15 }
 0x688   : > { %2822 = vrot.lane.b32.xlu1 %v2805_v32, %s5149_s15  ;;  %2824 = vrot.lane.b32.xlu0 %v2806_v3, %s5149_s15 }
 0x68c   : > { %2826 = vrot.lane.b32.xlu1 %v2807_v51, %s5149_s15  ;;  %3012 = vrot.lane.b32.xlu0 %v2992_v59, %s3831_s30  ;;  %s3404_s15 = scalar_lea.hbm %s5041_s14, %s3633_s16 }
 0x68e   : > { %v2757_v1 = vpop.permute.xlu0 %2756 }
 0x68f   : > { %v2768_v45 = vrot.slane %v2757_v1, 4 }
 0x690   : > { %3014 = vrot.lane.b32.xlu1 %v2993_v42, %s3831_s30  ;;  %3016 = vrot.lane.b32.xlu0 %v2994_v12, %s3831_s30 }
 0x692   : > { %v2761_v63 = vpop.permute.xlu1 %2760  ;;  %v2759_v11 = vpop.permute.xlu0 %2758 }
 0x693   : > { %v2770_v34 = vrot.slane %v2761_v63, 4  ;;  %v2769_v47 = vrot.slane %v2759_v11, 4 }
 0x694   : > { %3018 = vrot.lane.b32.xlu1 %v2995_v13, %s3831_s30  ;;  %3004 = vrot.lane.b32.xlu0 %v2988_v15, %s3831_s30 }
 0x695   : > { %v2776_v39 = vsel %vm1169_vm15, %v2768_v45, %v2769_v47 }
 0x696   : > { %v2763_v19 = vpop.permute.xlu1 %2762  ;;  %v2777_v22 = vsel %vm5151_vm6, %v2757_v1, %v2776_v39  ;;  %v2749_v23 = vpop.permute.xlu0 %2748 }
 0x697   : > { %v2771_v9 = vrot.slane %v2763_v19, 4  ;;  %v2764_v41 = vrot.slane %v2749_v23, 4 }
 0x698   : > { %3006 = vrot.lane.b32.xlu1 %v2989_v33, %s3831_s30  ;;  %3008 = vrot.lane.b32.xlu0 %v2990_v2, %s3831_s30 }
 0x699   : > { %v2778_v6 = vsel %vm1169_vm15, %v2770_v34, %v2771_v9 }
 0x69a   : > { %v2779_v40 = vsel %vm5150_vm10, %v2761_v63, %v2778_v6  ;;  %v2751_v21 = vpop.permute.xlu1 %2750  ;;  %v2753_v52 = vpop.permute.xlu0 %2752  ;;  %vm5163_vm10 = vmmov %vm5162_vm9 }
 0x69b   : > { %v2765_v7 = vrot.slane %v2751_v21, 4  ;;  %v3594_v30 = vcombine.high %v2777_v22, %v2779_v40  ;;  %v3593_v48 = vcombine.low %v2777_v22, %v2779_v40  ;;  %v2766_v53 = vrot.slane %v2753_v52, 4 }
 0x69c   : > { %3010 = vrot.lane.b32.xlu1 %v2991_v60, %s3831_s30  ;;  %3359 = vperm.xlu0 %3745, %v3356_v35   ;;  %s3757_s30 = scalar_lea.vmem %s3407_s22, 32 }
 0x69d   : > { %v2772_v58 = vsel %vm1169_vm15, %v2764_v41, %v2765_v7  ;;  %3274 = vmatprep.subr.bf16.mxu0 %v3594_v30  ;;  %p3758_p12 = scmp.ne.s32.totalorder %s3407_s22, %s3757_s30  ;;  %p3765_p2 = scmp.lt.s32.totalorder %s3763_s0, %s3757_s30 }
 0x69e   : > { %v2755_v46 = vpop.permute.xlu1 %2754  ;;  %v2773_v20 = vsel %vm5152_vm4, %v2749_v23, %v2772_v58  ;;  %3275 = vmatpush1.bf16.msra.mxu0 %v3593_v48  ;;  %v2693_v31 = vpop.permute.xlu0 %2692  ;;  %vm5166_vm4 = vcmask 1039360  }
 0x69f   : > { %v2767_v61 = vrot.slane %v2755_v46, 4  ;;  %v2704_v56 = vrot.slane %v2693_v31, 4  ;;  %p3759_p13 = pnand %p3758_p12, %p3968_p5  ;;  %p3766_p3 = por %p3765_p2, %p3764_p1 }
 0x6a1   : > { %v2774_v54 = vsel %vm1169_vm15, %v2766_v53, %v2767_v61  ;;  %p3760_p0 = pneg %p3759_p13 }
 0x6a2   : > { %v2695_v55 = vpop.permute.xlu1 %2694  ;;  %v2775_v26 = vsel %vm5153_vm2, %v2753_v52, %v2774_v54  ;;  %v2697_v51 = vpop.permute.xlu0 %2696  ;;  %vm5167_vm2 = vmmov %vm5166_vm4 }
 0x6a3   : > { %v2705_v25 = vrot.slane %v2695_v55, 4  ;;  %v3592_v62 = vcombine.high %v2773_v20, %v2775_v26  ;;  %v3591_v49 = vcombine.low %v2773_v20, %v2775_v26  ;;  %v2706_v3 = vrot.slane %v2697_v51, 4  ;;  %p3767_p4 = pnand %p3766_p3, %p3760_p0 }
 0x6a5   : > { %v2712_v5 = vsel %vm1169_vm15, %v2704_v56, %v2705_v25  ;;  %3276 = vmatprep.subr.bf16.mxu0 %v3592_v62 }
 0x6a6   : > { %v2699_v32 = vpop.permute.xlu1 %2698  ;;  %v2713_v0 = vsel %vm5154_vm3, %v2693_v31, %v2712_v5  ;;  %3277 = vmatpush1.bf16.msra.mxu0 %v3591_v49  ;;  %v2685_v13 = vpop.permute.xlu0 %2684  ;;  %vm5168_vm3 = vmmov %vm5167_vm2 }
 0x6a7   : > { %v2707_v50 = vrot.slane %v2699_v32, 4  ;;  %v2700_v12 = vrot.slane %v2685_v13, 4 }
 0x6a9   : > { %v2714_v24 = vsel %vm1169_vm15, %v2706_v3, %v2707_v50 }
 0x6aa   : > { %v2687_v42 = vpop.permute.xlu1 %2686  ;;  %v2715_v59 = vsel %vm5155_vm0, %v2697_v51, %v2714_v24  ;;  %v2689_v18 = vpop.permute.xlu0 %2688  ;;  %vm5169_vm0 = vmmov %vm5167_vm2 }
 0x6ab   : > { %v2701_v17 = vrot.slane %v2687_v42, 4  ;;  %v3590_v28 = vcombine.high %v2713_v0, %v2715_v59  ;;  %v3589_v16 = vcombine.low %v2713_v0, %v2715_v59  ;;  %v2702_v19 = vrot.slane %v2689_v18, 4 }
 0x6ad   : > { %v2708_v63 = vsel %vm1169_vm15, %v2700_v12, %v2701_v17  ;;  %3278 = vmatprep.subr.bf16.mxu0 %v3590_v28 }
 0x6ae   : > { %v2691_v1 = vpop.permute.xlu1 %2690  ;;  %v2709_v33 = vsel %vm5156_vm7, %v2685_v13, %v2708_v63  ;;  %3279 = vmatpush1.bf16.msra.mxu0 %v3589_v16  ;;  %v2629_v47 = vpop.permute.xlu0 %2628  ;;  %vm5170_vm7 = vcmask 908288  }
 0x6af   : > { %v2703_v15 = vrot.slane %v2691_v1, 4  ;;  %v2640_v60 = vrot.slane %v2629_v47, 4 }
 0x6b1   : > { %v2710_v34 = vsel %vm1169_vm15, %v2702_v19, %v2703_v15 }
 0x6b2   : > { %v2631_v9 = vpop.permute.xlu1 %2630  ;;  %v2711_v11 = vsel %vm5157_vm14, %v2689_v18, %v2710_v34  ;;  %v2633_v7 = vpop.permute.xlu0 %2632  ;;  %vm5171_vm14 = vmmov %vm5170_vm7 }
 0x6b3   : > { %v2641_v45 = vrot.slane %v2631_v9, 4  ;;  %v3588_v6 = vcombine.high %v2709_v33, %v2711_v11  ;;  %v3587_v2 = vcombine.low %v2709_v33, %v2711_v11  ;;  %v2642_v23 = vrot.slane %v2633_v7, 4 }
 0x6b5   : > { %v2648_v40 = vsel %vm1169_vm15, %v2640_v60, %v2641_v45  ;;  %3280 = vmatprep.subr.bf16.mxu0 %v3588_v6 }
 0x6b6   : > { %v2635_v39 = vpop.permute.xlu1 %2634  ;;  %v2649_v21 = vsel %vm1192_vm11, %v2629_v47, %v2648_v40  ;;  %3281 = vmatpush1.bf16.msra.mxu0 %v3587_v2  ;;  %v2621_v46 = vpop.permute.xlu0 %2620 }
 0x6b7   : > { %v2643_v22 = vrot.slane %v2635_v39, 4  ;;  %v2636_v35 = vrot.slane %v2621_v46, 4 }
 0x6b9   : > { %v2650_v41 = vsel %vm1169_vm15, %v2642_v23, %v2643_v22 }
 0x6ba   : > { %v2623_v30 = vpop.permute.xlu1 %2622  ;;  %v2651_v48 = vsel %vm1192_vm11, %v2633_v7, %v2650_v41  ;;  %v2625_v26 = vpop.permute.xlu0 %2624 }
 0x6bb   : > { %v2637_v58 = vrot.slane %v2623_v30, 4  ;;  %v3586_v20 = vcombine.high %v2649_v21, %v2651_v48  ;;  %v3585_v61 = vcombine.low %v2649_v21, %v2651_v48  ;;  %v2638_v25 = vrot.slane %v2625_v26, 4 }
 0x6bd   : > { %v2644_v52 = vsel %vm1169_vm15, %v2636_v35, %v2637_v58  ;;  %3282 = vmatprep.subr.bf16.mxu0 %v3586_v20 }
 0x6be   : > { %v2627_v53 = vpop.permute.xlu1 %2626  ;;  %v2645_v54 = vsel %vm1192_vm11, %v2621_v46, %v2644_v52  ;;  %3283 = vmatpush1.bf16.msra.mxu0 %v3585_v61  ;;  %v2573_v5 = vpop.permute.xlu0 %2572 }
 0x6bf   : > { %v2639_v55 = vrot.slane %v2627_v53, 4  ;;  %v2584_v32 = vrot.slane %v2573_v5, 4 }
 0x6c1   : > { %v2646_v31 = vsel %vm1169_vm15, %v2638_v25, %v2639_v55 }
 0x6c2   : > { %v2575_v56 = vpop.permute.xlu1 %2574  ;;  %v2647_v62 = vsel %vm1192_vm11, %v2625_v26, %v2646_v31  ;;  %v2577_v59 = vpop.permute.xlu0 %2576  ;;  %vm5160_vm11 = vmmov %vm5159_vm5 }
 0x6c3   : > { %v2585_v49 = vrot.slane %v2575_v56, 4  ;;  %v3584_v0 = vcombine.high %v2645_v54, %v2647_v62  ;;  %v3583_v50 = vcombine.low %v2645_v54, %v2647_v62  ;;  %v2586_v17 = vrot.slane %v2577_v59, 4 }
 0x6c5   : > { %v2592_v51 = vsel %vm1169_vm15, %v2584_v32, %v2585_v49  ;;  %3284 = vmatprep.subr.bf16.mxu0 %v3584_v0 }
 0x6c6   : > { %v2579_v3 = vpop.permute.xlu1 %2578  ;;  %v2593_v24 = vsel %vm5158_vm12, %v2573_v5, %v2592_v51  ;;  %3285 = vmatpush1.bf16.msra.mxu0 %v3583_v50  ;;  %v2565_v63 = vpop.permute.xlu0 %2564  ;;  %vm5172_vm12 = vmmov %vm5170_vm7 }
 0x6c7   : > { %v2587_v42 = vrot.slane %v2579_v3, 4  ;;  %v2580_v1 = vrot.slane %v2565_v63, 4 }
 0x6c9   : > { %v2594_v13 = vsel %vm1169_vm15, %v2586_v17, %v2587_v42 }
 0x6ca   : > { %v2567_v12 = vpop.permute.xlu1 %2566  ;;  %v2595_v28 = vsel %vm5159_vm5, %v2577_v59, %v2594_v13  ;;  %v2569_v11 = vpop.permute.xlu0 %2568  ;;  %vm5173_vm5 = vmmov %vm5170_vm7 }
 0x6cb   : > { %v2581_v16 = vrot.slane %v2567_v12, 4  ;;  %v3582_v33 = vcombine.high %v2593_v24, %v2595_v28  ;;  %v3581_v15 = vcombine.low %v2593_v24, %v2595_v28  ;;  %v2582_v45 = vrot.slane %v2569_v11, 4 }
 0x6cd   : > { %v2588_v18 = vsel %vm1169_vm15, %v2580_v1, %v2581_v16  ;;  %3286 = vmatprep.subr.bf16.mxu0 %v3582_v33 }
 0x6ce   : > { %v2571_v19 = vpop.permute.xlu1 %2570  ;;  %v2589_v34 = vsel %vm5160_vm11, %v2565_v63, %v2588_v18  ;;  %3287 = vmatpush1.bf16.msra.mxu0 %v3581_v15  ;;  %v2949_v40 = vpop.permute.xlu0 %2948 }
 0x6cf   : > { %v2583_v9 = vrot.slane %v2571_v19, 4  ;;  %2600 = vst [vmem:[#allocation3 + $0xb0] sm:$0xff] %v2589_v34  ;;  %v2960_v39 = vrot.slane %v2949_v40, 4 }
 0x6d1   : > { %v2590_v47 = vsel %vm1169_vm15, %v2582_v45, %v2583_v9 }
 0x6d2   : > { %v2951_v60 = vpop.permute.xlu1 %2950  ;;  %v2591_v6 = vsel %vm5161_vm1, %v2569_v11, %v2590_v47  ;;  %v2953_v48 = vpop.permute.xlu0 %2952 }
 0x6d3   : > { %v2961_v2 = vrot.slane %v2951_v60, 4  ;;  %2601 = vst [vmem:[#allocation3 + $0xd0] sm:$0xff] %v2591_v6  ;;  %v3580_v21 = vcombine.high %v2589_v34, %v2591_v6  ;;  %v3579_v22 = vcombine.low %v2589_v34, %v2591_v6  ;;  %v2962_v58 = vrot.slane %v2953_v48, 4 }
 0x6d5   : > { %v2968_v7 = vsel %vm1169_vm15, %v2960_v39, %v2961_v2  ;;  %3288 = vmatprep.subr.bf16.mxu0 %v3580_v21 }
 0x6d6   : > { %v2955_v23 = vpop.permute.xlu1 %2954  ;;  %v2969_v41 = vsel %vm1379_vm8, %v2949_v40, %v2968_v7  ;;  %3289 = vmatpush1.bf16.msra.mxu0 %v3579_v22  ;;  %v2941_v52 = vpop.permute.xlu0 %2940 }
 0x6d7   : > { %v2963_v30 = vrot.slane %v2955_v23, 4  ;;  %v2956_v53 = vrot.slane %v2941_v52, 4 }
 0x6d9   : > { %v2970_v46 = vsel %vm1169_vm15, %v2962_v58, %v2963_v30 }
 0x6da   : > { %v2943_v35 = vpop.permute.xlu1 %2942  ;;  %v2971_v20 = vsel %vm1379_vm8, %v2953_v48, %v2970_v46  ;;  %v2945_v62 = vpop.permute.xlu0 %2944 }
 0x6db   : > { %v2957_v61 = vrot.slane %v2943_v35, 4  ;;  %v3610_v54 = vcombine.high %v2969_v41, %v2971_v20  ;;  %v3609_v55 = vcombine.low %v2969_v41, %v2971_v20  ;;  %v2958_v49 = vrot.slane %v2945_v62, 4 }
 0x6dd   : > { %v2964_v26 = vsel %vm1169_vm15, %v2956_v53, %v2957_v61  ;;  %3290 = vmatprep.subr.bf16.mxu0 %v3610_v54 }
 0x6de   : > { %v2947_v25 = vpop.permute.xlu1 %2946  ;;  %v2965_v31 = vsel %vm1379_vm8, %v2941_v52, %v2964_v26  ;;  %3291 = vmatpush2.bf16.msra.mxu0 %v3609_v55  ;;  %v2893_v51 = vpop.permute.xlu0 %2892 }
 0x6df   : > { %v2959_v56 = vrot.slane %v2947_v25, 4  ;;  %v2904_v3 = vrot.slane %v2893_v51, 4 }
 0x6e1   : > { %v2966_v5 = vsel %vm1169_vm15, %v2958_v49, %v2959_v56 }
 0x6e2   : > { %v2895_v32 = vpop.permute.xlu1 %2894  ;;  %v2967_v0 = vsel %vm1379_vm8, %v2945_v62, %v2966_v5  ;;  %v2897_v28 = vpop.permute.xlu0 %2896  ;;  %vm5164_vm8 = vmmov %vm5162_vm9 }
 0x6e3   : > { %v2905_v50 = vrot.slane %v2895_v32, 4  ;;  %v3608_v24 = vcombine.high %v2965_v31, %v2967_v0  ;;  %v3607_v42 = vcombine.low %v2965_v31, %v2967_v0  ;;  %v2906_v16 = vrot.slane %v2897_v28, 4  ;;  %vm5165_vm6 = vmmov %vm5164_vm8 }
 0x6e5   : > { %v2912_v59 = vsel %vm1169_vm15, %v2904_v3, %v2905_v50  ;;  %3292 = vmatprep.subr.bf16.mxu0 %v3608_v24 }
 0x6e6   : > { %v2899_v17 = vpop.permute.xlu1 %2898  ;;  %v2913_v13 = vsel %vm5162_vm9, %v2893_v51, %v2912_v59  ;;  %3293 = vmatpush2.bf16.msra.mxu0 %v3607_v42  ;;  %v2885_v18 = vpop.permute.xlu0 %2884 }
 0x6e7   : > { %v2907_v12 = vrot.slane %v2899_v17, 4  ;;  %v2900_v19 = vrot.slane %v2885_v18, 4 }
 0x6e9   : > { %v2914_v63 = vsel %vm1169_vm15, %v2906_v16, %v2907_v12 }
 0x6ea   : > { %v2887_v1 = vpop.permute.xlu1 %2886  ;;  %v2915_v33 = vsel %vm5163_vm10, %v2897_v28, %v2914_v63  ;;  %v2889_v6 = vpop.permute.xlu0 %2888  ;;  %v3753_v28 = vpack.c.bf16 %v4730_v8, %v4740_v27 }
 0x6eb   : > { %v2901_v15 = vrot.slane %v2887_v1, 4  ;;  %v3606_v34 = vcombine.high %v2913_v13, %v2915_v33  ;;  %v3605_v9 = vcombine.low %v2913_v13, %v2915_v33  ;;  %v2902_v2 = vrot.slane %v2889_v6, 4 }
 0x6ed   : > { %v2908_v11 = vsel %vm1169_vm15, %v2900_v19, %v2901_v15  ;;  %3294 = vmatprep.subr.bf16.mxu0 %v3606_v34  ;;  %v3755_v34 = vpack.c.bf16 %v4756_v4, %v4744_v37  ;;  %v3576_v37 = vcombine.low %v4888_v10, %v4888_v10 }
 0x6ee   : > { %v2891_v45 = vpop.permute.xlu1 %2890  ;;  %v2909_v47 = vsel %vm5164_vm8, %v2885_v18, %v2908_v11  ;;  %3295 = vmatpush2.bf16.msra.mxu0 %v3605_v9  ;;  %v2829_v7 = vpop.permute.xlu0 %2828  ;;  %v3754_v18 = vpack.c.bf16 %v4728_v29, %v4732_v14 }
 0x6ef   : > { %v2903_v60 = vrot.slane %v2891_v45, 4  ;;  %v2840_v23 = vrot.slane %v2829_v7, 4 }
 0x6f1   : > { %v2910_v40 = vsel %vm1169_vm15, %v2902_v2, %v2903_v60 }
 0x6f2   : > { %v2831_v39 = vpop.permute.xlu1 %2830  ;;  %v2911_v21 = vsel %vm5165_vm6, %v2889_v6, %v2910_v40  ;;  %v2833_v20 = vpop.permute.xlu0 %2832 }
 0x6f3   : > { %v2841_v22 = vrot.slane %v2831_v39, 4  ;;  %v3604_v41 = vcombine.high %v2909_v47, %v2911_v21  ;;  %v3603_v30 = vcombine.low %v2909_v47, %v2911_v21  ;;  %v2842_v61 = vrot.slane %v2833_v20, 4 }
 0x6f4   : > { %v3756_v47 = vpack.c.bf16 %v4754_v44, %v4742_v43 }
 0x6f5   : > { %v2848_v48 = vsel %vm1169_vm15, %v2840_v23, %v2841_v22  ;;  %3296 = vmatprep.subr.bf16.mxu0 %v3604_v41  ;;  %v3748_v23 = vld [vmem:[%s5040_s12 + $0x8] ss:$0 sps:$4 sm:$0xff]  }
 0x6f6   : > { %v2835_v58 = vpop.permute.xlu1 %2834  ;;  %v2849_v46 = vsel %vm5166_vm4, %v2829_v7, %v2848_v48  ;;  %3297 = vmatpush2.bf16.msra.mxu0 %v3603_v30  ;;  %v2821_v26 = vpop.permute.xlu0 %2820 }
 0x6f7   : > { %v2843_v35 = vrot.slane %v2835_v58, 4  ;;  %v2836_v25 = vrot.slane %v2821_v26, 4 }
 0x6f9   : > { %v2850_v52 = vsel %vm1169_vm15, %v2842_v61, %v2843_v35 }
 0x6fa   : > { %v2823_v53 = vpop.permute.xlu1 %2822  ;;  %v2851_v54 = vsel %vm5167_vm2, %v2833_v20, %v2850_v52  ;;  %v2825_v0 = vpop.permute.xlu0 %2824 }
 0x6fb   : > { %v2837_v55 = vrot.slane %v2823_v53, 4  ;;  %v3602_v31 = vcombine.high %v2849_v46, %v2851_v54  ;;  %v3601_v56 = vcombine.low %v2849_v46, %v2851_v54  ;;  %v2838_v50 = vrot.slane %v2825_v0, 4 }
 0x6fd   : > { %v2844_v62 = vsel %vm1169_vm15, %v2836_v25, %v2837_v55  ;;  %3298 = vmatprep.subr.bf16.mxu0 %v3602_v31 }
 0x6fe   : > { %v2827_v49 = vpop.permute.xlu1 %2826  ;;  %v2845_v5 = vsel %vm5168_vm3, %v2821_v26, %v2844_v62  ;;  %3299 = vmatpush2.bf16.msra.mxu0 %v3601_v56  ;;  %v3013_v59 = vpop.permute.xlu0 %3012 }
 0x6ff   : > { %v2839_v32 = vrot.slane %v2827_v49, 4  ;;  %v3024_v17 = vrot.slane %v3013_v59, 4 }
 0x701   : > { %v2846_v51 = vsel %vm1169_vm15, %v2838_v50, %v2839_v32 }
 0x702   : > { %v3015_v3 = vpop.permute.xlu1 %3014  ;;  %v2847_v24 = vsel %vm5169_vm0, %v2825_v0, %v2846_v51  ;;  %v3017_v15 = vpop.permute.xlu0 %3016 }
 0x703   : > { %v3025_v42 = vrot.slane %v3015_v3, 4  ;;  %v3600_v13 = vcombine.high %v2845_v5, %v2847_v24  ;;  %v3599_v12 = vcombine.low %v2845_v5, %v2847_v24  ;;  %v3026_v19 = vrot.slane %v3017_v15, 4 }
 0x705   : > { %v3032_v16 = vsel %vm1169_vm15, %v3024_v17, %v3025_v42  ;;  %3300 = vmatprep.subr.bf16.mxu0 %v3600_v13 }
 0x706   : > { %v3019_v63 = vpop.permute.xlu1 %3018  ;;  %v3033_v1 = vsel %vm5170_vm7, %v3013_v59, %v3032_v16  ;;  %3301 = vmatpush2.bf16.msra.mxu0 %v3599_v12  ;;  %v3005_v45 = vpop.permute.xlu0 %3004 }
 0x707   : > { %v3027_v33 = vrot.slane %v3019_v63, 4  ;;  %3302 = vmatprep.subr.bf16.mxu0 %v3753_v28  ;;  %v3020_v60 = vrot.slane %v3005_v45, 4 }
 0x709   : > { %v3034_v9 = vsel %vm1169_vm15, %v3026_v19, %v3027_v33 }
 0x70a   : > { %v3007_v8 = vpop.permute.xlu1 %3006  ;;  %v3035_v27 = vsel %vm5171_vm14, %v3017_v15, %v3034_v9  ;;  %3303 = vmatpush2.bf16.msra.mxu0 %v3754_v18  ;;  %v3009_v39 = vpop.permute.xlu0 %3008 }
 0x70b   : > { %v3021_v11 = vrot.slane %v3007_v8, 4  ;;  %v3614_v6 = vcombine.high %v3033_v1, %v3035_v27  ;;  %v3613_v2 = vcombine.low %v3033_v1, %v3035_v27  ;;  %3304 = vmatprep.subr.bf16.mxu0 %v3755_v34  ;;  %v3022_v21 = vrot.slane %v3009_v39, 4 }
 0x70d   : > { %v3028_v29 = vsel %vm1169_vm15, %v3020_v60, %v3021_v11  ;;  %3327 = vmatprep.subr.bf16.mxu1 %v3614_v6 }
 0x70e   : > { %v3011_v14 = vpop.permute.xlu1 %3010  ;;  %v3029_v4 = vsel %vm5172_vm12, %v3005_v45, %v3028_v29  ;;  %3328 = vmatpush1.bf16.msra.mxu1 %v3613_v2  ;;  %3305 = vmatpush2.bf16.msra.mxu0 %v3756_v47 }
 0x70f   : > { %v3023_v40 = vrot.slane %v3011_v14, 4 }
 0x711   : > { %v3030_v43 = vsel %vm1169_vm15, %v3022_v21, %v3023_v40  ;;  %3307 = vmatmul.mubr.bf16.vlgmr.msra.gmra.mxu0 %v3576_v37  ;;  %vm3388_vm15 = vcmp.lt.s32.totalorder %v485_v36, 256 }
 0x712   : > { %v3031_v44 = vsel %vm5173_vm5, %v3009_v39, %v3030_v43 }
 0x713   : > { %v3612_v22 = vcombine.high %v3029_v4, %v3031_v44  ;;  %v3611_v7 = vcombine.low %v3029_v4, %v3031_v44 }
 0x715   : > { %3329 = vmatprep.subr.bf16.mxu1 %v3612_v22 }
 0x716   : > { %3330 = vmatpush1.bf16.msra.mxu1 %v3611_v7 }
 0x717   : > { %v3360_v58 = vpop.permute.xlu0 %3359 }
 0x718   : > { %v3365_v20 = vrot.slane %v3360_v58, %v4105_v38 }
 0x719   : > { %3615 = vmatmul.mubr.msk.bf16.vlgmr.msra.gmra.mxu1 %vm2373_vm13, %v3748_v23 }
 0x7d1   : > { %v3308_v10 = vpop.f32.mrf.mxu0 }
 0x7d3   : > { %v3310_v41 = vpop.f32.mrf.mxu0 }
 0x7d5   : > { %v3312_v30 = vpop.f32.mrf.mxu0 }
 0x7d7   : > { %v3313_v48 = vpop.f32.mrf.mxu0 }
 0x7d9   : > { %v3349_v46 = vpop.f32.mrf.mxu1 }
 0x7da   : > { %v3350_v35 = vadd.f32 %v3349_v46, %v3308_v10 }
 0x7db   : > { %v3351_v61 = vpop.f32.mrf.mxu1 }
 0x7dc   : > { %v3352_v52 = vadd.f32 %v3351_v61, %v3310_v41  ;;  %v3366_v54 = vadd.f32 %v3365_v20, %v3350_v35 }
 0x7dd   : > { %v3353_v53 = vpop.f32.mrf.mxu1 }
 0x7de   : > { %v3367_v55 = vadd.f32 %v3365_v20, %v3352_v52 }
 0x7df   : > { %v3354_v26 = vpop.f32.mrf.mxu1 }
 0x7e0   : > { %v3370_v25 = vcombine.low %v3366_v54, %v3367_v55 }
 0x7e2   : > { %v3377_v31 = vrot.slane %v3370_v25, %v4266_v57 }
 0x7e4   : > { %v3384_v56 = vrot.slane %v3377_v31, %v4266_v57 }
 0x7e6   : > { %3390 = vst.msk [vmem:[%s475_s24] sm:$0x3] %vm3388_vm15, %v3384_v56 }
 0x7e7   : > { %3770 = shalt.err (!%p3767_p4)
}
 0x7e8   : > { %s3771_s16 = scalar_lea.hbm %s3404_s15, 32  ;;  %s3775_s19 = scalar_lea.hbm %s5041_s14, 64 }
 0x7e9   : > { %p3772_p7 = scmp.ne.s32.totalorder %s3404_s15, %s3771_s16  ;;  %p3776_p10 = scmp.lt.s32.totalorder %s3404_s15, %s5041_s14 }
 0x7ea   : > { %p3777_p11 = scmp.lt.s32.totalorder %s3775_s19, %s3771_s16 }
 0x7eb   : > { %p3773_p8 = pnand %p3772_p7, %p3968_p5 }
 0x7ec   : > { %p3778_p12 = por %p3777_p11, %p3776_p10 }
 0x7ed   : > { %p3774_p9 = pneg %p3773_p8 }
 0x7ef   : > { %p3779_p13 = pnand %p3778_p12, %p3774_p9 }
 0x7f1   : > { %3782 = shalt.err (!%p3779_p13)
}
 0x7f2   : > { %3634 = dma.vmem_to_hbm [thread:$0]  (%p3968_p5), %s3407_s22, 32, %s3404_s15, %s3392_s29  }
 0x7f3 PF: > { %p3640_p0 = scmp.ge.s32.totalorder %s3821_s20, 2  ;;  %s3418_s0 = sand.u32 1, %s3809_s17  }
 0x7f4   : > { %s3419_s30 = scalar_lea.sflag [#allocation8], %s3418_s0 }
 0x7f5   : > { %p3637_p1 = pnand %p3640_p0, %p3972_p6 }
 0x7f7   : > { %p3638_p2 = pneg %p3637_p1 }
 0x7f9   : > { %3804 = dma.done.wait (%p3638_p2), %s3419_s30, 32  }
 0x7fa   : > { %3806 = vsyncadd (%p3638_p2), %s3419_s30, 4294967264  ;;  %s5175_s7 = sld [smem:[#allocation10_spill]]  ;;  %p28_p3 = scmp.ge.s32.totalorder %s3955_s21, 4  }
 0x7fb   : > { %s5176_s19 = sld [smem:[#allocation11_spill]]  ;;  %s5177_s17 = smov %s3813_s18 }
 0x7fc   : > { %s5179_s20 = smov %s3955_s21  ;;  %30 = sbr.rel (!%p28_p3) target bundleno = 6 (0x6), region = 134 }
 0x800   : > { %s5178_s18 = smov %s5175_s7 }
 0x801   :  { %3424 = vsyncpa [#allocation8], 1 }
 0x802   :  { %3426 = vsyncpa [#allocation8 + $0x1], 1 }

</bundles_post_ra>
